<compile_context>
chip_gen: v7x
topology: tpu7x:2x2x1
jax: 0.10.0
libtpu: 0.0.40
codegen_flags: <defaults>
</compile_context>

<pallas_src>
import functools
import math

import jax
import jax.numpy as jnp
from jax.experimental import pallas as pl
from jax.experimental.pallas import tpu as pltpu


def _vq_kernel(z_ref, e_ref, hesq_ref, zq_ref, sse_ref, *, rows_last):
    """One grid step processes a (TM, D) tile of flattened z.

    z_ref    : (TM, D)     VMEM tile of flattened latents (last tile may be ragged)
    e_ref    : (K, D)      full codebook (grid-invariant -> stays resident)
    hesq_ref : (1, K)      precomputed 0.5 * ||e_k||^2 (hoisted out of the loop)
    zq_ref   : (TM, D)     quantized output tile (OOB rows of last tile are dropped)
    sse_ref  : (1, 8, 128) per-tile SSE partials; lanes [0, D) of row 0 hold the
                           row-reduced sum of squared error (wrapper finishes it)
    rows_last: python int; number of valid rows in the last tile (0 = all tiles full)
    """
    z = z_ref[...].astype(jnp.float32)             # (TM, D)
    e = e_ref[...].astype(jnp.float32)             # (K, D)
    half_e_sq = hesq_ref[...].astype(jnp.float32)  # (1, K)

    tm, dim = z.shape
    k = e.shape[0]

    # Nearest codeword. ||z||^2 is a per-row constant -> dropped from the argmin.
    # dot_general contracts the last dim of BOTH operands -> no transpose emitted.
    cross = jax.lax.dot_general(
        z, e, (((1,), (1,)), ((), ())),
        preferred_element_type=jnp.float32)        # (TM, K) = z . e_k
    score = half_e_sq - cross                      # argmin_k score == argmin_k dist

    # argmin along codebook axis, first-min tie-break (matches torch.argmin).
    min_s = jnp.min(score, axis=1, keepdims=True)                       # (TM, 1)
    col = jax.lax.broadcasted_iota(jnp.int32, (tm, k), 1)               # (TM, K)
    idx = jnp.min(jnp.where(score == min_s, col, k), axis=1,
                  keepdims=True)                                        # (TM, 1)
    idx = jnp.minimum(idx, k - 1)  # NaN/garbage-row safety: never index OOB

    # One-hot @ codebook on the MXU (same as torch scatter_ + matmul).
    onehot = (idx == col).astype(jnp.float32)                           # (TM, K)
    zq = jnp.dot(onehot, e, preferred_element_type=jnp.float32)         # (TM, D)
    zq_ref[...] = zq.astype(zq_ref.dtype)

    diff = zq - z                                                       # (TM, D)

    def write_sse(dd):
        # Reduce only over the row axis -> (1, D) lane vector; wrapper finishes
        # the lane/tile sums.  Avoids a full 2-D XLU reduce + (8,128) broadcast.
        sse_vec = jnp.sum(dd * dd, axis=0, keepdims=True)               # (1, D)
        sse_ref[0:1, 0:1, 0:dim] = sse_vec.reshape(1, 1, dim)

    if rows_last:  # static: last tile is ragged -> mask its unspecified OOB rows
        is_last = pl.program_id(0) == pl.num_programs(0) - 1

        @pl.when(is_last)
        def _():
            row = jax.lax.broadcasted_iota(jnp.int32, (tm, 1), 0)
            # jnp.where (select), not multiply: garbage rows may hold NaN/Inf.
            write_sse(jnp.where(row < rows_last, diff, 0.0))

        @pl.when(jnp.logical_not(is_last))
        def _():
            write_sse(diff)
    else:  # all tiles full: no iota / compare / select at all
        write_sse(diff)


def vector_quantizer_forward(z, embeddings, commitment_cost=0.25, *, tile_m=None):
    """z: (..., D) channel-last latents; embeddings: (K, D) codebook.

    Returns (z_q, loss) matching VectorQuantizer.forward values (forward pass only;
    the straight-through .detach() is a value no-op in the forward direction).
    """
    *lead, D = z.shape
    K, D2 = embeddings.shape
    assert D == D2, "last axis of z must equal embedding_dim"

    N = math.prod(lead)

    if tile_m is None:
        # Big tiles amortize per-step overhead; keep >= 2 tiles so v7x's two
        # TensorCores both get work along the "parallel" grid axis.
        tile_m = min(2048, max(8, ((-(-N // 2)) + 7) // 8 * 8))
    assert tile_m % 8 == 0, "tile_m should be a multiple of 8 (sublane tiling)"

    num_tiles = -(-N // tile_m)          # cdiv
    rows_last = N % tile_m               # 0 -> every tile is full

    # Free (metadata-only) reshape; NO padding copy and NO output slice copy.
    z_flat = z.reshape(N, D)

    # Hoisted codebook-side work: 0.5 * ||e_k||^2 computed once outside the kernel.
    e_f32 = embeddings.astype(jnp.float32)
    half_e_sq = 0.5 * jnp.sum(e_f32 * e_f32, axis=1)[None, :]           # (1, K)

    kernel = functools.partial(_vq_kernel, rows_last=rows_last)

    cost = pl.CostEstimate(
        flops=4 * N * K * D,                         # two (N,K,D) matmuls
        transcendentals=0,
        bytes_accessed=2 * N * D * 4 + K * D * 4 + K * 4
        + num_tiles * 8 * 128 * 4,
    )

    zq_flat, sse_parts = pl.pallas_call(
        kernel,
        out_shape=(
            jax.ShapeDtypeStruct((N, D), z.dtype),
            jax.ShapeDtypeStruct((num_tiles, 8, 128), jnp.float32),
        ),
        grid=(num_tiles,),
        in_specs=[
            pl.BlockSpec((tile_m, D), lambda i: (i, 0)),   # z tile (ragged last ok)
            pl.BlockSpec((K, D), lambda i: (0, 0)),        # full codebook (resident)
            pl.BlockSpec((1, K), lambda i: (0, 0)),        # 0.5*||e||^2 (resident)
        ],
        out_specs=(
            pl.BlockSpec((tile_m, D), lambda i: (i, 0)),     # z_q tile
            pl.BlockSpec((1, 8, 128), lambda i: (i, 0, 0)),  # per-tile SSE partials
        ),
        compiler_params=pltpu.CompilerParams(
            # No cross-iteration state -> grid axis is parallel (v7x: 2 TCs).
            dimension_semantics=("parallel",),
        ),
        cost_estimate=cost,
    )(z_flat, embeddings, half_e_sq)

    # Finish the SSE reduction (a few hundred elements) on the host side of the call.
    sse = jnp.sum(sse_parts[:, 0, :D])
    mse = sse / jnp.float32(N * D)
    # detach() is a value no-op in the forward pass -> both loss terms equal mse.
    loss = (1.0 + jnp.float32(commitment_cost)) * mse
    # z_q = z + (z_q - z).detach()  -> forward value is z_q.
    z_q = zq_flat.reshape(z.shape)
    return z_q, loss


if __name__ == "__main__":
    num_embeddings = 64
    embedding_dim = 32
    commitment_cost = 0.25

    key = jax.random.PRNGKey(0)
    k_emb, k_z = jax.random.split(key)

    # nn.Embedding weight, uniform_(-1/K, 1/K), deterministic.
    embeddings = jax.random.uniform(
        k_emb, (num_embeddings, embedding_dim), dtype=jnp.float32,
        minval=-1.0 / num_embeddings, maxval=1.0 / num_embeddings)

    # Small latent block: batch=3, spatial=16x16, channels(=embedding_dim)=32, NHWC.
    # N = 768 flattened rows.
    z = jax.random.normal(k_z, (3, 16, 16, embedding_dim), dtype=jnp.float32)

    # Pure-JAX reference (exact squared distances; no MXU rounding in the ref path).
    z_flat = z.reshape(-1, embedding_dim)
    d_ref = jnp.sum((z_flat[:, None, :] - embeddings[None, :, :]) ** 2, axis=-1)
    idx_ref = jnp.argmin(d_ref, axis=1)
    zq_ref = embeddings[idx_ref].reshape(z.shape)
    loss_ref = (1.0 + commitment_cost) * jnp.mean((zq_ref - z) ** 2)

    # 1) Auto tile selection: N=768 -> tile_m=384, two full tiles (both TCs busy
    #    on v7x, no ragged block, no masking code traced).
    fwd_auto = jax.jit(functools.partial(
        vector_quantizer_forward, commitment_cost=commitment_cost))
    z_q, loss = fwd_auto(z, embeddings)
    jax.block_until_ready((z_q, loss))
    assert jnp.allclose(z_q, zq_ref, atol=1e-5), "z_q mismatch (auto tiles)"
    assert jnp.allclose(loss, loss_ref, atol=1e-5), "loss mismatch (auto tiles)"

    # 2) Explicit tile_m=512 -> ragged last tile (256 valid rows of 512): exercises
    #    the OOB-output-drop + masked-SSE path with no wrapper pad/slice.
    fwd_ragged = jax.jit(functools.partial(
        vector_quantizer_forward, commitment_cost=commitment_cost, tile_m=512))
    z_q2, loss2 = fwd_ragged(z, embeddings)
    jax.block_until_ready((z_q2, loss2))
    assert jnp.allclose(z_q2, zq_ref, atol=1e-5), "z_q mismatch (ragged tile)"
    assert jnp.allclose(loss2, loss_ref, atol=1e-5), "loss mismatch (ragged tile)"

    print("KERNEL_OK")
</pallas_src>

<mosaic_0001>
module attributes {stable_mosaic.version = 11 : i64} {
  func.func @_vq_kernel(%arg0: i32, %arg1: memref<384x32xf32, #tpu.memory_space<vmem>>, %arg2: memref<64x32xf32, #tpu.memory_space<vmem>>, %arg3: memref<1x64xf32, #tpu.memory_space<vmem>>, %arg4: memref<384x32xf32, #tpu.memory_space<vmem>>, %arg5: memref<1x8x128xf32, #tpu.memory_space<vmem>>) attributes {dimension_semantics = [#tpu.dimension_semantics<parallel>], iteration_bounds = array<i64: 2>, scalar_prefetch = 0 : i64, scratch_operands = 0 : i64, tpu.core_type = #tpu.core_type<tc>, window_params = [{transform_indices = @transform_0, window_bounds = array<i64: 384, 32>}, {pipeline_mode = #tpu.pipeline_mode<synchronous>, transform_indices = @transform_1, window_bounds = array<i64: 64, 32>}, {pipeline_mode = #tpu.pipeline_mode<synchronous>, transform_indices = @transform_2, window_bounds = array<i64: 1, 64>}, {transform_indices = @transform_3, window_bounds = array<i64: 384, 32>}, {transform_indices = @transform_4, window_bounds = array<i64: 1, 8, 128>}]} {
    %c0 = arith.constant 0 : index
    %c0_0 = arith.constant 0 : index
    %0 = vector.load %arg1[%c0, %c0_0] : memref<384x32xf32, #tpu.memory_space<vmem>>, vector<384x32xf32>
    %c0_1 = arith.constant 0 : index
    %c0_2 = arith.constant 0 : index
    %1 = vector.load %arg2[%c0_1, %c0_2] : memref<64x32xf32, #tpu.memory_space<vmem>>, vector<64x32xf32>
    %c0_3 = arith.constant 0 : index
    %c0_4 = arith.constant 0 : index
    %2 = vector.load %arg3[%c0_3, %c0_4] : memref<1x64xf32, #tpu.memory_space<vmem>>, vector<1x64xf32>
    %cst = arith.constant dense<0.000000e+00> : vector<384x64xf32>
    %3 = tpu.matmul %0, %1, %cst {dimension_numbers = #tpu.dot_dimension_numbers<[1], [1], [0], [0], [0, 0, 1, 0], [], []>} : vector<384x32xf32>, vector<64x32xf32>, vector<384x64xf32> -> vector<384x64xf32>
    %4 = vector.broadcast %2 : vector<1x64xf32> to vector<384x64xf32>
    %5 = arith.subf %4, %3 : vector<384x64xf32>
    %cst_5 = arith.constant dense<0x7F800000> : vector<384xf32>
    %6 = vector.multi_reduction <minimumf>, %5, %cst_5 [1] : vector<384x64xf32> to vector<384xf32>
    %7 = vector.shape_cast %6 : vector<384xf32> to vector<384x1xf32>
    %8 = tpu.iota {dimensions = array<i32: 1>} : vector<384x64xi32>
    %9 = vector.broadcast %7 : vector<384x1xf32> to vector<384x64xf32>
    %10 = arith.cmpf oeq, %5, %9 : vector<384x64xf32>
    %c64_i32 = arith.constant 64 : i32
    %11 = vector.broadcast %c64_i32 : i32 to vector<384x64xi32>
    %12 = arith.select %10, %8, %11 : vector<384x64xi1>, vector<384x64xi32>
    %cst_6 = arith.constant dense<2147483647> : vector<384xi32>
    %13 = vector.multi_reduction <minsi>, %12, %cst_6 [1] : vector<384x64xi32> to vector<384xi32>
    %14 = vector.shape_cast %13 : vector<384xi32> to vector<384x1xi32>
    %c63_i32 = arith.constant 63 : i32
    %15 = vector.broadcast %c63_i32 : i32 to vector<384x1xi32>
    %16 = arith.minsi %14, %15 : vector<384x1xi32>
    %17 = vector.broadcast %16 : vector<384x1xi32> to vector<384x64xi32>
    %18 = arith.cmpi eq, %17, %8 : vector<384x64xi32>
    %19 = arith.extui %18 : vector<384x64xi1> to vector<384x64xi32>
    %20 = arith.sitofp %19 : vector<384x64xi32> to vector<384x64xf32>
    %cst_7 = arith.constant dense<0.000000e+00> : vector<384x32xf32>
    %21 = tpu.matmul %20, %1, %cst_7 {dimension_numbers = #tpu.dot_dimension_numbers<[1], [0], [0], [1], [0, 0, 1, 1], [], []>} : vector<384x64xf32>, vector<64x32xf32>, vector<384x32xf32> -> vector<384x32xf32>
    %c0_8 = arith.constant 0 : index
    %c0_9 = arith.constant 0 : index
    %22 = vector.load %arg4[%c0_8, %c0_9] : memref<384x32xf32, #tpu.memory_space<vmem>>, vector<384x32xf32>
    tpu.vector_store %arg4[%c0_8, %c0_9], %21 {strides = array<i32>} : memref<384x32xf32, #tpu.memory_space<vmem>>, vector<384x32xf32>,
    %23 = arith.subf %21, %0 : vector<384x32xf32>
    %24 = arith.mulf %23, %23 : vector<384x32xf32>
    %cst_10 = arith.constant dense<0.000000e+00> : vector<32xf32>
    %25 = vector.multi_reduction <add>, %24, %cst_10 [0] : vector<384x32xf32> to vector<32xf32>
    %26 = vector.shape_cast %25 : vector<32xf32> to vector<1x32xf32>
    %27 = vector.shape_cast %26 : vector<1x32xf32> to vector<1x1x32xf32>
    %c0_11 = arith.constant 0 : index
    %c0_12 = arith.constant 0 : index
    %c0_13 = arith.constant 0 : index
    %28 = vector.load %arg5[%c0_11, %c0_12, %c0_13] : memref<1x8x128xf32, #tpu.memory_space<vmem>>, vector<1x1x32xf32>
    tpu.vector_store %arg5[%c0_11, %c0_12, %c0_13], %27 {strides = array<i32>} : memref<1x8x128xf32, #tpu.memory_space<vmem>>, vector<1x1x32xf32>,
    return
  }
  func.func @transform_0(%arg0: i32) -> (i32, i32) {
    %c0_i32 = arith.constant 0 : i32
    %c0_i32_0 = arith.constant 0 : i32
    return %arg0, %c0_i32 : i32, i32
  }
  func.func @transform_1(%arg0: i32) -> (i32, i32) {
    %c0_i32 = arith.constant 0 : i32
    %c0_i32_0 = arith.constant 0 : i32
    %c0_i32_1 = arith.constant 0 : i32
    return %c0_i32, %c0_i32_0 : i32, i32
  }
  func.func @transform_2(%arg0: i32) -> (i32, i32) {
    %c0_i32 = arith.constant 0 : i32
    %c0_i32_0 = arith.constant 0 : i32
    %c0_i32_1 = arith.constant 0 : i32
    return %c0_i32, %c0_i32_0 : i32, i32
  }
  func.func @transform_3(%arg0: i32) -> (i32, i32) {
    %c0_i32 = arith.constant 0 : i32
    %c0_i32_0 = arith.constant 0 : i32
    return %arg0, %c0_i32 : i32, i32
  }
  func.func @transform_4(%arg0: i32) -> (i32, i32, i32) {
    %c0_i32 = arith.constant 0 : i32
    %c0_i32_0 = arith.constant 0 : i32
    %c0_i32_1 = arith.constant 0 : i32
    return %arg0, %c0_i32, %c0_i32_0 : i32, i32, i32
  }
}

</mosaic_0001>

<bundles_post_ra>
// kernel: vector_quantizer_forward.1
= control target key start
LH: loop header
LB: loop body
LE: loop exit
PB: predicated region body
PF: predicated region fallthrough
CT: control target
= control target key end

     0   :  { %10 = vsyncpa [#allocation3], 0  ;;  %s5203_s0 = inlined_call_operand.hbm [shape: f32[768,32], index: 0, kind: input, shape index: {}]   ;;  %s5204_s1 = inlined_call_operand.vmem [shape: f32[64,32], index: 1, kind: input, shape index: {}]   ;;  %s5205_s2 = inlined_call_operand.vmem [shape: f32[1,64], index: 2, kind: input, shape index: {}]   ;;  %s5206_s3 = inlined_call_operand.hbm [shape: f32[768,32], index: 3, kind: output, shape index: {0}]   ;;  %s5207_s4 = inlined_call_operand.vmem [shape: f32[2,8,128], index: 4, kind: output, shape index: {1}]  }
   0x1   :  { %12 = vsyncpa [#allocation3 + $0x1], 0 }
   0x2   :  { %13 = vsyncpa [#allocation4], 0 }
   0x3   :  { %15 = vsyncpa [#allocation4 + $0x1], 0  ;;  %s3554_s15 = smov 0   ;;  %s3556_s16 = smov 0  }
   0x4   :  { %s3558_s17 = smov 0   ;;  %s3560_s18 = smov 0  }
   0x5 LB: > { %s3575_s19 = sadd.s32 4294967295, %s3520_s18   ;;  %s2831_s20 = sadd.s32 4294967294, %s3520_s18   ;;  %s3520_s18 = sphi %s3560_s18, %s5354_s18   ;;  %s3516_s17 = sphi %s3558_s17, %s5353_s17   ;;  %s3512_s16 = sphi %s3556_s16, %s5352_s16   ;;  %s3508_s15 = sphi %s3554_s15, %s5351_s15  }
   0x6   : > { %s3579_s21 = sadd.s32 1, %s3520_s18   ;;  %s28_s22 = sadd.s32 1, %s3516_s17 }
   0x7   : > { %s25_s23 = ssub.s32 %s3520_s18, %s3579_s21  ;;  %p35_p0 = scmp.ne.s32.totalorder %s3516_s17, %s3512_s16 }
   0x8   : > { %p26_p1 = scmp.eq.s32.totalorder %s25_s23, 0  ;;  %p36_p2 = scmp.eq.s32.totalorder %s3520_s18, 0 }
   0x9   : > { %p41_p3 = scmp.ne.s32.totalorder %s3512_s16, %s3508_s15  ;;  %p42_p4 = scmp.eq.s32.totalorder %s3575_s19, 0 }
   0xa   : > { %s3591_s24 = scalar_select %p26_p1, %s3516_s17, %s28_s22  }
   0xb   : > { %p37_p5 = por %p36_p2, %p35_p0  ;;  %p3593_p6 = por %p42_p4, %p41_p3 }
   0xc   : > { %p107_p7 = scmp.eq.s32.totalorder %s3575_s19, 1  ;;  %p113_p8 = scmp.eq.s32.totalorder %s2831_s20, 1 }
   0xd   : > { %p3337_p10 = scmp.lt.s32.totalorder %s3520_s18, 2  ;;  %s165_s28 = sand.u32 1, %s3516_s17  }
   0xe   : > { %p3600_p11 = por %p107_p7, %p35_p0  ;;  %p3604_p12 = por %p113_p8, %p41_p3 }
   0xf   : > { %s2993_s29 = smul.u32 6144, %s3520_s18  ;;  %p3615_p13 = pnand %p3337_p10, %p37_p5 }
  0x10   : > { %s5255_s26 = scalar_select %p3600_p11, 1, 0 }
  0x11   : > { %s5256_s27 = scalar_select %p3604_p12, 1, 0 }
  0x12   : > { %s3323_s30 = smul.u32 384, %s165_s28  ;;  %s3613_s7 = scalar_lea.hbm %s5203_s0, %s2993_s29 }
  0x13   : > { %s3621_s11 = scalar_lea.sflag [#allocation3], %s165_s28  ;;  %s3424_s12 = scalar_lea.hbm %s3613_s7, 6144 }
  0x14   : > { %s169_s9 = scalar_lea.vmem [#allocation2], %s3323_s30  ;;  %p3425_p0 = scmp.ne.s32.totalorder %s3613_s7, %s3424_s12 }
  0x15   : > { %s176_s10 = sshll.u32 %s169_s9, 4  ;;  %p3426_p1 = pneg %p3615_p13  ;;  %s3619_s10 = int_to_ptr.vmem [resolvable:$true] %s176_s10 }
  0x16   : > { %s3429_s20 = scalar_lea.hbm %s5203_s0, 12288  ;;  %p3430_p4 = scmp.lt.u32.totalorder %s3613_s7, %s5203_s0 }
  0x17   : > { %p3427_p2 = pnand %p3426_p1, %p3425_p0  ;;  %p3431_p5 = scmp.lt.u32.totalorder %s3429_s20, %s3424_s12 }
  0x18   : > { %p3433_p8 = scmp.lt.u32.totalorder %s3424_s12, %s3613_s7 }
  0x19   : > { %p3428_p3 = pneg %p3427_p2  ;;  %p3432_p7 = por %p3431_p5, %p3430_p4 }
  0x1b   : > { %p3434_p10 = por %p3433_p8, %p3432_p7 }
  0x1d   : > { %p3435_p9 = pnand %p3434_p10, %p3428_p3 }
  0x1f   : > { %3438 = shalt.err (!%p3435_p9)
}
  0x20   : > { %s3439_s28 = scalar_lea.vmem %s3619_s10, 6144  ;;  %s3522_s29 = smov [#allocation2]  }
  0x21   : > { %p3440_p0 = scmp.ne.s32.totalorder %s3619_s10, %s3439_s28  ;;  %s3444_s30 = sshll.u32 %s3522_s29, 4  ;;  %s3445_s30 = int_to_ptr.vmem [resolvable:$false] %s3444_s30 }
  0x22   : > { %s3446_s5 = scalar_lea.vmem %s3445_s30, 12288  ;;  %p3447_p11 = scmp.lt.s32.totalorder %s3619_s10, %s3445_s30 }
  0x23   : > { %p3442_p2 = pnand %p3440_p0, %p3426_p1  ;;  %p3448_p4 = scmp.lt.s32.totalorder %s3446_s5, %s3439_s28 }
  0x25   : > { %p3443_p12 = pneg %p3442_p2  ;;  %p3449_p5 = por %p3448_p4, %p3447_p11 }
  0x27   : > { %p3450_p7 = pnand %p3449_p5, %p3443_p12 }
  0x29   : > { %3453 = shalt.err (!%p3450_p7)
}
  0x2a   : > { %s3523_s6 = smov 128   ;;  %s3524_s9 = smov 8  }
  0x2b   : > { %3332 = dma.hbm_to_vmem [thread:$0]  (!%p3615_p13), %s3613_s7, 6144, %s3619_s10, %s3621_s11, %s3523_s6, %s3523_s6, %s3524_s9  }
  0x2c   : > { %p2835_p9 = scmp.ge.s32.totalorder %s3520_s18, 1  ;;  %p184_p1 = scmp.lt.s32.totalorder %s3520_s18, 3 }
  0x2e   : > { %p185_p3 = pnand %p2835_p9, %p184_p1 }
  0x30   : > { %188 = sbr.rel (%p185_p3) target bundleno = 1112 (0x458), region = 32 }
  0x37   : > { %s3652_s12 = sand.u32 1, %s3512_s16  }
  0x38   : > { %s3324_s13 = smul.u32 384, %s3652_s12  ;;  %s191_s14 = scalar_lea.sflag [#allocation3], %s3652_s12 }
  0x3a   : > { %s3658_s20 = scalar_lea.vmem [#allocation2], %s3324_s13 }
  0x3b   : > { %3499 = dma.done.wait (%p3593_p6), %s191_s14, 6144  }
  0x3c   : > { %3501 = vsyncadd (%p3593_p6), %s191_s14, 4294961152  ;;  %vm286_vm0 = vcmask 261120   ;;  %v277_v1 = vld [vmem:[%s5204_s1] sm:$0xff]  ;;  %v278_v2 = vld [vmem:[%s5204_s1 + $0x8] sm:$0xff]  ;;  %vm814_vm2 = vcmask 523264   ;;  %s4953_s22 = scalar_lea.vmem [#allocation5], %s3324_s13 }
  0x3d   : > { %vm3666_vm1 = vmpackc.low %vm286_vm0, %vm286_vm0  ;;  %v279_v3 = vld [vmem:[%s5204_s1 + $0x10] sm:$0xff]  ;;  %v3283_v4 = vpack.c.bf16 %v278_v2, %v277_v1  ;;  %v280_v5 = vld [vmem:[%s5204_s1 + $0x18] sm:$0xff]  ;;  %s2994_s13 = smul.u32 6144, %s3575_s19  ;;  %s2731_s23 = sshll.u32 %s4953_s22, 4  ;;  %s5145_s23 = int_to_ptr.vmem [resolvable:$true] %s2731_s23 }
  0x3e   : > { %v3289_v6 = vpack.c.bf16 %v280_v5, %v279_v3  ;;  %v229_v7 = vld [vmem:[%s3658_s20] sm:$0xff]  ;;  %v282_v9 = vld [vmem:[%s5204_s1 + $0x28] sm:$0xff]  ;;  %v283_v11 = vld [vmem:[%s5204_s1 + $0x30] sm:$0xff]  ;;  %s2714_s30 = scalar_lea.sflag [#allocation4], %s3652_s12  ;;  %s3454_s5 = scalar_lea.vmem %s5145_s23, 6144 }
  0x3f   : > { %3285 = vmatprep.subr.msk.bf16.mxu0 %vm3666_vm1, %v3283_v4  ;;  %3123 = vmatprep.mubr.msk.f32.mxu0 %vm286_vm0, %v229_v7  ;;  %v281_v8 = vld [vmem:[%s5204_s1 + $0x20] sm:$0xff]  ;;  %v284_v12 = vld [vmem:[%s5204_s1 + $0x38] sm:$0xff]  ;;  %v230_v14 = vld [vmem:[%s3658_s20 + $0x8] sm:$0xff]  ;;  %s5143_s29 = scalar_lea.hbm %s5206_s3, %s2994_s13  ;;  %p3455_p6 = scmp.ne.s32.totalorder %s5145_s23, %s3454_s5 }
  0x40   : > { %3288 = vmatpush3.bf16.xpose.msk.msra.mxu0 %vm3666_vm1, %v3283_v4  ;;  %3308 = vmatprep.subr.bf16.mxu1 %v3283_v4  ;;  %v3295_v10 = vpack.c.bf16 %v282_v9, %v281_v8  ;;  %v3301_v13 = vpack.c.bf16 %v284_v12, %v283_v11  ;;  %v231_v15 = vld [vmem:[%s3658_s20 + $0x10] sm:$0xff]  ;;  %v232_v16 = vld [vmem:[%s3658_s20 + $0x18] sm:$0xff]  ;;  %v233_v17 = vld [vmem:[%s3658_s20 + $0x20] sm:$0xff]  ;;  %p5348_p11 = scmp.ne.s32.totalorder %s5255_s26, 0  ;;  %s3526_s6 = smov [#allocation5]  }
  0x41   : > { %3291 = vmatprep.subr.msk.bf16.mxu0 %vm3666_vm1, %v3289_v6  ;;  %3310 = vmatpush3.bf16.msra.mxu1 %v3283_v4  ;;  %v234_v18 = vld [vmem:[%s3658_s20 + $0x28] sm:$0xff]  ;;  %v235_v19 = vld [vmem:[%s3658_s20 + $0x30] sm:$0xff]  ;;  %v236_v20 = vld [vmem:[%s3658_s20 + $0x38] sm:$0xff]  ;;  %s3458_s9 = sshll.u32 %s3526_s6, 4  ;;  %s3459_s9 = int_to_ptr.vmem [resolvable:$false] %s3458_s9 }
  0x42   : > { %3312 = vmatprep.subr.bf16.mxu1 %v3289_v6  ;;  %v237_v21 = vld [vmem:[%s3658_s20 + $0x40] sm:$0xff]  ;;  %v238_v22 = vld [vmem:[%s3658_s20 + $0x48] sm:$0xff]  ;;  %v239_v23 = vld [vmem:[%s3658_s20 + $0x50] sm:$0xff]  ;;  %p3456_p12 = pnand %p3455_p6, %p5348_p11  ;;  %s3460_s14 = scalar_lea.vmem %s3459_s9, 12288 }
  0x43   : > { %v240_v24 = vld [vmem:[%s3658_s20 + $0x58] sm:$0xff]  ;;  %v241_v25 = vld [vmem:[%s3658_s20 + $0x60] sm:$0xff]  ;;  %v242_v26 = vld [vmem:[%s3658_s20 + $0x68] sm:$0xff]  ;;  %p3461_p8 = scmp.lt.s32.totalorder %s5145_s23, %s3459_s9  ;;  %p3462_p10 = scmp.lt.s32.totalorder %s3460_s14, %s3454_s5 }
  0x44   : > { %v243_v27 = vld [vmem:[%s3658_s20 + $0x70] sm:$0xff]  ;;  %v244_v28 = vld [vmem:[%s3658_s20 + $0x78] sm:$0xff]  ;;  %v245_v29 = vld [vmem:[%s3658_s20 + $0x80] sm:$0xff]  ;;  %p3457_p13 = pneg %p3456_p12 }
  0x45   : > { %3314 = vmatpush3.bf16.msra.mxu1 %v3289_v6  ;;  %v246_v30 = vld [vmem:[%s3658_s20 + $0x88] sm:$0xff]  ;;  %v247_v31 = vld [vmem:[%s3658_s20 + $0x90] sm:$0xff]  ;;  %v248_v32 = vld [vmem:[%s3658_s20 + $0x98] sm:$0xff]  ;;  %p3463_p0 = por %p3462_p10, %p3461_p8 }
  0x46   : > { %3316 = vmatprep.subr.bf16.mxu1 %v3295_v10  ;;  %v249_v33 = vld [vmem:[%s3658_s20 + $0xa0] sm:$0xff]  ;;  %v250_v34 = vld [vmem:[%s3658_s20 + $0xa8] sm:$0xff]  ;;  %v251_v35 = vld [vmem:[%s3658_s20 + $0xb0] sm:$0xff] }
  0x47   : > { %v252_v36 = vld [vmem:[%s3658_s20 + $0xb8] sm:$0xff]  ;;  %v253_v37 = vld [vmem:[%s3658_s20 + $0xc0] sm:$0xff]  ;;  %v254_v38 = vld [vmem:[%s3658_s20 + $0xc8] sm:$0xff]  ;;  %p3464_p2 = pnand %p3463_p0, %p3457_p13 }
  0x48   : > { %3294 = vmatpush3.bf16.xpose.msk.msra.mxu0 %vm3666_vm1, %v3289_v6  ;;  %v255_v39 = vld [vmem:[%s3658_s20 + $0xd0] sm:$0xff]  ;;  %v256_v40 = vld [vmem:[%s3658_s20 + $0xd8] sm:$0xff]  ;;  %v257_v41 = vld [vmem:[%s3658_s20 + $0xe0] sm:$0xff] }
  0x49   : > { %3297 = vmatprep.subr.msk.bf16.mxu0 %vm3666_vm1, %v3295_v10  ;;  %3318 = vmatpush3.bf16.msra.mxu1 %v3295_v10  ;;  %v258_v42 = vld [vmem:[%s3658_s20 + $0xe8] sm:$0xff]  ;;  %v259_v43 = vld [vmem:[%s3658_s20 + $0xf0] sm:$0xff]  ;;  %v260_v44 = vld [vmem:[%s3658_s20 + $0xf8] sm:$0xff] }
  0x4a   : > { %3320 = vmatprep.subr.bf16.mxu1 %v3301_v13  ;;  %v261_v45 = vld [vmem:[%s3658_s20 + $0x100] sm:$0xff]  ;;  %v262_v46 = vld [vmem:[%s3658_s20 + $0x108] sm:$0xff]  ;;  %v263_v47 = vld [vmem:[%s3658_s20 + $0x110] sm:$0xff] }
  0x4b   : > { %v264_v48 = vld [vmem:[%s3658_s20 + $0x118] sm:$0xff]  ;;  %v265_v49 = vld [vmem:[%s3658_s20 + $0x120] sm:$0xff]  ;;  %v266_v50 = vld [vmem:[%s3658_s20 + $0x128] sm:$0xff] }
  0x4c   : > { %v267_v51 = vld [vmem:[%s3658_s20 + $0x130] sm:$0xff]  ;;  %v268_v52 = vld [vmem:[%s3658_s20 + $0x138] sm:$0xff]  ;;  %v269_v53 = vld [vmem:[%s3658_s20 + $0x140] sm:$0xff] }
  0x4d   : > { %3322 = vmatpush3.bf16.msra.mxu1 %v3301_v13  ;;  %v270_v54 = vld [vmem:[%s3658_s20 + $0x148] sm:$0xff]  ;;  %v271_v55 = vld [vmem:[%s3658_s20 + $0x150] sm:$0xff]  ;;  %v272_v56 = vld [vmem:[%s3658_s20 + $0x158] sm:$0xff] }
  0x4e   : > { %v273_v57 = vld [vmem:[%s3658_s20 + $0x160] sm:$0xff]  ;;  %v274_v58 = vld [vmem:[%s3658_s20 + $0x168] sm:$0xff]  ;;  %v275_v59 = vld [vmem:[%s3658_s20 + $0x170] sm:$0xff] }
  0x4f   : > { %v276_v60 = vld [vmem:[%s3658_s20 + $0x178] sm:$0xff]  ;;  %v3809_v61 = vld [vmem:[%s5205_s2] ss:$0 sm:$0xff] }
  0x50   : > { %3300 = vmatpush3.bf16.xpose.msk.msra.mxu0 %vm3666_vm1, %v3295_v10 }
  0x51   : > { %3303 = vmatprep.subr.msk.bf16.mxu0 %vm3666_vm1, %v3301_v13 }
  0x58   : > { %3306 = vmatpush3.bf16.xpose.msk.msra.mxu0 %vm3666_vm1, %v3301_v13 }
  0x5f   : > { %3124 = vmatmul.mubr.msk.f32.vlgmr.msra.gmra.mrb[0].mxu0 %vm286_vm0, %v230_v14 }
  0x60   : > { %3126 = vmatprep.mubr.msk.f32.mxu0 %vm286_vm0, %v231_v15 }
  0x63   : > { %3127 = vmatmul.mubr.msk.f32.gmra.mrb[2].mxu0 %vm286_vm0, %v232_v16 }
  0x64   : > { %3129 = vmatprep.mubr.msk.f32.mxu0 %vm286_vm0, %v233_v17 }
  0x67   : > { %3130 = vmatmul.mubr.msk.f32.gmra.mrb[4].mxu0 %vm286_vm0, %v234_v18 }
  0x68   : > { %3132 = vmatprep.mubr.msk.f32.mxu0 %vm286_vm0, %v235_v19 }
  0x6b   : > { %3133 = vmatmul.mubr.msk.f32.gmra.mrb[6].mxu0 %vm286_vm0, %v236_v20 }
  0x6c   : > { %3135 = vmatprep.mubr.msk.f32.mxu0 %vm286_vm0, %v237_v21 }
  0x6f   : > { %3136 = vmatmul.mubr.msk.f32.gmra.mrb[8].mxu0 %vm286_vm0, %v238_v22 }
  0x70   : > { %3138 = vmatprep.mubr.msk.f32.mxu0 %vm286_vm0, %v239_v23 }
  0x73   : > { %3139 = vmatmul.mubr.msk.f32.gmra.mrb[10].mxu0 %vm286_vm0, %v240_v24 }
  0x74   : > { %3141 = vmatprep.mubr.msk.f32.mxu0 %vm286_vm0, %v241_v25 }
  0x77   : > { %3142 = vmatmul.mubr.msk.f32.gmra.mrb[12].mxu0 %vm286_vm0, %v242_v26 }
  0x78   : > { %3144 = vmatprep.mubr.msk.f32.mxu0 %vm286_vm0, %v243_v27 }
  0x7b   : > { %3145 = vmatmul.mubr.msk.f32.gmra.mrb[14].mxu0 %vm286_vm0, %v244_v28 }
  0x7c   : > { %3147 = vmatprep.mubr.msk.f32.mxu0 %vm286_vm0, %v245_v29 }
  0x7f   : > { %3148 = vmatmul.mubr.msk.f32.gmra.mrb[16].mxu0 %vm286_vm0, %v246_v30 }
  0x80   : > { %3150 = vmatprep.mubr.msk.f32.mxu0 %vm286_vm0, %v247_v31 }
  0x83   : > { %3151 = vmatmul.mubr.msk.f32.gmra.mrb[18].mxu0 %vm286_vm0, %v248_v32 }
  0x84   : > { %3153 = vmatprep.mubr.msk.f32.mxu0 %vm286_vm0, %v249_v33 }
  0x87   : > { %3154 = vmatmul.mubr.msk.f32.gmra.mrb[20].mxu0 %vm286_vm0, %v250_v34 }
  0x88   : > { %3156 = vmatprep.mubr.msk.f32.mxu0 %vm286_vm0, %v251_v35 }
  0x8b   : > { %3157 = vmatmul.mubr.msk.f32.gmra.mrb[22].mxu0 %vm286_vm0, %v252_v36 }
  0x8c   : > { %3159 = vmatprep.mubr.msk.f32.mxu0 %vm286_vm0, %v253_v37 }
  0x8f   : > { %3160 = vmatmul.mubr.msk.f32.gmra.mrb[24].mxu0 %vm286_vm0, %v254_v38 }
  0x90   : > { %3162 = vmatprep.mubr.msk.f32.mxu0 %vm286_vm0, %v255_v39 }
  0x93   : > { %3163 = vmatmul.mubr.msk.f32.gmra.mrb[26].mxu0 %vm286_vm0, %v256_v40 }
  0x94   : > { %3165 = vmatprep.mubr.msk.f32.mxu0 %vm286_vm0, %v257_v41 }
  0x97   : > { %3166 = vmatmul.mubr.msk.f32.gmra.mrb[28].mxu0 %vm286_vm0, %v258_v42 }
  0x98   : > { %3168 = vmatprep.mubr.msk.f32.mxu0 %vm286_vm0, %v259_v43 }
  0x9b   : > { %3169 = vmatmul.mubr.msk.f32.gmra.mrb[30].mxu0 %vm286_vm0, %v260_v44 }
  0x9c   : > { %3171 = vmatprep.mubr.msk.f32.mxu0 %vm286_vm0, %v261_v45 }
  0x9f   : > { %3172 = vmatmul.mubr.msk.f32.gmra.mrb[32].mxu0 %vm286_vm0, %v262_v46 }
  0xa0   : > { %3174 = vmatprep.mubr.msk.f32.mxu0 %vm286_vm0, %v263_v47 }
  0xa3   : > { %3175 = vmatmul.mubr.msk.f32.gmra.mrb[34].mxu0 %vm286_vm0, %v264_v48 }
  0xa4   : > { %3177 = vmatprep.mubr.msk.f32.mxu0 %vm286_vm0, %v265_v49 }
  0xa7   : > { %3178 = vmatmul.mubr.msk.f32.gmra.mrb[36].mxu0 %vm286_vm0, %v266_v50 }
  0xa8   : > { %3180 = vmatprep.mubr.msk.f32.mxu0 %vm286_vm0, %v267_v51 }
  0xab   : > { %3181 = vmatmul.mubr.msk.f32.gmra.mrb[38].mxu0 %vm286_vm0, %v268_v52 }
  0xac   : > { %3183 = vmatprep.mubr.msk.f32.mxu0 %vm286_vm0, %v269_v53 }
  0xaf   : > { %3184 = vmatmul.mubr.msk.f32.gmra.mrb[40].mxu0 %vm286_vm0, %v270_v54 }
  0xb0   : > { %3186 = vmatprep.mubr.msk.f32.mxu0 %vm286_vm0, %v271_v55 }
  0xb3   : > { %3187 = vmatmul.mubr.msk.f32.gmra.mrb[42].mxu0 %vm286_vm0, %v272_v56 }
  0xb4   : > { %3189 = vmatprep.mubr.msk.f32.mxu0 %vm286_vm0, %v273_v57 }
  0xb7   : > { %3190 = vmatmul.mubr.msk.f32.gmra.mrb[44].mxu0 %vm286_vm0, %v274_v58 }
  0xb8   : > { %3192 = vmatprep.mubr.msk.f32.mxu0 %vm286_vm0, %v275_v59 }
  0xbb   : > { %3193 = vmatmul.mubr.msk.f32.gmra.mrb[46].mxu0 %vm286_vm0, %v276_v60 }
 0x132   : > { %v3125_v62 = vpop.f32.mrb[0].mxu0 }
 0x133   : > { %v3812_v63 = vsub.f32 %v3809_v61, %v3125_v62  ;;  %v521_v0 = vpop.f32.mrb[1].mxu0 }
 0x134   : > { %v3815_v1 = vsub.f32 %v3809_v61, %v521_v0 }
 0x135   : > { %v818_v2 = vsel %vm814_vm2, %v3812_v63, inf }
 0x136   : > { %819 = vmin.xlane.f32.xlu0 %v818_v2  ;;  %v3128_v3 = vpop.f32.mrb[2].mxu0  ;;  %v815_v7 = vsel %vm814_vm2, %v3815_v1, inf }
 0x137   : > { %v3820_v4 = vsub.f32 %v3809_v61, %v3128_v3  ;;  %v531_v5 = vpop.f32.mrb[3].mxu0 }
 0x138   : > { %v3823_v6 = vsub.f32 %v3809_v61, %v531_v5 }
 0x139   : > { %v824_v8 = vsel %vm814_vm2, %v3820_v4, inf }
 0x13a   : > { %816 = vmin.xlane.f32.xlu0 %v815_v7  ;;  %825 = vmin.xlane.f32.xlu1 %v824_v8  ;;  %v3131_v9 = vpop.f32.mrb[4].mxu0  ;;  %v821_v13 = vsel %vm814_vm2, %v3823_v6, inf }
 0x13b   : > { %v3830_v10 = vsub.f32 %v3809_v61, %v3131_v9  ;;  %v541_v11 = vpop.f32.mrb[5].mxu0 }
 0x13c   : > { %v3833_v12 = vsub.f32 %v3809_v61, %v541_v11 }
 0x13d   : > { %v830_v18 = vsel %vm814_vm2, %v3830_v10, inf }
 0x13e   : > { %822 = vmin.xlane.f32.xlu1 %v821_v13  ;;  %v3134_v14 = vpop.f32.mrb[6].mxu0  ;;  %v827_v15 = vsel %vm814_vm2, %v3833_v12, inf }
 0x13f   : > { %v3840_v16 = vsub.f32 %v3809_v61, %v3134_v14  ;;  %828 = vmin.xlane.f32.xlu0 %v827_v15  ;;  %v551_v17 = vpop.f32.mrb[7].mxu0 }
 0x140   : > { %v3845_v19 = vsub.f32 %v3809_v61, %v551_v17 }
 0x141   : > { %v836_v24 = vsel %vm814_vm2, %v3840_v16, inf }
 0x142   : > { %831 = vmin.xlane.f32.xlu1 %v830_v18  ;;  %v3137_v20 = vpop.f32.mrb[8].mxu0  ;;  %v833_v21 = vsel %vm814_vm2, %v3845_v19, inf }
 0x143   : > { %v3850_v22 = vsub.f32 %v3809_v61, %v3137_v20  ;;  %834 = vmin.xlane.f32.xlu0 %v833_v21  ;;  %v561_v23 = vpop.f32.mrb[9].mxu0 }
 0x144   : > { %v3855_v25 = vsub.f32 %v3809_v61, %v561_v23 }
 0x145   : > { %v842_v30 = vsel %vm814_vm2, %v3850_v22, inf }
 0x146   : > { %837 = vmin.xlane.f32.xlu1 %v836_v24  ;;  %v3140_v26 = vpop.f32.mrb[10].mxu0  ;;  %v839_v27 = vsel %vm814_vm2, %v3855_v25, inf }
 0x147   : > { %v3860_v28 = vsub.f32 %v3809_v61, %v3140_v26  ;;  %840 = vmin.xlane.f32.xlu0 %v839_v27  ;;  %v571_v29 = vpop.f32.mrb[11].mxu0 }
 0x148   : > { %v3865_v31 = vsub.f32 %v3809_v61, %v571_v29 }
 0x149   : > { %v848_v36 = vsel %vm814_vm2, %v3860_v28, inf }
 0x14a   : > { %843 = vmin.xlane.f32.xlu1 %v842_v30  ;;  %v3143_v32 = vpop.f32.mrb[12].mxu0  ;;  %v845_v33 = vsel %vm814_vm2, %v3865_v31, inf }
 0x14b   : > { %v3870_v34 = vsub.f32 %v3809_v61, %v3143_v32  ;;  %846 = vmin.xlane.f32.xlu0 %v845_v33  ;;  %v581_v35 = vpop.f32.mrb[13].mxu0 }
 0x14c   : > { %v3875_v37 = vsub.f32 %v3809_v61, %v581_v35 }
 0x14d   : > { %v854_v42 = vsel %vm814_vm2, %v3870_v34, inf }
 0x14e   : > { %849 = vmin.xlane.f32.xlu1 %v848_v36  ;;  %v3146_v38 = vpop.f32.mrb[14].mxu0  ;;  %v851_v39 = vsel %vm814_vm2, %v3875_v37, inf }
 0x14f   : > { %v3880_v40 = vsub.f32 %v3809_v61, %v3146_v38  ;;  %852 = vmin.xlane.f32.xlu0 %v851_v39  ;;  %v591_v41 = vpop.f32.mrb[15].mxu0 }
 0x150   : > { %v3885_v43 = vsub.f32 %v3809_v61, %v591_v41 }
 0x151   : > { %v860_v48 = vsel %vm814_vm2, %v3880_v40, inf }
 0x152   : > { %855 = vmin.xlane.f32.xlu1 %v854_v42  ;;  %v3149_v44 = vpop.f32.mrb[16].mxu0  ;;  %v857_v45 = vsel %vm814_vm2, %v3885_v43, inf }
 0x153   : > { %v3890_v46 = vsub.f32 %v3809_v61, %v3149_v44  ;;  %858 = vmin.xlane.f32.xlu0 %v857_v45  ;;  %v601_v47 = vpop.f32.mrb[17].mxu0 }
 0x154   : > { %v3895_v49 = vsub.f32 %v3809_v61, %v601_v47 }
 0x155   : > { %v866_v54 = vsel %vm814_vm2, %v3890_v46, inf }
 0x156   : > { %861 = vmin.xlane.f32.xlu1 %v860_v48  ;;  %v3152_v50 = vpop.f32.mrb[18].mxu0  ;;  %v863_v51 = vsel %vm814_vm2, %v3895_v49, inf }
 0x157   : > { %v3900_v52 = vsub.f32 %v3809_v61, %v3152_v50  ;;  %864 = vmin.xlane.f32.xlu0 %v863_v51  ;;  %v611_v53 = vpop.f32.mrb[19].mxu0 }
 0x158   : > { %v3905_v55 = vsub.f32 %v3809_v61, %v611_v53 }
 0x159   : > { %v872_v60 = vsel %vm814_vm2, %v3900_v52, inf }
 0x15a   : > { %867 = vmin.xlane.f32.xlu1 %v866_v54  ;;  %v3155_v56 = vpop.f32.mrb[20].mxu0  ;;  %v869_v57 = vsel %vm814_vm2, %v3905_v55, inf }
 0x15b   : > { %v3910_v58 = vsub.f32 %v3809_v61, %v3155_v56  ;;  %870 = vmin.xlane.f32.xlu0 %v869_v57  ;;  %v621_v59 = vpop.f32.mrb[21].mxu0 }
 0x15c   : > { %v3915_v62 = vsub.f32 %v3809_v61, %v621_v59 }
 0x15d   : > { %v878_v7 = vsel %vm814_vm2, %v3910_v58, inf }
 0x15e   : > { %873 = vmin.xlane.f32.xlu1 %v872_v60  ;;  %v3158_v0 = vpop.f32.mrb[22].mxu0  ;;  %v875_v2 = vsel %vm814_vm2, %v3915_v62, inf }
 0x15f   : > { %v3920_v3 = vsub.f32 %v3809_v61, %v3158_v0  ;;  %876 = vmin.xlane.f32.xlu0 %v875_v2  ;;  %v631_v5 = vpop.f32.mrb[23].mxu0 }
 0x160   : > { %v3925_v8 = vsub.f32 %v3809_v61, %v631_v5 }
 0x161   : > { %v884_v15 = vsel %vm814_vm2, %v3920_v3, inf }
 0x162   : > { %879 = vmin.xlane.f32.xlu1 %v878_v7  ;;  %v3161_v9 = vpop.f32.mrb[24].mxu0  ;;  %v881_v11 = vsel %vm814_vm2, %v3925_v8, inf }
 0x163   : > { %v3930_v13 = vsub.f32 %v3809_v61, %v3161_v9  ;;  %882 = vmin.xlane.f32.xlu0 %v881_v11  ;;  %v641_v14 = vpop.f32.mrb[25].mxu0 }
 0x164   : > { %v3935_v17 = vsub.f32 %v3809_v61, %v641_v14 }
 0x165   : > { %v890_v24 = vsel %vm814_vm2, %v3930_v13, inf }
 0x166   : > { %885 = vmin.xlane.f32.xlu1 %v884_v15  ;;  %v3164_v18 = vpop.f32.mrb[26].mxu0  ;;  %v887_v20 = vsel %vm814_vm2, %v3935_v17, inf }
 0x167   : > { %v3940_v21 = vsub.f32 %v3809_v61, %v3164_v18  ;;  %888 = vmin.xlane.f32.xlu0 %v887_v20  ;;  %v651_v23 = vpop.f32.mrb[27].mxu0 }
 0x168   : > { %v3945_v26 = vsub.f32 %v3809_v61, %v651_v23 }
 0x169   : > { %v896_v33 = vsel %vm814_vm2, %v3940_v21, inf }
 0x16a   : > { %891 = vmin.xlane.f32.xlu1 %v890_v24  ;;  %v3167_v27 = vpop.f32.mrb[28].mxu0  ;;  %v893_v29 = vsel %vm814_vm2, %v3945_v26, inf }
 0x16b   : > { %v3950_v30 = vsub.f32 %v3809_v61, %v3167_v27  ;;  %894 = vmin.xlane.f32.xlu0 %v893_v29  ;;  %v661_v32 = vpop.f32.mrb[29].mxu0 }
 0x16c   : > { %v3955_v35 = vsub.f32 %v3809_v61, %v661_v32 }
 0x16d   : > { %v902_v42 = vsel %vm814_vm2, %v3950_v30, inf }
 0x16e   : > { %897 = vmin.xlane.f32.xlu1 %v896_v33  ;;  %v3170_v36 = vpop.f32.mrb[30].mxu0  ;;  %v899_v38 = vsel %vm814_vm2, %v3955_v35, inf }
 0x16f   : > { %v3960_v39 = vsub.f32 %v3809_v61, %v3170_v36  ;;  %900 = vmin.xlane.f32.xlu0 %v899_v38  ;;  %v671_v41 = vpop.f32.mrb[31].mxu0 }
 0x170   : > { %v3965_v44 = vsub.f32 %v3809_v61, %v671_v41 }
 0x171   : > { %v908_v51 = vsel %vm814_vm2, %v3960_v39, inf }
 0x172   : > { %903 = vmin.xlane.f32.xlu1 %v902_v42  ;;  %v3173_v45 = vpop.f32.mrb[32].mxu0  ;;  %v905_v47 = vsel %vm814_vm2, %v3965_v44, inf }
 0x173   : > { %v3970_v48 = vsub.f32 %v3809_v61, %v3173_v45  ;;  %906 = vmin.xlane.f32.xlu0 %v905_v47  ;;  %v681_v50 = vpop.f32.mrb[33].mxu0 }
 0x174   : > { %v3975_v53 = vsub.f32 %v3809_v61, %v681_v50 }
 0x175   : > { %v914_v60 = vsel %vm814_vm2, %v3970_v48, inf }
 0x176   : > { %909 = vmin.xlane.f32.xlu1 %v908_v51  ;;  %v3176_v54 = vpop.f32.mrb[34].mxu0  ;;  %v911_v56 = vsel %vm814_vm2, %v3975_v53, inf }
 0x177   : > { %v3980_v57 = vsub.f32 %v3809_v61, %v3176_v54  ;;  %912 = vmin.xlane.f32.xlu0 %v911_v56  ;;  %v691_v59 = vpop.f32.mrb[35].mxu0 }
 0x178   : > { %v3985_v0 = vsub.f32 %v3809_v61, %v691_v59 }
 0x179   : > { %v920_v11 = vsel %vm814_vm2, %v3980_v57, inf }
 0x17a   : > { %915 = vmin.xlane.f32.xlu1 %v914_v60  ;;  %v3179_v2 = vpop.f32.mrb[36].mxu0  ;;  %v917_v5 = vsel %vm814_vm2, %v3985_v0, inf }
 0x17b   : > { %v3990_v7 = vsub.f32 %v3809_v61, %v3179_v2  ;;  %918 = vmin.xlane.f32.xlu0 %v917_v5  ;;  %v701_v9 = vpop.f32.mrb[37].mxu0 }
 0x17c   : > { %v3995_v14 = vsub.f32 %v3809_v61, %v701_v9 }
 0x17d   : > { %v926_v24 = vsel %vm814_vm2, %v3990_v7, inf }
 0x17e   : > { %921 = vmin.xlane.f32.xlu1 %v920_v11  ;;  %v3182_v15 = vpop.f32.mrb[38].mxu0  ;;  %v923_v18 = vsel %vm814_vm2, %v3995_v14, inf }
 0x17f   : > { %v4000_v20 = vsub.f32 %v3809_v61, %v3182_v15  ;;  %924 = vmin.xlane.f32.xlu0 %v923_v18  ;;  %v711_v23 = vpop.f32.mrb[39].mxu0 }
 0x180   : > { %v4005_v27 = vsub.f32 %v3809_v61, %v711_v23 }
 0x181   : > { %v932_v36 = vsel %vm814_vm2, %v4000_v20, inf }
 0x182   : > { %927 = vmin.xlane.f32.xlu1 %v926_v24  ;;  %v929_v29 = vsel %vm814_vm2, %v4005_v27, inf  ;;  %v3185_v32 = vpop.f32.mrb[40].mxu0 }
 0x183   : > { %930 = vmin.xlane.f32.xlu0 %v929_v29  ;;  %v4010_v33 = vsub.f32 %v3809_v61, %v3185_v32  ;;  %v721_v38 = vpop.f32.mrb[41].mxu0 }
 0x184   : > { %v4017_v47 = vsub.f32 %v3809_v61, %v721_v38  ;;  %v959_v38 = vlaneseq }
 0x185   : > { %v938_v42 = vsel %vm814_vm2, %v4010_v33, inf }
 0x186   : > { %933 = vmin.xlane.f32.xlu1 %v932_v36  ;;  %v3188_v41 = vpop.f32.mrb[42].mxu0  ;;  %v935_v56 = vsel %vm814_vm2, %v4017_v47, inf }
 0x187   : > { %v731_v45 = vpop.f32.mrb[43].mxu0  ;;  %v4020_v51 = vsub.f32 %v3809_v61, %v3188_v41  ;;  %v4051_v41 = vand.u32 127, %v959_v38 }
 0x188   : > { %v4027_v5 = vsub.f32 %v3809_v61, %v731_v45 }
 0x189   : > { %v944_v60 = vsel %vm814_vm2, %v4020_v51, inf  ;;  %5260 = vst [vmem:[#allocation8_spill] sm:$0xff] %v4051_v41 }
 0x18a   : > { %939 = vmin.xlane.f32.xlu1 %v938_v42  ;;  %v3191_v50 = vpop.f32.mrb[44].mxu0  ;;  %v941_v11 = vsel %vm814_vm2, %v4027_v5, inf }
 0x18b   : > { %v741_v54 = vpop.f32.mrb[45].mxu0  ;;  %v4030_v9 = vsub.f32 %v3809_v61, %v3191_v50 }
 0x18c   : > { %v4037_v18 = vsub.f32 %v3809_v61, %v741_v54 }
 0x18d   : > { %v950_v15 = vsel %vm814_vm2, %v4030_v9, inf }
 0x18e   : > { %936 = vmin.xlane.f32.xlu1 %v935_v56  ;;  %v3194_v59 = vpop.f32.mrb[46].mxu0  ;;  %v947_v24 = vsel %vm814_vm2, %v4037_v18, inf }
 0x18f   : > { %v751_v2 = vpop.f32.mrb[47].mxu0  ;;  %v4040_v23 = vsub.f32 %v3809_v61, %v3194_v59 }
 0x190   : > { %v4047_v32 = vsub.f32 %v3809_v61, %v751_v2 }
 0x191   : > { %v956_v29 = vsel %vm814_vm2, %v4040_v23, inf }
 0x192   : > { %945 = vmin.xlane.f32.xlu1 %v944_v60  ;;  %v953_v36 = vsel %vm814_vm2, %v4047_v32, inf }
 0x196   : > { %942 = vmin.xlane.f32.xlu1 %v941_v11 }
 0x19a   : > { %951 = vmin.xlane.f32.xlu1 %v950_v15 }
 0x19e   : > { %948 = vmin.xlane.f32.xlu1 %v947_v24 }
 0x1a2   : > { %957 = vmin.xlane.f32.xlu1 %v956_v29 }
 0x1a6   : > { %954 = vmin.xlane.f32.xlu1 %v953_v36 }
 0x1c3   : > { %v820_v42 = vpop.xlane.xlu0 %819 }
 0x1c4   : > { %vm962_vm3 = vcmp.eq.f32.partialorder %v3812_v63, %v820_v42 }
 0x1c5   : > { %v1010_v45 = vsel %vm962_vm3, %v4051_v41, 64 }
 0x1c6   : > { %v4056_v50 = vsel %vm814_vm2, %v1010_v45, 2147483647 }
 0x1c7   : > { %v817_v54 = vpop.xlane.xlu0 %816  ;;  %v826_v56 = vpop.xlane.xlu1 %825  ;;  %v1074_v61 = vshra.s32 %v4056_v50, 16 }
 0x1c8   : > { %vm961_vm4 = vcmp.eq.f32.partialorder %v3815_v1, %v817_v54  ;;  %vm964_vm5 = vcmp.eq.f32.partialorder %v3820_v4, %v826_v56 }
 0x1c9   : > { %v1009_v59 = vsel %vm961_vm4, %v4051_v41, 64  ;;  %v1012_v60 = vsel %vm964_vm5, %v4051_v41, 64  ;;  %v4063_v2 = vcvt.s32.f32 %v1074_v61 }
 0x1ca   : > { %v4066_v63 = vsel %vm814_vm2, %v1009_v59, 2147483647  ;;  %v4069_v11 = vsel %vm814_vm2, %v1012_v60, 2147483647 }
 0x1cb   : > { %v823_v15 = vpop.xlane.xlu1 %822  ;;  %1077 = vmin.xlane.f32.xlu0 %v4063_v2  ;;  %v1059_v24 = vshra.s32 %v4066_v63, 16  ;;  %v1104_v36 = vshra.s32 %v4069_v11, 16 }
 0x1cc   : > { %vm963_vm6 = vcmp.eq.f32.partialorder %v3823_v6, %v823_v15  ;;  %v829_v1 = vpop.xlane.xlu0 %828 }
 0x1cd   : > { %v1011_v4 = vsel %vm963_vm6, %v4051_v41, 64  ;;  %v4075_v29 = vcvt.s32.f32 %v1059_v24  ;;  %vm965_vm7 = vcmp.eq.f32.partialorder %v3833_v12, %v829_v1  ;;  %v4085_v54 = vcvt.s32.f32 %v1104_v36 }
 0x1ce   : > { %v4079_v38 = vsel %vm814_vm2, %v1011_v4, 2147483647  ;;  %v1013_v59 = vsel %vm965_vm7, %v4051_v41, 64 }
 0x1cf   : > { %v832_v42 = vpop.xlane.xlu1 %831  ;;  %1062 = vmin.xlane.f32.xlu0 %v4075_v29  ;;  %v1089_v56 = vshra.s32 %v4079_v38, 16  ;;  %v4098_v24 = vsel %vm814_vm2, %v1013_v59, 2147483647 }
 0x1d0   : > { %vm966_vm8 = vcmp.eq.f32.partialorder %v3830_v10, %v832_v42  ;;  %v835_v45 = vpop.xlane.xlu0 %834 }
 0x1d1   : > { %v1014_v6 = vsel %vm966_vm8, %v4051_v41, 64  ;;  %v4094_v15 = vcvt.s32.f32 %v1089_v56  ;;  %vm967_vm10 = vcmp.eq.f32.partialorder %v3845_v19, %v835_v45 }
 0x1d2   : > { %v4089_v61 = vsel %vm814_vm2, %v1014_v6, 2147483647  ;;  %v1119_v6 = vshra.s32 %v4098_v24, 16 }
 0x1d3   : > { %v838_v60 = vpop.xlane.xlu1 %837  ;;  %1107 = vmin.xlane.f32.xlu0 %v4085_v54  ;;  %5261 = vst [vmem:[#allocation9_spill] sm:$0xff] %v4094_v15  ;;  %v1134_v10 = vshra.s32 %v4089_v61, 16 }
 0x1d4   : > { %vm968_vm9 = vcmp.eq.f32.partialorder %v3840_v16, %v838_v60  ;;  %v841_v12 = vpop.xlane.xlu0 %840  ;;  %v1015_v60 = vsel %vm967_vm10, %v4051_v41, 64 }
 0x1d5   : > { %v1016_v1 = vsel %vm968_vm9, %v4051_v41, 64  ;;  %v4105_v42 = vcvt.s32.f32 %v1134_v10  ;;  %vm969_vm12 = vcmp.eq.f32.partialorder %v3855_v25, %v841_v12  ;;  %v4120_v10 = vcvt.s32.f32 %v1119_v6 }
 0x1d6   : > { %v4112_v59 = vsel %vm814_vm2, %v1016_v1, 2147483647 }
 0x1d7   : > { %v844_v4 = vpop.xlane.xlu1 %843  ;;  %1092 = vmin.xlane.f32.xlu0 %v4094_v15  ;;  %5262 = vst [vmem:[#allocation10_spill] sm:$0xff] %v4105_v42  ;;  %v1164_v1 = vshra.s32 %v4112_v59, 16 }
 0x1d8   : > { %vm970_vm11 = vcmp.eq.f32.partialorder %v3850_v22, %v844_v4  ;;  %v847_v36 = vpop.xlane.xlu0 %846 }
 0x1d9   : > { %v1018_v16 = vsel %vm970_vm11, %v4051_v41, 64  ;;  %vm971_vm14 = vcmp.eq.f32.partialorder %v3865_v31, %v847_v36  ;;  %v4138_v6 = vcvt.s32.f32 %v1164_v1 }
 0x1da   : > { %v4109_v56 = vsel %vm814_vm2, %v1018_v16, 2147483647 }
 0x1db   : > { %5263 = vst [vmem:[#allocation11_spill] sm:$0xff] %v4109_v56  ;;  %v850_v15 = vpop.xlane.xlu1 %849  ;;  %1137 = vmin.xlane.f32.xlu0 %v4105_v42  ;;  %v1194_v19 = vshra.s32 %v4109_v56, 16  ;;  %v4129_v42 = vsel %vm814_vm2, %v1015_v60, 2147483647  ;;  %v1017_v56 = vsel %vm969_vm12, %v4051_v41, 64 }
 0x1dc   : > { %vm972_vm13 = vcmp.eq.f32.partialorder %v3860_v28, %v850_v15  ;;  %v853_v22 = vpop.xlane.xlu0 %852 }
 0x1dd   : > { %v1020_v45 = vsel %vm972_vm13, %v4051_v41, 64  ;;  %v4122_v4 = vcvt.s32.f32 %v1194_v19  ;;  %v1149_v19 = vshra.s32 %v4129_v42, 16  ;;  %vm973_vm1 = vcmp.eq.f32.partialorder %v3875_v37, %v853_v22 }
 0x1de   : > { %v4126_v16 = vsel %vm814_vm2, %v1020_v45, 2147483647 }
 0x1df   : > { %5264 = vst [vmem:[#allocation12_spill] sm:$0xff] %v4122_v4  ;;  %5265 = vst [vmem:[#allocation13_spill] sm:$0xff] %v4126_v16  ;;  %v856_v25 = vpop.xlane.xlu1 %855  ;;  %1122 = vmin.xlane.f32.xlu0 %v4120_v10  ;;  %1197 = vmin.xlane.f32.xlu1 %v4122_v4  ;;  %v1224_v28 = vshra.s32 %v4126_v16, 16  ;;  %v4147_v4 = vsel %vm814_vm2, %v1017_v56, 2147483647  ;;  %v1019_v16 = vsel %vm971_vm14, %v4051_v41, 64 }
 0x1e0   : > { %vm974_vm15 = vcmp.eq.f32.partialorder %v3870_v34, %v856_v25  ;;  %v859_v12 = vpop.xlane.xlu0 %858  ;;  %v4156_v25 = vcvt.s32.f32 %v1149_v19 }
 0x1e1   : > { %v1022_v15 = vsel %vm974_vm15, %v4051_v41, 64  ;;  %v4140_v60 = vcvt.s32.f32 %v1224_v28  ;;  %v1179_v28 = vshra.s32 %v4147_v4, 16  ;;  %vm975_vm4 = vcmp.eq.f32.partialorder %v3885_v43, %v859_v12 }
 0x1e2   : > { %v4144_v45 = vsel %vm814_vm2, %v1022_v15, 2147483647 }
 0x1e3   : > { %5266 = vst [vmem:[#allocation14_spill] sm:$0xff] %v4140_v60  ;;  %5267 = vst [vmem:[#allocation15_spill] sm:$0xff] %v4144_v45  ;;  %v862_v31 = vpop.xlane.xlu1 %861  ;;  %1167 = vmin.xlane.f32.xlu0 %v4138_v6  ;;  %1227 = vmin.xlane.f32.xlu1 %v4140_v60  ;;  %v1254_v34 = vshra.s32 %v4144_v45, 16  ;;  %v4165_v60 = vsel %vm814_vm2, %v1019_v16, 2147483647  ;;  %v1021_v45 = vsel %vm973_vm1, %v4051_v41, 64 }
 0x1e4   : > { %vm976_vm3 = vcmp.eq.f32.partialorder %v3880_v40, %v862_v31  ;;  %v865_v36 = vpop.xlane.xlu0 %864  ;;  %v4174_v31 = vcvt.s32.f32 %v1179_v28 }
 0x1e5   : > { %v1024_v1 = vsel %vm976_vm3, %v4051_v41, 64  ;;  %v4158_v56 = vcvt.s32.f32 %v1254_v34  ;;  %v1209_v34 = vshra.s32 %v4165_v60, 16  ;;  %vm977_vm6 = vcmp.eq.f32.partialorder %v3895_v49, %v865_v36 }
 0x1e6   : > { %v4162_v15 = vsel %vm814_vm2, %v1024_v1, 2147483647 }
 0x1e7   : > { %5268 = vst [vmem:[#allocation16_spill] sm:$0xff] %v4158_v56  ;;  %5269 = vst [vmem:[#allocation17_spill] sm:$0xff] %v4162_v15  ;;  %v868_v37 = vpop.xlane.xlu1 %867  ;;  %1152 = vmin.xlane.f32.xlu0 %v4156_v25  ;;  %1257 = vmin.xlane.f32.xlu1 %v4158_v56  ;;  %v1284_v40 = vshra.s32 %v4162_v15, 16  ;;  %v4183_v56 = vsel %vm814_vm2, %v1021_v45, 2147483647  ;;  %v1023_v15 = vsel %vm975_vm4, %v4051_v41, 64 }
 0x1e8   : > { %vm978_vm5 = vcmp.eq.f32.partialorder %v3890_v46, %v868_v37  ;;  %v871_v22 = vpop.xlane.xlu0 %870  ;;  %v4192_v37 = vcvt.s32.f32 %v1209_v34 }
 0x1e9   : > { %v1026_v19 = vsel %vm978_vm5, %v4051_v41, 64  ;;  %v4176_v16 = vcvt.s32.f32 %v1284_v40  ;;  %v1239_v40 = vshra.s32 %v4183_v56, 16  ;;  %vm979_vm8 = vcmp.eq.f32.partialorder %v3905_v55, %v871_v22 }
 0x1ea   : > { %v4180_v1 = vsel %vm814_vm2, %v1026_v19, 2147483647 }
 0x1eb   : > { %5270 = vst [vmem:[#allocation18_spill] sm:$0xff] %v4176_v16  ;;  %5271 = vst [vmem:[#allocation19_spill] sm:$0xff] %v4180_v1  ;;  %v874_v43 = vpop.xlane.xlu1 %873  ;;  %1182 = vmin.xlane.f32.xlu0 %v4174_v31  ;;  %1287 = vmin.xlane.f32.xlu1 %v4176_v16  ;;  %v1314_v46 = vshra.s32 %v4180_v1, 16  ;;  %v4201_v16 = vsel %vm814_vm2, %v1023_v15, 2147483647  ;;  %v1025_v1 = vsel %vm977_vm6, %v4051_v41, 64 }
 0x1ec   : > { %vm980_vm7 = vcmp.eq.f32.partialorder %v3900_v52, %v874_v43  ;;  %v877_v12 = vpop.xlane.xlu0 %876  ;;  %v4210_v43 = vcvt.s32.f32 %v1239_v40 }
 0x1ed   : > { %v1028_v28 = vsel %vm980_vm7, %v4051_v41, 64  ;;  %v4194_v45 = vcvt.s32.f32 %v1314_v46  ;;  %v1269_v46 = vshra.s32 %v4201_v16, 16  ;;  %vm981_vm10 = vcmp.eq.f32.partialorder %v3915_v62, %v877_v12 }
 0x1ee   : > { %v4198_v19 = vsel %vm814_vm2, %v1028_v28, 2147483647 }
 0x1ef   : > { %5272 = vst [vmem:[#allocation20_spill] sm:$0xff] %v4194_v45  ;;  %5273 = vst [vmem:[#allocation21_spill] sm:$0xff] %v4198_v19  ;;  %v880_v49 = vpop.xlane.xlu1 %879  ;;  %1212 = vmin.xlane.f32.xlu0 %v4192_v37  ;;  %1317 = vmin.xlane.f32.xlu1 %v4194_v45  ;;  %v1344_v52 = vshra.s32 %v4198_v19, 16  ;;  %v4219_v45 = vsel %vm814_vm2, %v1025_v1, 2147483647  ;;  %v1027_v19 = vsel %vm979_vm8, %v4051_v41, 64 }
 0x1f0   : > { %vm982_vm9 = vcmp.eq.f32.partialorder %v3910_v58, %v880_v49  ;;  %v883_v36 = vpop.xlane.xlu0 %882  ;;  %v4228_v49 = vcvt.s32.f32 %v1269_v46 }
 0x1f1   : > { %v1030_v34 = vsel %vm982_vm9, %v4051_v41, 64  ;;  %v4212_v15 = vcvt.s32.f32 %v1344_v52  ;;  %v1299_v52 = vshra.s32 %v4219_v45, 16  ;;  %vm983_vm12 = vcmp.eq.f32.partialorder %v3925_v8, %v883_v36 }
 0x1f2   : > { %v4216_v28 = vsel %vm814_vm2, %v1030_v34, 2147483647 }
 0x1f3   : > { %5274 = vst [vmem:[#allocation22_spill] sm:$0xff] %v4212_v15  ;;  %5275 = vst [vmem:[#allocation23_spill] sm:$0xff] %v4216_v28  ;;  %v886_v55 = vpop.xlane.xlu1 %885  ;;  %1242 = vmin.xlane.f32.xlu0 %v4210_v43  ;;  %1347 = vmin.xlane.f32.xlu1 %v4212_v15  ;;  %v1374_v58 = vshra.s32 %v4216_v28, 16  ;;  %v4237_v15 = vsel %vm814_vm2, %v1027_v19, 2147483647  ;;  %v1029_v28 = vsel %vm981_vm10, %v4051_v41, 64 }
 0x1f4   : > { %vm984_vm11 = vcmp.eq.f32.partialorder %v3920_v3, %v886_v55  ;;  %v889_v22 = vpop.xlane.xlu0 %888  ;;  %v4246_v55 = vcvt.s32.f32 %v1299_v52 }
 0x1f5   : > { %v1032_v40 = vsel %vm984_vm11, %v4051_v41, 64  ;;  %v4230_v1 = vcvt.s32.f32 %v1374_v58  ;;  %v1329_v58 = vshra.s32 %v4237_v15, 16  ;;  %vm985_vm14 = vcmp.eq.f32.partialorder %v3935_v17, %v889_v22 }
 0x1f6   : > { %v4234_v34 = vsel %vm814_vm2, %v1032_v40, 2147483647 }
 0x1f7   : > { %5276 = vst [vmem:[#allocation24_spill] sm:$0xff] %v4230_v1  ;;  %5277 = vst [vmem:[#allocation25_spill] sm:$0xff] %v4234_v34  ;;  %v892_v62 = vpop.xlane.xlu1 %891  ;;  %1272 = vmin.xlane.f32.xlu0 %v4228_v49  ;;  %1377 = vmin.xlane.f32.xlu1 %v4230_v1  ;;  %v1404_v3 = vshra.s32 %v4234_v34, 16  ;;  %v4255_v1 = vsel %vm814_vm2, %v1029_v28, 2147483647  ;;  %v1031_v34 = vsel %vm983_vm12, %v4051_v41, 64 }
 0x1f8   : > { %vm986_vm13 = vcmp.eq.f32.partialorder %v3930_v13, %v892_v62  ;;  %v895_v12 = vpop.xlane.xlu0 %894  ;;  %v4264_v62 = vcvt.s32.f32 %v1329_v58 }
 0x1f9   : > { %v1034_v46 = vsel %vm986_vm13, %v4051_v41, 64  ;;  %v4248_v19 = vcvt.s32.f32 %v1404_v3  ;;  %v1359_v3 = vshra.s32 %v4255_v1, 16  ;;  %vm987_vm1 = vcmp.eq.f32.partialorder %v3945_v26, %v895_v12 }
 0x1fa   : > { %v4252_v40 = vsel %vm814_vm2, %v1034_v46, 2147483647 }
 0x1fb   : > { %5278 = vst [vmem:[#allocation26_spill] sm:$0xff] %v4248_v19  ;;  %5279 = vst [vmem:[#allocation27_spill] sm:$0xff] %v4252_v40  ;;  %v898_v8 = vpop.xlane.xlu1 %897  ;;  %1302 = vmin.xlane.f32.xlu0 %v4246_v55  ;;  %1407 = vmin.xlane.f32.xlu1 %v4248_v19  ;;  %v1434_v13 = vshra.s32 %v4252_v40, 16  ;;  %v4273_v19 = vsel %vm814_vm2, %v1031_v34, 2147483647  ;;  %v1033_v40 = vsel %vm985_vm14, %v4051_v41, 64 }
 0x1fc   : > { %vm988_vm15 = vcmp.eq.f32.partialorder %v3940_v21, %v898_v8  ;;  %v901_v36 = vpop.xlane.xlu0 %900  ;;  %v4282_v8 = vcvt.s32.f32 %v1359_v3 }
 0x1fd   : > { %v1036_v52 = vsel %vm988_vm15, %v4051_v41, 64  ;;  %v4266_v28 = vcvt.s32.f32 %v1434_v13  ;;  %v1389_v13 = vshra.s32 %v4273_v19, 16  ;;  %vm989_vm4 = vcmp.eq.f32.partialorder %v3955_v35, %v901_v36 }
 0x1fe   : > { %v4270_v46 = vsel %vm814_vm2, %v1036_v52, 2147483647 }
 0x1ff   : > { %5280 = vst [vmem:[#allocation28_spill] sm:$0xff] %v4266_v28  ;;  %5281 = vst [vmem:[#allocation29_spill] sm:$0xff] %v4270_v46  ;;  %v904_v17 = vpop.xlane.xlu1 %903  ;;  %1332 = vmin.xlane.f32.xlu0 %v4264_v62  ;;  %1437 = vmin.xlane.f32.xlu1 %v4266_v28  ;;  %v1464_v21 = vshra.s32 %v4270_v46, 16  ;;  %v4291_v28 = vsel %vm814_vm2, %v1033_v40, 2147483647  ;;  %v1035_v46 = vsel %vm987_vm1, %v4051_v41, 64 }
 0x200   : > { %vm990_vm3 = vcmp.eq.f32.partialorder %v3950_v30, %v904_v17  ;;  %v907_v22 = vpop.xlane.xlu0 %906  ;;  %v4300_v17 = vcvt.s32.f32 %v1389_v13 }
 0x201   : > { %v1038_v58 = vsel %vm990_vm3, %v4051_v41, 64  ;;  %v4284_v34 = vcvt.s32.f32 %v1464_v21  ;;  %v1419_v21 = vshra.s32 %v4291_v28, 16  ;;  %vm991_vm6 = vcmp.eq.f32.partialorder %v3965_v44, %v907_v22 }
 0x202   : > { %v4288_v52 = vsel %vm814_vm2, %v1038_v58, 2147483647 }
 0x203   : > { %5282 = vst [vmem:[#allocation30_spill] sm:$0xff] %v4284_v34  ;;  %5283 = vst [vmem:[#allocation31_spill] sm:$0xff] %v4288_v52  ;;  %v910_v26 = vpop.xlane.xlu1 %909  ;;  %1362 = vmin.xlane.f32.xlu0 %v4282_v8  ;;  %1467 = vmin.xlane.f32.xlu1 %v4284_v34  ;;  %v1494_v30 = vshra.s32 %v4288_v52, 16  ;;  %v4309_v34 = vsel %vm814_vm2, %v1035_v46, 2147483647  ;;  %v1037_v52 = vsel %vm989_vm4, %v4051_v41, 64 }
 0x204   : > { %vm992_vm5 = vcmp.eq.f32.partialorder %v3960_v39, %v910_v26  ;;  %v913_v12 = vpop.xlane.xlu0 %912  ;;  %v4318_v26 = vcvt.s32.f32 %v1419_v21 }
 0x205   : > { %v1040_v3 = vsel %vm992_vm5, %v4051_v41, 64  ;;  %v4302_v40 = vcvt.s32.f32 %v1494_v30  ;;  %v1449_v30 = vshra.s32 %v4309_v34, 16  ;;  %vm993_vm8 = vcmp.eq.f32.partialorder %v3975_v53, %v913_v12 }
 0x206   : > { %v4306_v58 = vsel %vm814_vm2, %v1040_v3, 2147483647 }
 0x207   : > { %5284 = vst [vmem:[#allocation32_spill] sm:$0xff] %v4302_v40  ;;  %5285 = vst [vmem:[#allocation33_spill] sm:$0xff] %v4306_v58  ;;  %v916_v35 = vpop.xlane.xlu1 %915  ;;  %1392 = vmin.xlane.f32.xlu0 %v4300_v17  ;;  %1497 = vmin.xlane.f32.xlu1 %v4302_v40  ;;  %v1524_v39 = vshra.s32 %v4306_v58, 16  ;;  %v4327_v40 = vsel %vm814_vm2, %v1037_v52, 2147483647  ;;  %v1039_v58 = vsel %vm991_vm6, %v4051_v41, 64  ;;  %v4336_v21 = vcvt.s32.f32 %v1449_v30 }
 0x208   : > { %vm994_vm7 = vcmp.eq.f32.partialorder %v3970_v48, %v916_v35  ;;  %v919_v13 = vpop.xlane.xlu0 %918  ;;  %v1479_v52 = vshra.s32 %v4327_v40, 16 }
 0x209   : > { %v1042_v36 = vsel %vm994_vm7, %v4051_v41, 64  ;;  %v4320_v46 = vcvt.s32.f32 %v1524_v39  ;;  %vm995_vm10 = vcmp.eq.f32.partialorder %v3985_v0, %v919_v13 }
 0x20a   : > { %v4324_v3 = vsel %vm814_vm2, %v1042_v36, 2147483647  ;;  %v4345_v36 = vsel %vm814_vm2, %v1039_v58, 2147483647  ;;  %v4354_v30 = vcvt.s32.f32 %v1479_v52 }
 0x20b   : > { %5286 = vst [vmem:[#allocation34_spill] sm:$0xff] %v4320_v46  ;;  %5287 = vst [vmem:[#allocation35_spill] sm:$0xff] %v4324_v3  ;;  %v922_v44 = vpop.xlane.xlu1 %921  ;;  %1422 = vmin.xlane.f32.xlu0 %v4318_v26  ;;  %1527 = vmin.xlane.f32.xlu1 %v4320_v46  ;;  %v1554_v48 = vshra.s32 %v4324_v3, 16  ;;  %v1041_v3 = vsel %vm993_vm8, %v4051_v41, 64 }
 0x20c   : > { %vm996_vm9 = vcmp.eq.f32.partialorder %v3980_v57, %v922_v44  ;;  %v925_v46 = vpop.xlane.xlu0 %924  ;;  %v1509_v44 = vshra.s32 %v4345_v36, 16 }
 0x20d   : > { %v1044_v22 = vsel %vm996_vm9, %v4051_v41, 64  ;;  %v4338_v35 = vcvt.s32.f32 %v1554_v48  ;;  %vm997_vm12 = vcmp.eq.f32.partialorder %v3995_v14, %v925_v46 }
 0x20e   : > { %v4342_v39 = vsel %vm814_vm2, %v1044_v22, 2147483647  ;;  %v4363_v22 = vsel %vm814_vm2, %v1041_v3, 2147483647  ;;  %v4372_v52 = vcvt.s32.f32 %v1509_v44 }
 0x20f   : > { %5288 = vst [vmem:[#allocation36_spill] sm:$0xff] %v4338_v35  ;;  %5289 = vst [vmem:[#allocation37_spill] sm:$0xff] %v4342_v39  ;;  %v928_v53 = vpop.xlane.xlu1 %927  ;;  %1452 = vmin.xlane.f32.xlu0 %v4336_v21  ;;  %1557 = vmin.xlane.f32.xlu1 %v4338_v35  ;;  %v1584_v57 = vshra.s32 %v4342_v39, 16  ;;  %v1043_v39 = vsel %vm995_vm10, %v4051_v41, 64 }
 0x210   : > { %vm998_vm11 = vcmp.eq.f32.partialorder %v3990_v7, %v928_v53  ;;  %v931_v7 = vpop.xlane.xlu0 %930  ;;  %v1539_v53 = vshra.s32 %v4363_v22, 16 }
 0x211   : > { %v1046_v12 = vsel %vm998_vm11, %v4051_v41, 64  ;;  %v4356_v58 = vcvt.s32.f32 %v1584_v57  ;;  %vm999_vm14 = vcmp.eq.f32.partialorder %v4005_v27, %v931_v7 }
 0x212   : > { %v4360_v48 = vsel %vm814_vm2, %v1046_v12, 2147483647  ;;  %v4381_v12 = vsel %vm814_vm2, %v1043_v39, 2147483647 }
 0x213   : > { %5290 = vst [vmem:[#allocation38_spill] sm:$0xff] %v4360_v48  ;;  %v934_v35 = vpop.xlane.xlu1 %933  ;;  %1482 = vmin.xlane.f32.xlu0 %v4354_v30  ;;  %1587 = vmin.xlane.f32.xlu1 %v4356_v58  ;;  %v1614_v0 = vshra.s32 %v4360_v48, 16  ;;  %v1045_v48 = vsel %vm997_vm12, %v4051_v41, 64  ;;  %v1569_v39 = vshra.s32 %v4381_v12, 16 }
 0x214   : > { %vm1000_vm13 = vcmp.eq.f32.partialorder %v4000_v20, %v934_v35  ;;  %v4390_v35 = vcvt.s32.f32 %v1539_v53 }
 0x215   : > { %v1048_v13 = vsel %vm1000_vm13, %v4051_v41, 64  ;;  %v4374_v3 = vcvt.s32.f32 %v1614_v0  ;;  %v4406_v7 = vcvt.s32.f32 %v1569_v39 }
 0x216   : > { %v4378_v57 = vsel %vm814_vm2, %v1048_v13, 2147483647  ;;  %v4399_v13 = vsel %vm814_vm2, %v1045_v48, 2147483647 }
 0x217   : > { %5291 = vst [vmem:[#allocation39_spill] sm:$0xff] %v4378_v57  ;;  %1512 = vmin.xlane.f32.xlu0 %v4372_v52  ;;  %v940_v14 = vpop.xlane.xlu1 %939  ;;  %1617 = vmin.xlane.f32.xlu1 %v4374_v3  ;;  %v1644_v20 = vshra.s32 %v4378_v57, 16  ;;  %v1047_v57 = vsel %vm999_vm14, %v4051_v41, 64 }
 0x218   : > { %vm1002_vm15 = vcmp.eq.f32.partialorder %v4010_v33, %v940_v14  ;;  %v1599_v14 = vshra.s32 %v4399_v13, 16  ;;  %v4412_v48 = vsel %vm814_vm2, %v1047_v57, 2147483647 }
 0x219   : > { %v1050_v46 = vsel %vm1002_vm15, %v4051_v41, 64  ;;  %v4392_v44 = vcvt.s32.f32 %v1644_v20 }
 0x21a   : > { %v4396_v0 = vsel %vm814_vm2, %v1050_v46, 2147483647  ;;  %v4419_v39 = vcvt.s32.f32 %v1599_v14 }
 0x21b   : > { %5292 = vst [vmem:[#allocation40_spill] sm:$0xff] %v4392_v44  ;;  %5293 = vst [vmem:[#allocation41_spill] sm:$0xff] %v4396_v0  ;;  %1542 = vmin.xlane.f32.xlu0 %v4390_v35  ;;  %v937_v27 = vpop.xlane.xlu1 %936  ;;  %1647 = vmin.xlane.f32.xlu1 %v4392_v44  ;;  %v1674_v33 = vshra.s32 %v4396_v0, 16 }
 0x21c   : > { %vm1001_vm1 = vcmp.eq.f32.partialorder %v4017_v47, %v937_v27  ;;  %v1629_v27 = vshra.s32 %v4412_v48, 16 }
 0x21d   : > { %v4408_v53 = vcvt.s32.f32 %v1674_v33  ;;  %v1049_v20 = vsel %vm1001_vm1, %v4051_v41, 64 }
 0x21e   : > { %v4426_v57 = vsel %vm814_vm2, %v1049_v20, 2147483647 }
 0x21f   : > { %5294 = vst [vmem:[#allocation42_spill] sm:$0xff] %v4408_v53  ;;  %1572 = vmin.xlane.f32.xlu0 %v4406_v7  ;;  %v946_v46 = vpop.xlane.xlu1 %945  ;;  %1677 = vmin.xlane.f32.xlu1 %v4408_v53  ;;  %5295 = vst [vmem:[#allocation43_spill] sm:$0xff] %v4426_v57  ;;  %v1659_v53 = vshra.s32 %v4426_v57, 16 }
 0x220   : > { %vm1004_vm3 = vcmp.eq.f32.partialorder %v4020_v51, %v946_v46  ;;  %v4432_v46 = vcvt.s32.f32 %v1629_v27 }
 0x221   : > { %v1052_v47 = vsel %vm1004_vm3, %v4051_v41, 64 }
 0x222   : > { %v4423_v33 = vsel %vm814_vm2, %v1052_v47, 2147483647  ;;  %5296 = vst [vmem:[#allocation44_spill] sm:$0xff] %v4432_v46 }
 0x223   : > { %1602 = vmin.xlane.f32.xlu0 %v4419_v39  ;;  %v943_v0 = vpop.xlane.xlu1 %942  ;;  %v1704_v44 = vshra.s32 %v4423_v33, 16 }
 0x224   : > { %vm1003_vm4 = vcmp.eq.f32.partialorder %v4027_v5, %v943_v0  ;;  %v4444_v0 = vcvt.s32.f32 %v1659_v53 }
 0x225   : > { %v1051_v51 = vsel %vm1003_vm4, %v4051_v41, 64  ;;  %v4434_v14 = vcvt.s32.f32 %v1704_v44 }
 0x226   : > { %v4438_v47 = vsel %vm814_vm2, %v1051_v51, 2147483647 }
 0x227   : > { %5297 = vst [vmem:[#allocation45_spill] sm:$0xff] %v4434_v14  ;;  %1632 = vmin.xlane.f32.xlu0 %v4432_v46  ;;  %v952_v20 = vpop.xlane.xlu1 %951  ;;  %1707 = vmin.xlane.f32.xlu1 %v4434_v14  ;;  %v1689_v27 = vshra.s32 %v4438_v47, 16 }
 0x228   : > { %vm1006_vm5 = vcmp.eq.f32.partialorder %v4030_v9, %v952_v20 }
 0x229   : > { %v1054_v5 = vsel %vm1006_vm5, %v4051_v41, 64  ;;  %v4454_v46 = vcvt.s32.f32 %v1689_v27 }
 0x22a   : > { %v4448_v44 = vsel %vm814_vm2, %v1054_v5, 2147483647 }
 0x22b   : > { %1662 = vmin.xlane.f32.xlu0 %v4444_v0  ;;  %v949_v51 = vpop.xlane.xlu1 %948  ;;  %v1734_v57 = vshra.s32 %v4448_v44, 16  ;;  %5298 = vst [vmem:[#allocation46_spill] sm:$0xff] %v4454_v46 }
 0x22c   : > { %vm1005_vm6 = vcmp.eq.f32.partialorder %v4037_v18, %v949_v51 }
 0x22d   : > { %v1053_v14 = vsel %vm1005_vm6, %v4051_v41, 64  ;;  %v4456_v9 = vcvt.s32.f32 %v1734_v57 }
 0x22e   : > { %v4459_v53 = vsel %vm814_vm2, %v1053_v14, 2147483647 }
 0x22f   : > { %5299 = vst [vmem:[#allocation47_spill] sm:$0xff] %v4456_v9  ;;  %1692 = vmin.xlane.f32.xlu0 %v4454_v46  ;;  %v958_v20 = vpop.xlane.xlu1 %957  ;;  %1737 = vmin.xlane.f32.xlu1 %v4456_v9  ;;  %v1719_v5 = vshra.s32 %v4459_v53, 16 }
 0x230   : > { %vm1008_vm7 = vcmp.eq.f32.partialorder %v4040_v23, %v958_v20 }
 0x231   : > { %v1056_v18 = vsel %vm1008_vm7, %v4051_v41, 64  ;;  %v4466_v51 = vcvt.s32.f32 %v1719_v5 }
 0x232   : > { %v4469_v27 = vsel %vm814_vm2, %v1056_v18, 2147483647  ;;  %v1073_v18 = vand.u32 65535, %v4056_v50  ;;  %v1088_v50 = vand.u32 65535, %v4079_v38  ;;  %v1118_v38 = vand.u32 65535, %v4098_v24  ;;  %v5306_v24 = vld [vmem:[#allocation11_spill] sm:$0xff] }
 0x233   : > { %5300 = vst [vmem:[#allocation48_spill] sm:$0xff] %v4466_v51  ;;  %1722 = vmin.xlane.f32.xlu0 %v4466_v51  ;;  %v955_v57 = vpop.xlane.xlu1 %954  ;;  %v1764_v14 = vshra.s32 %v4469_v27, 16 }
 0x234   : > { %vm1007_vm8 = vcmp.eq.f32.partialorder %v4047_v32, %v955_v57  ;;  %v1075_v32 = vcvt.s32.f32 %v1073_v18  ;;  %v1058_v57 = vand.u32 65535, %v4066_v63 }
 0x235   : > { %v1055_v9 = vsel %vm1007_vm8, %v4051_v41, 64  ;;  %v4475_v46 = vcvt.s32.f32 %v1764_v14  ;;  %v1103_v14 = vand.u32 65535, %v4069_v11  ;;  %v1133_v11 = vand.u32 65535, %v4089_v61 }
 0x236   : > { %v4478_v23 = vsel %vm814_vm2, %v1055_v9, 2147483647  ;;  %v1163_v61 = vand.u32 65535, %v4112_v59 }
 0x237   : > { %1767 = vmin.xlane.f32.xlu1 %v4475_v46  ;;  %v1749_v20 = vshra.s32 %v4478_v23, 16  ;;  %v1105_v63 = vcvt.s32.f32 %v1103_v14  ;;  %v1135_v14 = vcvt.s32.f32 %v1133_v11  ;;  %v1148_v11 = vand.u32 65535, %v4129_v42 }
 0x239   : > { %v4482_v5 = vcvt.s32.f32 %v1749_v20  ;;  %v1060_v20 = vcvt.s32.f32 %v1058_v57  ;;  %v1090_v57 = vcvt.s32.f32 %v1088_v50 }
 0x23b   : > { %5301 = vst [vmem:[#allocation49_spill] sm:$0xff] %v4482_v5  ;;  %1752 = vmin.xlane.f32.xlu0 %v4482_v5 }
 0x258   : > { %v4486_v51 = vpop.xlane.xlu0 %1077 }
 0x259   : > { %vm1079_vm9 = vcmp.eq.f32.partialorder %v4063_v2, %v4486_v51 }
 0x25a   : > { %v1080_v9 = vsel %vm1079_vm9, %v1075_v32, inf }
 0x25b   : > { %1081 = vmin.xlane.f32.xlu1 %v1080_v9  ;;  %v5302_v9 = vld [vmem:[#allocation9_spill] sm:$0xff] }
 0x25c   : > { %v4492_v41 = vpop.xlane.xlu0 %1062 }
 0x25d   : > { %vm1064_vm10 = vcmp.eq.f32.partialorder %v4075_v29, %v4492_v41 }
 0x25e   : > { %v1065_v5 = vsel %vm1064_vm10, %v1060_v20, inf  ;;  %v5303_v20 = vld [vmem:[#allocation10_spill] sm:$0xff] }
 0x25f   : > { %1066 = vmin.xlane.f32.xlu0 %v1065_v5 }
 0x260   : > { %v4497_v18 = vpop.xlane.xlu0 %1107 }
 0x261   : > { %vm1109_vm11 = vcmp.eq.f32.partialorder %v4085_v54, %v4497_v18 }
 0x262   : > { %v1110_v2 = vsel %vm1109_vm11, %v1105_v63, inf }
 0x263   : > { %1111 = vmin.xlane.f32.xlu1 %v1110_v2  ;;  %v1120_v2 = vcvt.s32.f32 %v1118_v38  ;;  %v5307_v38 = vld [vmem:[#allocation12_spill] sm:$0xff] }
 0x264   : > { %v4502_v32 = vpop.xlane.xlu0 %1092 }
 0x265   : > { %vm1094_vm12 = vcmp.eq.f32.partialorder %v5302_v9, %v4502_v32  ;;  %v1193_v9 = vand.u32 65535, %v5306_v24  ;;  %v1150_v24 = vcvt.s32.f32 %v1148_v11 }
 0x266   : > { %v1095_v29 = vsel %vm1094_vm12, %v1090_v57, inf }
 0x267   : > { %1096 = vmin.xlane.f32.xlu0 %v1095_v29 }
 0x268   : > { %v4507_v5 = vpop.xlane.xlu0 %1137 }
 0x269   : > { %vm1139_vm13 = vcmp.eq.f32.partialorder %v5303_v20, %v4507_v5  ;;  %v1165_v20 = vcvt.s32.f32 %v1163_v61 }
 0x26a   : > { %v1140_v54 = vsel %vm1139_vm13, %v1135_v14, inf }
 0x26b   : > { %1141 = vmin.xlane.f32.xlu1 %v1140_v54 }
 0x26c   : > { %v4512_v63 = vpop.xlane.xlu0 %1122  ;;  %v4514_v50 = vpop.xlane.xlu1 %1197 }
 0x26d   : > { %5304 = vst [vmem:[#allocation9_spill] sm:$0xff] %v4512_v63  ;;  %5305 = vst [vmem:[#allocation10_spill] sm:$0xff] %v4514_v50  ;;  %vm1124_vm14 = vcmp.eq.f32.partialorder %v4120_v10, %v4512_v63  ;;  %vm1199_vm1 = vcmp.eq.f32.partialorder %v5307_v38, %v4514_v50  ;;  %v5308_v10 = vld [vmem:[#allocation13_spill] sm:$0xff]  ;;  %v1195_v63 = vcvt.s32.f32 %v1193_v9 }
 0x26e   : > { %v1125_v57 = vsel %vm1124_vm14, %v1120_v2, inf  ;;  %v1223_v54 = vand.u32 65535, %v5308_v10  ;;  %v1178_v2 = vand.u32 65535, %v4147_v4  ;;  %v1208_v4 = vand.u32 65535, %v4165_v60 }
 0x26f   : > { %1126 = vmin.xlane.f32.xlu0 %v1125_v57  ;;  %v1238_v60 = vand.u32 65535, %v4183_v56  ;;  %v1268_v56 = vand.u32 65535, %v4201_v16  ;;  %v1298_v16 = vand.u32 65535, %v4219_v45  ;;  %v1328_v45 = vand.u32 65535, %v4237_v15 }
 0x270   : > { %v4520_v29 = vpop.xlane.xlu0 %1167  ;;  %v4522_v14 = vpop.xlane.xlu1 %1227  ;;  %v1180_v11 = vcvt.s32.f32 %v1178_v2  ;;  %v1225_v9 = vcvt.s32.f32 %v1223_v54  ;;  %v1210_v2 = vcvt.s32.f32 %v1208_v4  ;;  %v1358_v15 = vand.u32 65535, %v4255_v1 }
 0x271   : > { %vm1169_vm15 = vcmp.eq.f32.partialorder %v4138_v6, %v4520_v29  ;;  %v1200_v6 = vsel %vm1199_vm1, %v1195_v63, inf  ;;  %v1240_v4 = vcvt.s32.f32 %v1238_v60  ;;  %v1270_v60 = vcvt.s32.f32 %v1268_v56 }
 0x272   : > { %v1170_v59 = vsel %vm1169_vm15, %v1165_v20, inf  ;;  %v5309_v20 = vld [vmem:[#allocation14_spill] sm:$0xff]  ;;  %v1300_v56 = vcvt.s32.f32 %v1298_v16  ;;  %v1330_v16 = vcvt.s32.f32 %v1328_v45  ;;  %v1388_v1 = vand.u32 65535, %v4273_v19 }
 0x273   : > { %1171 = vmin.xlane.f32.xlu1 %v1170_v59  ;;  %vm1229_vm4 = vcmp.eq.f32.partialorder %v5309_v20, %v4522_v14  ;;  %v5310_v59 = vld [vmem:[#allocation15_spill] sm:$0xff]  ;;  %v1360_v45 = vcvt.s32.f32 %v1358_v15  ;;  %v1418_v19 = vand.u32 65535, %v4291_v28  ;;  %v1448_v28 = vand.u32 65535, %v4309_v34 }
 0x274   : > { %v4530_v57 = vpop.xlane.xlu0 %1152  ;;  %v4532_v42 = vpop.xlane.xlu1 %1257  ;;  %v1253_v38 = vand.u32 65535, %v5310_v59  ;;  %v1230_v63 = vsel %vm1229_vm4, %v1225_v9, inf  ;;  %v5313_v9 = vld [vmem:[#allocation18_spill] sm:$0xff]  ;;  %v1390_v15 = vcvt.s32.f32 %v1388_v1  ;;  %v1478_v34 = vand.u32 65535, %v4327_v40 }
 0x275   : > { %vm1154_vm3 = vcmp.eq.f32.partialorder %v4156_v25, %v4530_v57  ;;  %v1420_v1 = vcvt.s32.f32 %v1418_v19  ;;  %v1450_v19 = vcvt.s32.f32 %v1448_v28  ;;  %v1508_v40 = vand.u32 65535, %v4345_v36 }
 0x276   : > { %v1155_v61 = vsel %vm1154_vm3, %v1150_v24, inf  ;;  %v5311_v24 = vld [vmem:[#allocation16_spill] sm:$0xff]  ;;  %v1255_v54 = vcvt.s32.f32 %v1253_v38  ;;  %v1480_v28 = vcvt.s32.f32 %v1478_v34  ;;  %v1538_v36 = vand.u32 65535, %v4363_v22 }
 0x277   : > { %1156 = vmin.xlane.f32.xlu0 %v1155_v61  ;;  %1201 = vmin.xlane.f32.xlu1 %v1200_v6  ;;  %vm1259_vm6 = vcmp.eq.f32.partialorder %v5311_v24, %v4532_v42  ;;  %v5312_v61 = vld [vmem:[#allocation17_spill] sm:$0xff]  ;;  %v1510_v34 = vcvt.s32.f32 %v1508_v40  ;;  %v1568_v22 = vand.u32 65535, %v4381_v12  ;;  %v1598_v12 = vand.u32 65535, %v4399_v13 }
 0x278   : > { %v4540_v10 = vpop.xlane.xlu0 %1182  ;;  %v4542_v50 = vpop.xlane.xlu1 %1287  ;;  %v1283_v6 = vand.u32 65535, %v5312_v61 }
 0x279   : > { %vm1184_vm5 = vcmp.eq.f32.partialorder %v4174_v31, %v4540_v10  ;;  %vm1289_vm8 = vcmp.eq.f32.partialorder %v5313_v9, %v4542_v50 }
 0x27a   : > { %v1185_v25 = vsel %vm1184_vm5, %v1180_v11, inf  ;;  %v1260_v11 = vsel %vm1259_vm6, %v1255_v54, inf  ;;  %v1285_v38 = vcvt.s32.f32 %v1283_v6  ;;  %v5315_v54 = vld [vmem:[#allocation20_spill] sm:$0xff] }
 0x27b   : > { %1186 = vmin.xlane.f32.xlu0 %v1185_v25  ;;  %1231 = vmin.xlane.f32.xlu1 %v1230_v63  ;;  %v5314_v25 = vld [vmem:[#allocation19_spill] sm:$0xff] }
 0x27c   : > { %v4550_v20 = vpop.xlane.xlu0 %1212  ;;  %v4552_v59 = vpop.xlane.xlu1 %1317  ;;  %v1313_v63 = vand.u32 65535, %v5314_v25 }
 0x27d   : > { %vm1214_vm7 = vcmp.eq.f32.partialorder %v4192_v37, %v4550_v20  ;;  %vm1319_vm10 = vcmp.eq.f32.partialorder %v5315_v54, %v4552_v59 }
 0x27e   : > { %v1215_v31 = vsel %vm1214_vm7, %v1210_v2, inf  ;;  %v1290_v2 = vsel %vm1289_vm8, %v1285_v38, inf  ;;  %v1315_v6 = vcvt.s32.f32 %v1313_v63  ;;  %v5317_v38 = vld [vmem:[#allocation22_spill] sm:$0xff] }
 0x27f   : > { %1216 = vmin.xlane.f32.xlu0 %v1215_v31  ;;  %1261 = vmin.xlane.f32.xlu1 %v1260_v11  ;;  %v5316_v31 = vld [vmem:[#allocation21_spill] sm:$0xff] }
 0x280   : > { %v4560_v24 = vpop.xlane.xlu0 %1242  ;;  %v4562_v61 = vpop.xlane.xlu1 %1347  ;;  %v1343_v11 = vand.u32 65535, %v5316_v31 }
 0x281   : > { %vm1244_vm9 = vcmp.eq.f32.partialorder %v4210_v43, %v4560_v24  ;;  %vm1349_vm12 = vcmp.eq.f32.partialorder %v5317_v38, %v4562_v61 }
 0x282   : > { %v1245_v37 = vsel %vm1244_vm9, %v1240_v4, inf  ;;  %v1320_v4 = vsel %vm1319_vm10, %v1315_v6, inf  ;;  %v1345_v63 = vcvt.s32.f32 %v1343_v11  ;;  %v5319_v6 = vld [vmem:[#allocation24_spill] sm:$0xff] }
 0x283   : > { %1246 = vmin.xlane.f32.xlu0 %v1245_v37  ;;  %1291 = vmin.xlane.f32.xlu1 %v1290_v2  ;;  %v5318_v37 = vld [vmem:[#allocation23_spill] sm:$0xff] }
 0x284   : > { %v4570_v9 = vpop.xlane.xlu0 %1272  ;;  %v4572_v25 = vpop.xlane.xlu1 %1377  ;;  %v1373_v2 = vand.u32 65535, %v5318_v37 }
 0x285   : > { %vm1274_vm11 = vcmp.eq.f32.partialorder %v4228_v49, %v4570_v9  ;;  %vm1379_vm14 = vcmp.eq.f32.partialorder %v5319_v6, %v4572_v25 }
 0x286   : > { %v1275_v43 = vsel %vm1274_vm11, %v1270_v60, inf  ;;  %v1350_v60 = vsel %vm1349_vm12, %v1345_v63, inf  ;;  %v1375_v11 = vcvt.s32.f32 %v1373_v2  ;;  %v5321_v63 = vld [vmem:[#allocation26_spill] sm:$0xff] }
 0x287   : > { %1276 = vmin.xlane.f32.xlu0 %v1275_v43  ;;  %1321 = vmin.xlane.f32.xlu1 %v1320_v4  ;;  %v5320_v43 = vld [vmem:[#allocation25_spill] sm:$0xff] }
 0x288   : > { %v4580_v54 = vpop.xlane.xlu0 %1302  ;;  %v4582_v31 = vpop.xlane.xlu1 %1407  ;;  %v1403_v4 = vand.u32 65535, %v5320_v43 }
 0x289   : > { %vm1304_vm13 = vcmp.eq.f32.partialorder %v4246_v55, %v4580_v54  ;;  %vm1409_vm1 = vcmp.eq.f32.partialorder %v5321_v63, %v4582_v31 }
 0x28a   : > { %v1305_v49 = vsel %vm1304_vm13, %v1300_v56, inf  ;;  %v1380_v56 = vsel %vm1379_vm14, %v1375_v11, inf  ;;  %v1405_v2 = vcvt.s32.f32 %v1403_v4  ;;  %v5323_v11 = vld [vmem:[#allocation28_spill] sm:$0xff] }
 0x28b   : > { %1306 = vmin.xlane.f32.xlu0 %v1305_v49  ;;  %1351 = vmin.xlane.f32.xlu1 %v1350_v60  ;;  %v5322_v49 = vld [vmem:[#allocation27_spill] sm:$0xff] }
 0x28c   : > { %v4590_v38 = vpop.xlane.xlu0 %1332  ;;  %v4592_v37 = vpop.xlane.xlu1 %1437  ;;  %v1433_v60 = vand.u32 65535, %v5322_v49 }
 0x28d   : > { %vm1334_vm15 = vcmp.eq.f32.partialorder %v4264_v62, %v4590_v38  ;;  %vm1439_vm4 = vcmp.eq.f32.partialorder %v5323_v11, %v4592_v37 }
 0x28e   : > { %v1335_v55 = vsel %vm1334_vm15, %v1330_v16, inf  ;;  %v1410_v16 = vsel %vm1409_vm1, %v1405_v2, inf  ;;  %v1435_v4 = vcvt.s32.f32 %v1433_v60  ;;  %v5325_v2 = vld [vmem:[#allocation30_spill] sm:$0xff] }
 0x28f   : > { %1336 = vmin.xlane.f32.xlu0 %v1335_v55  ;;  %1381 = vmin.xlane.f32.xlu1 %v1380_v56  ;;  %v5324_v55 = vld [vmem:[#allocation29_spill] sm:$0xff] }
 0x290   : > { %v4600_v6 = vpop.xlane.xlu0 %1362  ;;  %v4602_v43 = vpop.xlane.xlu1 %1467  ;;  %v1463_v56 = vand.u32 65535, %v5324_v55 }
 0x291   : > { %vm1364_vm3 = vcmp.eq.f32.partialorder %v4282_v8, %v4600_v6  ;;  %vm1469_vm6 = vcmp.eq.f32.partialorder %v5325_v2, %v4602_v43 }
 0x292   : > { %v1365_v62 = vsel %vm1364_vm3, %v1360_v45, inf  ;;  %v1440_v45 = vsel %vm1439_vm4, %v1435_v4, inf  ;;  %v1465_v60 = vcvt.s32.f32 %v1463_v56  ;;  %v5327_v4 = vld [vmem:[#allocation32_spill] sm:$0xff] }
 0x293   : > { %1366 = vmin.xlane.f32.xlu0 %v1365_v62  ;;  %1411 = vmin.xlane.f32.xlu1 %v1410_v16  ;;  %v5326_v62 = vld [vmem:[#allocation31_spill] sm:$0xff] }
 0x294   : > { %v4610_v63 = vpop.xlane.xlu0 %1392  ;;  %v4612_v49 = vpop.xlane.xlu1 %1497  ;;  %v1493_v16 = vand.u32 65535, %v5326_v62 }
 0x295   : > { %vm1394_vm5 = vcmp.eq.f32.partialorder %v4300_v17, %v4610_v63  ;;  %vm1499_vm8 = vcmp.eq.f32.partialorder %v5327_v4, %v4612_v49 }
 0x296   : > { %v1395_v8 = vsel %vm1394_vm5, %v1390_v15, inf  ;;  %v1470_v15 = vsel %vm1469_vm6, %v1465_v60, inf  ;;  %v1495_v56 = vcvt.s32.f32 %v1493_v16  ;;  %v5329_v60 = vld [vmem:[#allocation34_spill] sm:$0xff] }
 0x297   : > { %1396 = vmin.xlane.f32.xlu0 %v1395_v8  ;;  %1441 = vmin.xlane.f32.xlu1 %v1440_v45  ;;  %v5328_v8 = vld [vmem:[#allocation33_spill] sm:$0xff] }
 0x298   : > { %v4620_v11 = vpop.xlane.xlu0 %1422  ;;  %v4622_v55 = vpop.xlane.xlu1 %1527  ;;  %v1523_v45 = vand.u32 65535, %v5328_v8 }
 0x299   : > { %vm1424_vm7 = vcmp.eq.f32.partialorder %v4318_v26, %v4620_v11  ;;  %vm1529_vm10 = vcmp.eq.f32.partialorder %v5329_v60, %v4622_v55 }
 0x29a   : > { %v1425_v17 = vsel %vm1424_vm7, %v1420_v1, inf  ;;  %v1500_v1 = vsel %vm1499_vm8, %v1495_v56, inf  ;;  %v1525_v16 = vcvt.s32.f32 %v1523_v45  ;;  %v5331_v56 = vld [vmem:[#allocation36_spill] sm:$0xff] }
 0x29b   : > { %1426 = vmin.xlane.f32.xlu0 %v1425_v17  ;;  %1471 = vmin.xlane.f32.xlu1 %v1470_v15  ;;  %v5330_v17 = vld [vmem:[#allocation35_spill] sm:$0xff] }
 0x29c   : > { %v4630_v2 = vpop.xlane.xlu0 %1452  ;;  %v4632_v62 = vpop.xlane.xlu1 %1557  ;;  %v1553_v15 = vand.u32 65535, %v5330_v17 }
 0x29d   : > { %vm1454_vm9 = vcmp.eq.f32.partialorder %v4336_v21, %v4630_v2  ;;  %vm1559_vm12 = vcmp.eq.f32.partialorder %v5331_v56, %v4632_v62  ;;  %v1540_v56 = vcvt.s32.f32 %v1538_v36  ;;  %v1570_v36 = vcvt.s32.f32 %v1568_v22 }
 0x29e   : > { %v1455_v26 = vsel %vm1454_vm9, %v1450_v19, inf  ;;  %v1530_v19 = vsel %vm1529_vm10, %v1525_v16, inf  ;;  %v1555_v45 = vcvt.s32.f32 %v1553_v15  ;;  %v5333_v16 = vld [vmem:[#allocation38_spill] sm:$0xff]  ;;  %v1600_v22 = vcvt.s32.f32 %v1598_v12 }
 0x29f   : > { %1456 = vmin.xlane.f32.xlu0 %v1455_v26  ;;  %1501 = vmin.xlane.f32.xlu1 %v1500_v1  ;;  %v5332_v26 = vld [vmem:[#allocation37_spill] sm:$0xff] }
 0x2a0   : > { %v4640_v4 = vpop.xlane.xlu0 %1482  ;;  %v4642_v8 = vpop.xlane.xlu1 %1587  ;;  %v1583_v1 = vand.u32 65535, %v5332_v26 }
 0x2a1   : > { %vm1484_vm11 = vcmp.eq.f32.partialorder %v4354_v30, %v4640_v4  ;;  %vm1589_vm14 = vcmp.eq.f32.partialorder %v4356_v58, %v4642_v8  ;;  %v5334_v58 = vld [vmem:[#allocation39_spill] sm:$0xff] }
 0x2a2   : > { %v1485_v21 = vsel %vm1484_vm11, %v1480_v28, inf  ;;  %v1560_v28 = vsel %vm1559_vm12, %v1555_v45, inf  ;;  %v1585_v26 = vcvt.s32.f32 %v1583_v1 }
 0x2a3   : > { %1486 = vmin.xlane.f32.xlu0 %v1485_v21  ;;  %1531 = vmin.xlane.f32.xlu1 %v1530_v19  ;;  %v1613_v21 = vand.u32 65535, %v5333_v16 }
 0x2a4   : > { %v4650_v60 = vpop.xlane.xlu0 %1512  ;;  %v4652_v17 = vpop.xlane.xlu1 %1617  ;;  %v1590_v40 = vsel %vm1589_vm14, %v1585_v26, inf }
 0x2a5   : > { %vm1514_vm13 = vcmp.eq.f32.partialorder %v4372_v52, %v4650_v60  ;;  %vm1619_vm1 = vcmp.eq.f32.partialorder %v4374_v3, %v4652_v17  ;;  %v1615_v1 = vcvt.s32.f32 %v1613_v21  ;;  %v5336_v3 = vld [vmem:[#allocation41_spill] sm:$0xff] }
 0x2a6   : > { %v1515_v30 = vsel %vm1514_vm13, %v1510_v34, inf  ;;  %v1643_v34 = vand.u32 65535, %v5334_v58  ;;  %v1673_v16 = vand.u32 65535, %v5336_v3  ;;  %v1703_v58 = vand.u32 65535, %v4423_v33  ;;  %v5340_v3 = vld [vmem:[#allocation45_spill] sm:$0xff] }
 0x2a7   : > { %1516 = vmin.xlane.f32.xlu0 %v1515_v30  ;;  %1561 = vmin.xlane.f32.xlu1 %v1560_v28  ;;  %v1620_v30 = vsel %vm1619_vm1, %v1615_v1, inf  ;;  %v5335_v28 = vld [vmem:[#allocation40_spill] sm:$0xff]  ;;  %v1688_v33 = vand.u32 65535, %v4438_v47 }
 0x2a8   : > { %v4660_v19 = vpop.xlane.xlu0 %1542  ;;  %v4664_v15 = vpop.xlane.xlu1 %1647  ;;  %v1645_v21 = vcvt.s32.f32 %v1643_v34  ;;  %v1675_v34 = vcvt.s32.f32 %v1673_v16 }
 0x2a9   : > { %vm1544_vm15 = vcmp.eq.f32.partialorder %v4390_v35, %v4660_v19  ;;  %vm1649_vm4 = vcmp.eq.f32.partialorder %v5335_v28, %v4664_v15  ;;  %v1690_v47 = vcvt.s32.f32 %v1688_v33  ;;  %v1748_v33 = vand.u32 65535, %v4478_v23 }
 0x2aa   : > { %v1545_v52 = vsel %vm1544_vm15, %v1540_v56, inf  ;;  %v1628_v56 = vand.u32 65535, %v4412_v48 }
 0x2ab   : > { %1546 = vmin.xlane.f32.xlu0 %v1545_v52  ;;  %1591 = vmin.xlane.f32.xlu1 %v1590_v40  ;;  %v1650_v52 = vsel %vm1649_vm4, %v1645_v21, inf  ;;  %v5337_v40 = vld [vmem:[#allocation42_spill] sm:$0xff] }
 0x2ac   : > { %v4670_v45 = vpop.xlane.xlu0 %1572  ;;  %v4678_v26 = vpop.xlane.xlu1 %1677  ;;  %v1630_v12 = vcvt.s32.f32 %v1628_v56 }
 0x2ad   : > { %vm1574_vm3 = vcmp.eq.f32.partialorder %v4406_v7, %v4670_v45  ;;  %vm1679_vm6 = vcmp.eq.f32.partialorder %v5337_v40, %v4678_v26  ;;  %v1718_v40 = vand.u32 65535, %v4459_v53 }
 0x2ae   : > { %v1575_v35 = vsel %vm1574_vm3, %v1570_v36, inf  ;;  %v5338_v36 = vld [vmem:[#allocation43_spill] sm:$0xff]  ;;  %v1680_v28 = vsel %vm1679_vm6, %v1675_v34, inf }
 0x2af   : > { %1576 = vmin.xlane.f32.xlu0 %v1575_v35  ;;  %1621 = vmin.xlane.f32.xlu1 %v1620_v30  ;;  %v1658_v48 = vand.u32 65535, %v5338_v36  ;;  %v5339_v30 = vld [vmem:[#allocation44_spill] sm:$0xff]  ;;  %v1720_v53 = vcvt.s32.f32 %v1718_v40 }
 0x2b0   : > { %v4680_v13 = vpop.xlane.xlu0 %1602 }
 0x2b1   : > { %vm1604_vm5 = vcmp.eq.f32.partialorder %v4419_v39, %v4680_v13 }
 0x2b2   : > { %v1605_v7 = vsel %vm1604_vm5, %v1600_v22, inf  ;;  %v1733_v22 = vand.u32 65535, %v4448_v44  ;;  %v5341_v44 = vld [vmem:[#allocation46_spill] sm:$0xff] }
 0x2b3   : > { %1606 = vmin.xlane.f32.xlu0 %v1605_v7  ;;  %1651 = vmin.xlane.f32.xlu1 %v1650_v52  ;;  %v1660_v7 = vcvt.s32.f32 %v1658_v48  ;;  %v1705_v52 = vcvt.s32.f32 %v1703_v58  ;;  %v5342_v58 = vld [vmem:[#allocation47_spill] sm:$0xff] }
 0x2b4   : > { %v4688_v1 = vpop.xlane.xlu0 %1632  ;;  %v4690_v35 = vpop.xlane.xlu1 %1707  ;;  %v1735_v34 = vcvt.s32.f32 %v1733_v22 }
 0x2b5   : > { %vm1634_vm7 = vcmp.eq.f32.partialorder %v5339_v30, %v4688_v1  ;;  %vm1709_vm8 = vcmp.eq.f32.partialorder %v5340_v3, %v4690_v35  ;;  %v1763_v30 = vand.u32 65535, %v4469_v27  ;;  %v1750_v27 = vcvt.s32.f32 %v1748_v33 }
 0x2b6   : > { %v1635_v39 = vsel %vm1634_vm7, %v1630_v12, inf  ;;  %v1710_v56 = vsel %vm1709_vm8, %v1705_v52, inf  ;;  %v1099_v33 = vcvt.f32.s32 %v4502_v32 }
 0x2b7   : > { %1636 = vmin.xlane.f32.xlu0 %v1635_v39  ;;  %1681 = vmin.xlane.f32.xlu1 %v1680_v28  ;;  %v5343_v28 = vld [vmem:[#allocation48_spill] sm:$0xff] }
 0x2b8   : > { %v4698_v21 = vpop.xlane.xlu0 %1662 }
 0x2b9   : > { %vm1664_vm9 = vcmp.eq.f32.partialorder %v4444_v0, %v4698_v21 }
 0x2ba   : > { %v1665_v16 = vsel %vm1664_vm9, %v1660_v7, inf  ;;  %v1765_v7 = vcvt.s32.f32 %v1763_v30  ;;  %v1114_v30 = vcvt.f32.s32 %v4497_v18 }
 0x2bb   : > { %1666 = vmin.xlane.f32.xlu0 %v1665_v16  ;;  %1711 = vmin.xlane.f32.xlu1 %v1710_v56  ;;  %v5344_v56 = vld [vmem:[#allocation49_spill] sm:$0xff] }
 0x2bc   : > { %v4703_v36 = vpop.xlane.xlu0 %1692  ;;  %v4705_v12 = vpop.xlane.xlu1 %1737 }
 0x2bd   : > { %vm1694_vm10 = vcmp.eq.f32.partialorder %v5341_v44, %v4703_v36  ;;  %vm1739_vm11 = vcmp.eq.f32.partialorder %v5342_v58, %v4705_v12  ;;  %v1069_v44 = vcvt.f32.s32 %v4492_v41 }
 0x2be   : > { %v1695_v48 = vsel %vm1694_vm10, %v1690_v47, inf  ;;  %v1740_v0 = vsel %vm1739_vm11, %v1735_v34, inf  ;;  %v1084_v47 = vcvt.f32.s32 %v4486_v51 }
 0x2bf   : > { %1696 = vmin.xlane.f32.xlu0 %v1695_v48  ;;  %1741 = vmin.xlane.f32.xlu1 %v1740_v0 }
 0x2c0   : > { %v4712_v39 = vpop.xlane.xlu0 %1722  ;;  %v1085_v23 = vshll.u32 %v1084_v47, 16 }
 0x2c1   : > { %vm1724_vm12 = vcmp.eq.f32.partialorder %v5343_v28, %v4712_v39 }
 0x2c2   : > { %v1725_v3 = vsel %vm1724_vm12, %v1720_v53, inf }
 0x2c3   : > { %1726 = vmin.xlane.f32.xlu0 %v1725_v3 }
 0x2c4   : > { %v4717_v22 = vpop.xlane.xlu1 %1767 }
 0x2c5   : > { %vm1769_vm13 = vcmp.eq.f32.partialorder %v4475_v46, %v4717_v22  ;;  %v1070_v46 = vshll.u32 %v1069_v44, 16 }
 0x2c6   : > { %v1770_v52 = vsel %vm1769_vm13, %v1765_v7, inf }
 0x2c7   : > { %1771 = vmin.xlane.f32.xlu1 %v1770_v52  ;;  %v1115_v52 = vshll.u32 %v1114_v30, 16 }
 0x2c8   : > { %v4721_v16 = vpop.xlane.xlu0 %1752 }
 0x2c9   : > { %vm1754_vm14 = vcmp.eq.f32.partialorder %v5344_v56, %v4721_v16  ;;  %v5345_v56 = vld [vmem:[#allocation8_spill] sm:$0xff] }
 0x2ca   : > { %v1755_v40 = vsel %vm1754_vm14, %v1750_v27, inf }
 0x2cb   : > { %1756 = vmin.xlane.f32.xlu0 %v1755_v40  ;;  %v1100_v40 = vshll.u32 %v1099_v33, 16 }
 0x2e8   : > { %v1082_v34 = vpop.xlane.xlu1 %1081 }
 0x2e9   : > { %v1083_v58 = vcvt.f32.s32 %v1082_v34  ;;  %v3525_v34 = vmov 0.0  }
 0x2eb   : > { %v1086_v48 = vadd.s32 %v1085_v23, %v1083_v58  ;;  %v1144_v23 = vcvt.f32.s32 %v4507_v5 }
 0x2ec   : > { %v1067_v0 = vpop.xlane.xlu0 %1066 }
 0x2ed   : > { %vm1779_vm15 = vcmp.lt.s32.totalorder %v1086_v48, 63  ;;  %v1068_v53 = vcvt.f32.s32 %v1067_v0  ;;  %v5346_v0 = vld [vmem:[#allocation9_spill] sm:$0xff] }
 0x2ee   : > { %v1780_v28 = vsel %vm1779_vm15, %v1086_v48, 63 }
 0x2ef   : > { %v1071_v3 = vadd.s32 %v1070_v46, %v1068_v53  ;;  %vm1874_vm3 = vcmp.eq.s32.totalorder %v1780_v28, %v5345_v56  ;;  %v1129_v46 = vcvt.f32.s32 %v5346_v0  ;;  %v1145_v53 = vshll.u32 %v1144_v23, 16 }
 0x2f0   : > { %v1112_v7 = vpop.xlane.xlu1 %1111  ;;  %v2895_v32 = vsel %vm1874_vm3, 1.0, %v3525_v34 }
 0x2f1   : > { %v1113_v27 = vcvt.f32.s32 %v1112_v7  ;;  %vm1777_vm1 = vcmp.lt.s32.totalorder %v1071_v3, 63  ;;  %v1130_v33 = vshll.u32 %v1129_v46, 16 }
 0x2f2   : > { %v1778_v51 = vsel %vm1777_vm1, %v1071_v3, 63 }
 0x2f3   : > { %v1116_v41 = vadd.s32 %v1115_v52, %v1113_v27  ;;  %vm1873_vm4 = vcmp.eq.s32.totalorder %v1778_v51, %v5345_v56  ;;  %v1174_v27 = vcvt.f32.s32 %v4520_v29 }
 0x2f4   : > { %v1097_v47 = vpop.xlane.xlu0 %1096  ;;  %v2894_v18 = vsel %vm1873_vm4, 1.0, %v3525_v34 }
 0x2f5   : > { %vm1783_vm5 = vcmp.lt.s32.totalorder %v1116_v41, 63  ;;  %v1098_v44 = vcvt.f32.s32 %v1097_v47  ;;  %3211 = vmatprep.mubr.msk.f32.mxu1 %vm814_vm2, %v2894_v18 }
 0x2f6   : > { %3212 = vmatmul.mubr.msk.f32.vlgmr.msra.gmra.mrb[0].mxu1 %vm814_vm2, %v2895_v32  ;;  %v1784_v58 = vsel %vm1783_vm5, %v1116_v41, 63 }
 0x2f7   : > { %v1101_v48 = vadd.s32 %v1100_v40, %v1098_v44  ;;  %vm1876_vm7 = vcmp.eq.s32.totalorder %v1784_v58, %v5345_v56  ;;  %v5347_v40 = vld [vmem:[#allocation10_spill] sm:$0xff]  ;;  %v1159_v44 = vcvt.f32.s32 %v4530_v57  ;;  %v1175_v58 = vshll.u32 %v1174_v27, 16 }
 0x2f8   : > { %v1142_v30 = vpop.xlane.xlu1 %1141  ;;  %v2897_v41 = vsel %vm1876_vm7, 1.0, %v3525_v34  ;;  %v1204_v47 = vcvt.f32.s32 %v5347_v40  ;;  %v1264_v27 = vcvt.f32.s32 %v4532_v42  ;;  %v1294_v42 = vcvt.f32.s32 %v4542_v50 }
 0x2f9   : > { %vm1781_vm6 = vcmp.lt.s32.totalorder %v1101_v48, 63  ;;  %v1143_v28 = vcvt.f32.s32 %v1142_v30  ;;  %v1234_v30 = vcvt.f32.s32 %v4522_v14 }
 0x2fa   : > { %v1782_v3 = vsel %vm1781_vm6, %v1101_v48, 63  ;;  %v1205_v29 = vshll.u32 %v1204_v47, 16  ;;  %v1219_v47 = vcvt.f32.s32 %v4550_v20 }
 0x2fb   : > { %v1146_v5 = vadd.s32 %v1145_v53, %v1143_v28  ;;  %vm1875_vm8 = vcmp.eq.s32.totalorder %v1782_v3, %v5345_v56  ;;  %v1160_v53 = vshll.u32 %v1159_v44, 16  ;;  %v1189_v28 = vcvt.f32.s32 %v4540_v10 }
 0x2fc   : > { %v1127_v7 = vpop.xlane.xlu0 %1126  ;;  %v2896_v52 = vsel %vm1875_vm8, 1.0, %v3525_v34  ;;  %v1235_v40 = vshll.u32 %v1234_v30, 16  ;;  %v1220_v20 = vshll.u32 %v1219_v47, 16 }
 0x2fd   : > { %vm1787_vm9 = vcmp.lt.s32.totalorder %v1146_v5, 63  ;;  %v1128_v51 = vcvt.f32.s32 %v1127_v7  ;;  %3214 = vmatprep.mubr.msk.f32.mxu1 %vm814_vm2, %v2896_v52  ;;  %v1190_v10 = vshll.u32 %v1189_v28, 16 }
 0x2fe   : > { %3215 = vmatmul.mubr.msk.f32.gmra.mrb[2].mxu1 %vm814_vm2, %v2897_v41  ;;  %v1788_v18 = vsel %vm1787_vm9, %v1146_v5, 63 }
 0x2ff   : > { %v1131_v23 = vadd.s32 %v1130_v33, %v1128_v51  ;;  %vm1878_vm11 = vcmp.eq.s32.totalorder %v1788_v18, %v5345_v56 }
 0x300   : > { %v1172_v32 = vpop.xlane.xlu1 %1171  ;;  %v2899_v52 = vsel %vm1878_vm11, 1.0, %v3525_v34 }
 0x301   : > { %vm1785_vm10 = vcmp.lt.s32.totalorder %v1131_v23, 63  ;;  %v1173_v48 = vcvt.f32.s32 %v1172_v32 }
 0x302   : > { %v1786_v0 = vsel %vm1785_vm10, %v1131_v23, 63 }
 0x303   : > { %v1176_v46 = vadd.s32 %v1175_v58, %v1173_v48  ;;  %vm1877_vm12 = vcmp.eq.s32.totalorder %v1786_v0, %v5345_v56  ;;  %v1265_v58 = vshll.u32 %v1264_v27, 16 }
 0x304   : > { %v1157_v3 = vpop.xlane.xlu0 %1156  ;;  %v1202_v5 = vpop.xlane.xlu1 %1201  ;;  %v2898_v57 = vsel %vm1877_vm12, 1.0, %v3525_v34 }
 0x305   : > { %vm1791_vm13 = vcmp.lt.s32.totalorder %v1176_v46, 63  ;;  %v1158_v33 = vcvt.f32.s32 %v1157_v3  ;;  %v1203_v7 = vcvt.f32.s32 %v1202_v5  ;;  %3217 = vmatprep.mubr.msk.f32.mxu1 %vm814_vm2, %v2898_v57 }
 0x306   : > { %v1792_v51 = vsel %vm1791_vm13, %v1176_v46, 63  ;;  %3218 = vmatmul.mubr.msk.f32.gmra.mrb[4].mxu1 %vm814_vm2, %v2899_v52  ;;  %v1249_v46 = vcvt.f32.s32 %v4560_v24  ;;  %v1295_v24 = vshll.u32 %v1294_v42, 16  ;;  %v1309_v42 = vcvt.f32.s32 %v4580_v54 }
 0x307   : > { %v1161_v14 = vadd.s32 %v1160_v53, %v1158_v33  ;;  %v1206_v41 = vadd.s32 %v1205_v29, %v1203_v7  ;;  %vm1880_vm14 = vcmp.eq.s32.totalorder %v1792_v51, %v5345_v56  ;;  %v1324_v33 = vcvt.f32.s32 %v4552_v59 }
 0x308   : > { %v1187_v18 = vpop.xlane.xlu0 %1186  ;;  %v1232_v23 = vpop.xlane.xlu1 %1231  ;;  %v2901_v5 = vsel %vm1880_vm14, 1.0, %v3525_v34  ;;  %v1250_v27 = vshll.u32 %v1249_v46, 16  ;;  %v1279_v51 = vcvt.f32.s32 %v4570_v9 }
 0x309   : > { %vm1789_vm15 = vcmp.lt.s32.totalorder %v1161_v14, 63  ;;  %vm1795_vm1 = vcmp.lt.s32.totalorder %v1206_v41, 63  ;;  %v1188_v44 = vcvt.f32.s32 %v1187_v18  ;;  %v1233_v32 = vcvt.f32.s32 %v1232_v23 }
 0x30a   : > { %v1790_v48 = vsel %vm1789_vm15, %v1161_v14, 63  ;;  %v1796_v0 = vsel %vm1795_vm1, %v1206_v41, 63  ;;  %v1280_v46 = vshll.u32 %v1279_v51, 16 }
 0x30b   : > { %v1191_v29 = vadd.s32 %v1190_v10, %v1188_v44  ;;  %v1236_v30 = vadd.s32 %v1235_v40, %v1233_v32  ;;  %vm1879_vm3 = vcmp.eq.s32.totalorder %v1790_v48, %v5345_v56  ;;  %vm1882_vm4 = vcmp.eq.s32.totalorder %v1796_v0, %v5345_v56 }
 0x30c   : > { %v1217_v53 = vpop.xlane.xlu0 %1216  ;;  %v1262_v28 = vpop.xlane.xlu1 %1261  ;;  %v2900_v3 = vsel %vm1879_vm3, 1.0, %v3525_v34  ;;  %v2903_v18 = vsel %vm1882_vm4, 1.0, %v3525_v34  ;;  %v1325_v44 = vshll.u32 %v1324_v33, 16  ;;  %v1354_v32 = vcvt.f32.s32 %v4562_v61 }
 0x30d   : > { %vm1793_vm5 = vcmp.lt.s32.totalorder %v1191_v29, 63  ;;  %vm1799_vm6 = vcmp.lt.s32.totalorder %v1236_v30, 63  ;;  %v1218_v50 = vcvt.f32.s32 %v1217_v53  ;;  %v1263_v57 = vcvt.f32.s32 %v1262_v28  ;;  %3220 = vmatprep.mubr.msk.f32.mxu1 %vm814_vm2, %v2900_v3 }
 0x30e   : > { %v1794_v7 = vsel %vm1793_vm5, %v1191_v29, 63  ;;  %v1800_v52 = vsel %vm1799_vm6, %v1236_v30, 63  ;;  %3221 = vmatmul.mubr.msk.f32.gmra.mrb[6].mxu1 %vm814_vm2, %v2901_v5  ;;  %v1355_v54 = vshll.u32 %v1354_v32, 16  ;;  %v1384_v3 = vcvt.f32.s32 %v4572_v25 }
 0x30f   : > { %v1221_v14 = vadd.s32 %v1220_v20, %v1218_v50  ;;  %v1266_v41 = vadd.s32 %v1265_v58, %v1263_v57  ;;  %vm1881_vm7 = vcmp.eq.s32.totalorder %v1794_v7, %v5345_v56  ;;  %vm1884_vm8 = vcmp.eq.s32.totalorder %v1800_v52, %v5345_v56 }
 0x310   : > { %v1247_v40 = vpop.xlane.xlu0 %1246  ;;  %v1292_v10 = vpop.xlane.xlu1 %1291  ;;  %v2902_v47 = vsel %vm1881_vm7, 1.0, %v3525_v34  ;;  %v2905_v53 = vsel %vm1884_vm8, 1.0, %v3525_v34  ;;  %v1310_v57 = vshll.u32 %v1309_v42, 16  ;;  %v1339_v7 = vcvt.f32.s32 %v4590_v38 }
 0x311   : > { %vm1797_vm9 = vcmp.lt.s32.totalorder %v1221_v14, 63  ;;  %vm1803_vm10 = vcmp.lt.s32.totalorder %v1266_v41, 63  ;;  %v1248_v59 = vcvt.f32.s32 %v1247_v40  ;;  %v1293_v23 = vcvt.f32.s32 %v1292_v10  ;;  %3223 = vmatprep.mubr.msk.f32.mxu1 %vm814_vm2, %v2902_v47 }
 0x312   : > { %v1798_v9 = vsel %vm1797_vm9, %v1221_v14, 63  ;;  %v1804_v58 = vsel %vm1803_vm10, %v1266_v41, 63  ;;  %3224 = vmatmul.mubr.msk.f32.gmra.mrb[8].mxu1 %vm814_vm2, %v2903_v18  ;;  %v1385_v40 = vshll.u32 %v1384_v3, 16  ;;  %v1414_v10 = vcvt.f32.s32 %v4582_v31 }
 0x313   : > { %v1251_v48 = vadd.s32 %v1250_v27, %v1248_v59  ;;  %v1296_v0 = vadd.s32 %v1295_v24, %v1293_v23  ;;  %vm1883_vm11 = vcmp.eq.s32.totalorder %v1798_v9, %v5345_v56  ;;  %vm1886_vm12 = vcmp.eq.s32.totalorder %v1804_v58, %v5345_v56 }
 0x314   : > { %v1277_v29 = vpop.xlane.xlu0 %1276  ;;  %v1322_v30 = vpop.xlane.xlu1 %1321  ;;  %v2904_v20 = vsel %vm1883_vm11, 1.0, %v3525_v34  ;;  %v2907_v41 = vsel %vm1886_vm12, 1.0, %v3525_v34  ;;  %v1369_v18 = vcvt.f32.s32 %v4600_v6  ;;  %v1415_v6 = vshll.u32 %v1414_v10, 16 }
 0x315   : > { %vm1801_vm13 = vcmp.lt.s32.totalorder %v1251_v48, 63  ;;  %vm1807_vm14 = vcmp.lt.s32.totalorder %v1296_v0, 63  ;;  %v1278_v61 = vcvt.f32.s32 %v1277_v29  ;;  %v1323_v28 = vcvt.f32.s32 %v1322_v30  ;;  %3226 = vmatprep.mubr.msk.f32.mxu1 %vm814_vm2, %v2904_v20 }
 0x316   : > { %v1802_v5 = vsel %vm1801_vm13, %v1251_v48, 63  ;;  %v1808_v50 = vsel %vm1807_vm14, %v1296_v0, 63  ;;  %3227 = vmatmul.mubr.msk.f32.gmra.mrb[10].mxu1 %vm814_vm2, %v2905_v53  ;;  %v1444_v0 = vcvt.f32.s32 %v4592_v37  ;;  %v1370_v30 = vshll.u32 %v1369_v18, 16 }
 0x317   : > { %v1281_v24 = vadd.s32 %v1280_v46, %v1278_v61  ;;  %v1326_v33 = vadd.s32 %v1325_v44, %v1323_v28  ;;  %vm1885_vm15 = vcmp.eq.s32.totalorder %v1802_v5, %v5345_v56  ;;  %vm1888_vm1 = vcmp.eq.s32.totalorder %v1808_v50, %v5345_v56 }
 0x318   : > { %v1307_v52 = vpop.xlane.xlu0 %1306  ;;  %v1352_v27 = vpop.xlane.xlu1 %1351  ;;  %v2906_v14 = vsel %vm1885_vm15, 1.0, %v3525_v34  ;;  %v1340_v44 = vshll.u32 %v1339_v7, 16  ;;  %v2909_v42 = vsel %vm1888_vm1, 1.0, %v3525_v34  ;;  %v1399_v61 = vcvt.f32.s32 %v4610_v63 }
 0x319   : > { %vm1805_vm3 = vcmp.lt.s32.totalorder %v1281_v24, 63  ;;  %vm1811_vm4 = vcmp.lt.s32.totalorder %v1326_v33, 63  ;;  %v1308_v25 = vcvt.f32.s32 %v1307_v52  ;;  %v1353_v51 = vcvt.f32.s32 %v1352_v27  ;;  %3229 = vmatprep.mubr.msk.f32.mxu1 %vm814_vm2, %v2906_v14 }
 0x31a   : > { %v1806_v38 = vsel %vm1805_vm3, %v1281_v24, 63  ;;  %v1812_v47 = vsel %vm1811_vm4, %v1326_v33, 63  ;;  %3230 = vmatmul.mubr.msk.f32.gmra.mrb[12].mxu1 %vm814_vm2, %v2907_v41  ;;  %v1474_v24 = vcvt.f32.s32 %v4602_v43  ;;  %v1429_v7 = vcvt.f32.s32 %v4620_v11 }
 0x31b   : > { %v1311_v59 = vadd.s32 %v1310_v57, %v1308_v25  ;;  %v1356_v23 = vadd.s32 %v1355_v54, %v1353_v51  ;;  %vm1887_vm5 = vcmp.eq.s32.totalorder %v1806_v38, %v5345_v56  ;;  %vm1890_vm6 = vcmp.eq.s32.totalorder %v1812_v47, %v5345_v56 }
 0x31c   : > { %v1337_v32 = vpop.xlane.xlu0 %1336  ;;  %v1382_v9 = vpop.xlane.xlu1 %1381  ;;  %v2908_v58 = vsel %vm1887_vm5, 1.0, %v3525_v34  ;;  %v2911_v5 = vsel %vm1890_vm6, 1.0, %v3525_v34  ;;  %v1445_v57 = vshll.u32 %v1444_v0, 16  ;;  %v1400_v14 = vshll.u32 %v1399_v61, 16 }
 0x31d   : > { %vm1809_vm7 = vcmp.lt.s32.totalorder %v1311_v59, 63  ;;  %vm1815_vm8 = vcmp.lt.s32.totalorder %v1356_v23, 63  ;;  %v1338_v31 = vcvt.f32.s32 %v1337_v32  ;;  %v1383_v48 = vcvt.f32.s32 %v1382_v9  ;;  %3232 = vmatprep.mubr.msk.f32.mxu1 %vm814_vm2, %v2908_v58 }
 0x31e   : > { %v1810_v46 = vsel %vm1809_vm7, %v1311_v59, 63  ;;  %v1816_v29 = vsel %vm1815_vm8, %v1356_v23, 63  ;;  %3233 = vmatmul.mubr.msk.f32.gmra.mrb[14].mxu1 %vm814_vm2, %v2909_v42  ;;  %v1475_v11 = vshll.u32 %v1474_v24, 16  ;;  %v1504_v38 = vcvt.f32.s32 %v4612_v49 }
 0x31f   : > { %v1341_v20 = vadd.s32 %v1340_v44, %v1338_v31  ;;  %v1386_v53 = vadd.s32 %v1385_v40, %v1383_v48  ;;  %vm1889_vm9 = vcmp.eq.s32.totalorder %v1810_v46, %v5345_v56  ;;  %vm1892_vm10 = vcmp.eq.s32.totalorder %v1816_v29, %v5345_v56 }
 0x320   : > { %v1367_v28 = vpop.xlane.xlu0 %1366  ;;  %v1412_v54 = vpop.xlane.xlu1 %1411  ;;  %v2910_v3 = vsel %vm1889_vm9, 1.0, %v3525_v34  ;;  %v2913_v40 = vsel %vm1892_vm10, 1.0, %v3525_v34  ;;  %v1430_v59 = vshll.u32 %v1429_v7, 16  ;;  %v1459_v32 = vcvt.f32.s32 %v4630_v2 }
 0x321   : > { %vm1813_vm11 = vcmp.lt.s32.totalorder %v1341_v20, 63  ;;  %vm1819_vm12 = vcmp.lt.s32.totalorder %v1386_v53, 63  ;;  %v1368_v37 = vcvt.f32.s32 %v1367_v28  ;;  %v1413_v50 = vcvt.f32.s32 %v1412_v54  ;;  %3235 = vmatprep.mubr.msk.f32.mxu1 %vm814_vm2, %v2910_v3 }
 0x322   : > { %v1814_v63 = vsel %vm1813_vm11, %v1341_v20, 63  ;;  %v1820_v33 = vsel %vm1819_vm12, %v1386_v53, 63  ;;  %3236 = vmatmul.mubr.msk.f32.gmra.mrb[16].mxu1 %vm814_vm2, %v2911_v5  ;;  %v1534_v0 = vcvt.f32.s32 %v4622_v55  ;;  %v1489_v29 = vcvt.f32.s32 %v4640_v4 }
 0x323   : > { %v1371_v52 = vadd.s32 %v1370_v30, %v1368_v37  ;;  %v1416_v27 = vadd.s32 %v1415_v6, %v1413_v50  ;;  %vm1891_vm13 = vcmp.eq.s32.totalorder %v1814_v63, %v5345_v56  ;;  %vm1894_vm14 = vcmp.eq.s32.totalorder %v1820_v33, %v5345_v56 }
 0x324   : > { %v1397_v41 = vpop.xlane.xlu0 %1396  ;;  %v1442_v25 = vpop.xlane.xlu1 %1441  ;;  %v2912_v51 = vsel %vm1891_vm13, 1.0, %v3525_v34  ;;  %v2915_v31 = vsel %vm1894_vm14, 1.0, %v3525_v34  ;;  %v1505_v6 = vshll.u32 %v1504_v38, 16  ;;  %v1460_v53 = vshll.u32 %v1459_v32, 16 }
 0x325   : > { %vm1817_vm15 = vcmp.lt.s32.totalorder %v1371_v52, 63  ;;  %vm1823_vm1 = vcmp.lt.s32.totalorder %v1416_v27, 63  ;;  %v1398_v43 = vcvt.f32.s32 %v1397_v41  ;;  %v1443_v10 = vcvt.f32.s32 %v1442_v25  ;;  %3238 = vmatprep.mubr.msk.f32.mxu1 %vm814_vm2, %v2912_v51 }
 0x326   : > { %v1818_v47 = vsel %vm1817_vm15, %v1371_v52, 63  ;;  %v1824_v18 = vsel %vm1823_vm1, %v1416_v27, 63  ;;  %3239 = vmatmul.mubr.msk.f32.gmra.mrb[18].mxu1 %vm814_vm2, %v2913_v40  ;;  %v1535_v4 = vshll.u32 %v1534_v0, 16  ;;  %v1564_v37 = vcvt.f32.s32 %v4632_v62 }
 0x327   : > { %v1401_v23 = vadd.s32 %v1400_v14, %v1398_v43  ;;  %v1446_v44 = vadd.s32 %v1445_v57, %v1443_v10  ;;  %vm1893_vm3 = vcmp.eq.s32.totalorder %v1818_v47, %v5345_v56  ;;  %vm1896_vm4 = vcmp.eq.s32.totalorder %v1824_v18, %v5345_v56 }
 0x328   : > { %v1427_v9 = vpop.xlane.xlu0 %1426  ;;  %v1472_v58 = vpop.xlane.xlu1 %1471  ;;  %v2914_v42 = vsel %vm1893_vm3, 1.0, %v3525_v34  ;;  %v2917_v3 = vsel %vm1896_vm4, 1.0, %v3525_v34  ;;  %v1490_v24 = vshll.u32 %v1489_v29, 16  ;;  %v1519_v7 = vcvt.f32.s32 %v4650_v60 }
 0x329   : > { %vm1821_vm5 = vcmp.lt.s32.totalorder %v1401_v23, 63  ;;  %vm1827_vm6 = vcmp.lt.s32.totalorder %v1446_v44, 63  ;;  %v1428_v49 = vcvt.f32.s32 %v1427_v9  ;;  %v1473_v48 = vcvt.f32.s32 %v1472_v58  ;;  %3241 = vmatprep.mubr.msk.f32.mxu1 %vm814_vm2, %v2914_v42 }
 0x32a   : > { %v1822_v2 = vsel %vm1821_vm5, %v1401_v23, 63  ;;  %v1828_v46 = vsel %vm1827_vm6, %v1446_v44, 63  ;;  %3242 = vmatmul.mubr.msk.f32.gmra.mrb[20].mxu1 %vm814_vm2, %v2915_v31  ;;  %v1565_v51 = vshll.u32 %v1564_v37, 16  ;;  %v1594_v40 = vcvt.f32.s32 %v4642_v8 }
 0x32b   : > { %v1431_v30 = vadd.s32 %v1430_v59, %v1428_v49  ;;  %v1476_v20 = vadd.s32 %v1475_v11, %v1473_v48  ;;  %vm1895_vm7 = vcmp.eq.s32.totalorder %v1822_v2, %v5345_v56  ;;  %vm1898_vm8 = vcmp.eq.s32.totalorder %v1828_v46, %v5345_v56 }
 0x32c   : > { %v1457_v61 = vpop.xlane.xlu0 %1456  ;;  %v1502_v28 = vpop.xlane.xlu1 %1501  ;;  %v2916_v54 = vsel %vm1895_vm7, 1.0, %v3525_v34  ;;  %v2919_v41 = vsel %vm1898_vm8, 1.0, %v3525_v34  ;;  %v1549_v10 = vcvt.f32.s32 %v4660_v19  ;;  %v1520_v47 = vshll.u32 %v1519_v7, 16 }
 0x32d   : > { %vm1825_vm9 = vcmp.lt.s32.totalorder %v1431_v30, 63  ;;  %vm1831_vm10 = vcmp.lt.s32.totalorder %v1476_v20, 63  ;;  %v1458_v55 = vcvt.f32.s32 %v1457_v61  ;;  %v1503_v5 = vcvt.f32.s32 %v1502_v28  ;;  %3244 = vmatprep.mubr.msk.f32.mxu1 %vm814_vm2, %v2916_v54 }
 0x32e   : > { %v1826_v50 = vsel %vm1825_vm9, %v1431_v30, 63  ;;  %v1832_v57 = vsel %vm1831_vm10, %v1476_v20, 63  ;;  %3245 = vmatmul.mubr.msk.f32.gmra.mrb[22].mxu1 %vm814_vm2, %v2917_v3  ;;  %v1595_v19 = vshll.u32 %v1594_v40, 16  ;;  %v1624_v9 = vcvt.f32.s32 %v4652_v17 }
 0x32f   : > { %v1461_v63 = vadd.s32 %v1460_v53, %v1458_v55  ;;  %v1506_v33 = vadd.s32 %v1505_v6, %v1503_v5  ;;  %vm1897_vm11 = vcmp.eq.s32.totalorder %v1826_v50, %v5345_v56  ;;  %vm1900_vm12 = vcmp.eq.s32.totalorder %v1832_v57, %v5345_v56 }
 0x330   : > { %v1487_v52 = vpop.xlane.xlu0 %1486  ;;  %v1532_v27 = vpop.xlane.xlu1 %1531  ;;  %v2918_v14 = vsel %vm1897_vm11, 1.0, %v3525_v34  ;;  %v2921_v44 = vsel %vm1900_vm12, 1.0, %v3525_v34  ;;  %v1550_v31 = vshll.u32 %v1549_v10, 16  ;;  %v1579_v6 = vcvt.f32.s32 %v4670_v45 }
 0x331   : > { %vm1829_vm13 = vcmp.lt.s32.totalorder %v1461_v63, 63  ;;  %vm1835_vm14 = vcmp.lt.s32.totalorder %v1506_v33, 63  ;;  %v1488_v62 = vcvt.f32.s32 %v1487_v52  ;;  %v1533_v25 = vcvt.f32.s32 %v1532_v27  ;;  %3247 = vmatprep.mubr.msk.f32.mxu1 %vm814_vm2, %v2918_v14 }
 0x332   : > { %v1830_v60 = vsel %vm1829_vm13, %v1461_v63, 63  ;;  %v1836_v43 = vsel %vm1835_vm14, %v1506_v33, 63  ;;  %3248 = vmatmul.mubr.msk.f32.gmra.mrb[24].mxu1 %vm814_vm2, %v2919_v41  ;;  %v1625_v20 = vshll.u32 %v1624_v9, 16  ;;  %v1654_v53 = vcvt.f32.s32 %v4664_v15 }
 0x333   : > { %v1491_v11 = vadd.s32 %v1490_v24, %v1488_v62  ;;  %v1536_v38 = vadd.s32 %v1535_v4, %v1533_v25  ;;  %vm1899_vm15 = vcmp.eq.s32.totalorder %v1830_v60, %v5345_v56  ;;  %vm1902_vm1 = vcmp.eq.s32.totalorder %v1836_v43, %v5345_v56 }
 0x334   : > { %v1517_v18 = vpop.xlane.xlu0 %1516  ;;  %v1562_v59 = vpop.xlane.xlu1 %1561  ;;  %v2920_v23 = vsel %vm1899_vm15, 1.0, %v3525_v34  ;;  %v2923_v29 = vsel %vm1902_vm1, 1.0, %v3525_v34  ;;  %v1609_v28 = vcvt.f32.s32 %v4680_v13  ;;  %v1580_v55 = vshll.u32 %v1579_v6, 16 }
 0x335   : > { %vm1833_vm3 = vcmp.lt.s32.totalorder %v1491_v11, 63  ;;  %vm1839_vm4 = vcmp.lt.s32.totalorder %v1536_v38, 63  ;;  %v1518_v8 = vcvt.f32.s32 %v1517_v18  ;;  %v1563_v32 = vcvt.f32.s32 %v1562_v59  ;;  %3250 = vmatprep.mubr.msk.f32.mxu1 %vm814_vm2, %v2920_v23 }
 0x336   : > { %v1834_v58 = vsel %vm1833_vm3, %v1491_v11, 63  ;;  %v1840_v42 = vsel %vm1839_vm4, %v1536_v38, 63  ;;  %3251 = vmatmul.mubr.msk.f32.gmra.mrb[26].mxu1 %vm814_vm2, %v2921_v44  ;;  %v1655_v13 = vshll.u32 %v1654_v53, 16  ;;  %v1684_v24 = vcvt.f32.s32 %v4678_v26 }
 0x337   : > { %v1521_v49 = vadd.s32 %v1520_v47, %v1518_v8  ;;  %v1566_v48 = vadd.s32 %v1565_v51, %v1563_v32  ;;  %vm1901_vm5 = vcmp.eq.s32.totalorder %v1834_v58, %v5345_v56  ;;  %vm1904_vm6 = vcmp.eq.s32.totalorder %v1840_v42, %v5345_v56 }
 0x338   : > { %v1547_v0 = vpop.xlane.xlu0 %1546  ;;  %v1592_v2 = vpop.xlane.xlu1 %1591  ;;  %v2922_v46 = vsel %vm1901_vm5, 1.0, %v3525_v34  ;;  %v2925_v50 = vsel %vm1904_vm6, 1.0, %v3525_v34  ;;  %v1610_v7 = vshll.u32 %v1609_v28, 16  ;;  %v1639_v14 = vcvt.f32.s32 %v4688_v1 }
 0x339   : > { %vm1837_vm7 = vcmp.lt.s32.totalorder %v1521_v49, 63  ;;  %vm1843_vm8 = vcmp.lt.s32.totalorder %v1566_v48, 63  ;;  %v1548_v17 = vcvt.f32.s32 %v1547_v0  ;;  %v1593_v30 = vcvt.f32.s32 %v1592_v2  ;;  %3253 = vmatprep.mubr.msk.f32.mxu1 %vm814_vm2, %v2922_v46 }
 0x33a   : > { %v1838_v45 = vsel %vm1837_vm7, %v1521_v49, 63  ;;  %v1844_v61 = vsel %vm1843_vm8, %v1566_v48, 63  ;;  %3254 = vmatmul.mubr.msk.f32.gmra.mrb[28].mxu1 %vm814_vm2, %v2923_v29  ;;  %v1685_v60 = vshll.u32 %v1684_v24, 16  ;;  %v1714_v43 = vcvt.f32.s32 %v4690_v35 }
 0x33b   : > { %v1551_v54 = vadd.s32 %v1550_v31, %v1548_v17  ;;  %v1596_v3 = vadd.s32 %v1595_v19, %v1593_v30  ;;  %vm1903_vm9 = vcmp.eq.s32.totalorder %v1838_v45, %v5345_v56  ;;  %vm1906_vm10 = vcmp.eq.s32.totalorder %v1844_v61, %v5345_v56 }
 0x33c   : > { %v1577_v5 = vpop.xlane.xlu0 %1576  ;;  %v1622_v4 = vpop.xlane.xlu1 %1621  ;;  %v2924_v37 = vsel %vm1903_vm9, 1.0, %v3525_v34  ;;  %v2927_v51 = vsel %vm1906_vm10, 1.0, %v3525_v34  ;;  %v1669_v11 = vcvt.f32.s32 %v4698_v21  ;;  %v1640_v18 = vshll.u32 %v1639_v14, 16 }
 0x33d   : > { %vm1841_vm11 = vcmp.lt.s32.totalorder %v1551_v54, 63  ;;  %vm1847_vm12 = vcmp.lt.s32.totalorder %v1596_v3, 63  ;;  %v1578_v15 = vcvt.f32.s32 %v1577_v5  ;;  %v1623_v57 = vcvt.f32.s32 %v1622_v4  ;;  %3256 = vmatprep.mubr.msk.f32.mxu1 %vm814_vm2, %v2924_v37 }
 0x33e   : > { %v1842_v63 = vsel %vm1841_vm11, %v1551_v54, 63  ;;  %v1848_v33 = vsel %vm1847_vm12, %v1596_v3, 63  ;;  %3257 = vmatmul.mubr.msk.f32.gmra.mrb[30].mxu1 %vm814_vm2, %v2925_v50  ;;  %v1715_v21 = vshll.u32 %v1714_v43, 16  ;;  %v1699_v19 = vcvt.f32.s32 %v4703_v36 }
 0x33f   : > { %v1581_v52 = vadd.s32 %v1580_v55, %v1578_v15  ;;  %v1626_v27 = vadd.s32 %v1625_v20, %v1623_v57  ;;  %vm1905_vm13 = vcmp.eq.s32.totalorder %v1842_v63, %v5345_v56  ;;  %vm1908_vm14 = vcmp.eq.s32.totalorder %v1848_v33, %v5345_v56 }
 0x340   : > { %v1607_v41 = vpop.xlane.xlu0 %1606  ;;  %v1652_v62 = vpop.xlane.xlu1 %1651  ;;  %v2926_v25 = vsel %vm1905_vm13, 1.0, %v3525_v34  ;;  %v2929_v8 = vsel %vm1908_vm14, 1.0, %v3525_v34  ;;  %v1670_v42 = vshll.u32 %v1669_v11, 16  ;;  %v1744_v48 = vcvt.f32.s32 %v4705_v12 }
 0x341   : > { %vm1845_vm15 = vcmp.lt.s32.totalorder %v1581_v52, 63  ;;  %vm1851_vm1 = vcmp.lt.s32.totalorder %v1626_v27, 63  ;;  %v1608_v26 = vcvt.f32.s32 %v1607_v41  ;;  %v1653_v40 = vcvt.f32.s32 %v1652_v62  ;;  %3259 = vmatprep.mubr.msk.f32.mxu1 %vm814_vm2, %v2926_v25 }
 0x342   : > { %v1846_v1 = vsel %vm1845_vm15, %v1581_v52, 63  ;;  %v1852_v10 = vsel %vm1851_vm1, %v1626_v27, 63  ;;  %3260 = vmatmul.mubr.msk.f32.gmra.mrb[32].mxu1 %vm814_vm2, %v2927_v51  ;;  %v1700_v17 = vshll.u32 %v1699_v19, 16  ;;  %v1745_v45 = vshll.u32 %v1744_v48, 16 }
 0x343   : > { %v1611_v38 = vadd.s32 %v1610_v7, %v1608_v26  ;;  %v1656_v47 = vadd.s32 %v1655_v13, %v1653_v40  ;;  %vm1907_vm3 = vcmp.eq.s32.totalorder %v1846_v1, %v5345_v56  ;;  %vm1910_vm4 = vcmp.eq.s32.totalorder %v1852_v10, %v5345_v56 }
 0x344   : > { %v1637_v59 = vpop.xlane.xlu0 %1636  ;;  %v1682_v23 = vpop.xlane.xlu1 %1681  ;;  %v2928_v44 = vsel %vm1907_vm3, 1.0, %v3525_v34  ;;  %v2931_v46 = vsel %vm1910_vm4, 1.0, %v3525_v34  ;;  %v1729_v61 = vcvt.f32.s32 %v4712_v39  ;;  %v1774_v13 = vcvt.f32.s32 %v4717_v22 }
 0x345   : > { %vm1849_vm5 = vcmp.lt.s32.totalorder %v1611_v38, 63  ;;  %vm1855_vm6 = vcmp.lt.s32.totalorder %v1656_v47, 63  ;;  %v1638_v35 = vcvt.f32.s32 %v1637_v59  ;;  %v1683_v32 = vcvt.f32.s32 %v1682_v23  ;;  %3262 = vmatprep.mubr.msk.f32.mxu1 %vm814_vm2, %v2928_v44 }
 0x346   : > { %v1850_v9 = vsel %vm1849_vm5, %v1611_v38, 63  ;;  %v1856_v58 = vsel %vm1855_vm6, %v1656_v47, 63  ;;  %3263 = vmatmul.mubr.msk.f32.gmra.mrb[34].mxu1 %vm814_vm2, %v2929_v8  ;;  %v1730_v57 = vshll.u32 %v1729_v61, 16  ;;  %v1775_v22 = vshll.u32 %v1774_v13, 16  ;;  %v3376_v8 = vld [vmem:[%s3658_s20 + $0x8] sm:$0xff] }
 0x347   : > { %v1641_v31 = vadd.s32 %v1640_v18, %v1638_v35  ;;  %v1686_v49 = vadd.s32 %v1685_v60, %v1683_v32  ;;  %vm1909_vm7 = vcmp.eq.s32.totalorder %v1850_v9, %v5345_v56  ;;  %vm1912_vm8 = vcmp.eq.s32.totalorder %v1856_v58, %v5345_v56 }
 0x348   : > { %v1667_v6 = vpop.xlane.xlu0 %1666  ;;  %v1712_v0 = vpop.xlane.xlu1 %1711  ;;  %v2930_v2 = vsel %vm1909_vm7, 1.0, %v3525_v34  ;;  %v2933_v55 = vsel %vm1912_vm8, 1.0, %v3525_v34  ;;  %v1759_v25 = vcvt.f32.s32 %v4721_v16 }
 0x349   : > { %vm1853_vm9 = vcmp.lt.s32.totalorder %v1641_v31, 63  ;;  %vm1859_vm10 = vcmp.lt.s32.totalorder %v1686_v49, 63  ;;  %v1668_v36 = vcvt.f32.s32 %v1667_v6  ;;  %v1713_v29 = vcvt.f32.s32 %v1712_v0  ;;  %3265 = vmatprep.mubr.msk.f32.mxu1 %vm814_vm2, %v2930_v2  ;;  %v3379_v0 = vld [vmem:[%s3658_s20 + $0x10] sm:$0xff] }
 0x34a   : > { %v1854_v30 = vsel %vm1853_vm9, %v1641_v31, 63  ;;  %3266 = vmatmul.mubr.msk.f32.gmra.mrb[36].mxu1 %vm814_vm2, %v2931_v46  ;;  %v1860_v12 = vsel %vm1859_vm10, %v1686_v49, 63  ;;  %v1760_v10 = vshll.u32 %v1759_v25, 16  ;;  %v3378_v49 = vld [vmem:[%s3658_s20 + $0x18] sm:$0xff] }
 0x34b   : > { %v1671_v20 = vadd.s32 %v1670_v42, %v1668_v36  ;;  %v1716_v53 = vadd.s32 %v1715_v21, %v1713_v29  ;;  %vm1911_vm11 = vcmp.eq.s32.totalorder %v1854_v30, %v5345_v56  ;;  %vm1914_vm14 = vcmp.eq.s32.totalorder %v1860_v12, %v5345_v56 }
 0x34c   : > { %v1697_v28 = vpop.xlane.xlu0 %1696  ;;  %v1742_v54 = vpop.xlane.xlu1 %1741  ;;  %v2932_v3 = vsel %vm1911_vm11, 1.0, %v3525_v34  ;;  %v2935_v7 = vsel %vm1914_vm14, 1.0, %v3525_v34 }
 0x34d   : > { %vm1857_vm12 = vcmp.lt.s32.totalorder %v1671_v20, 63  ;;  %vm1863_vm13 = vcmp.lt.s32.totalorder %v1716_v53, 63  ;;  %v1698_v5 = vcvt.f32.s32 %v1697_v28  ;;  %v1743_v4 = vcvt.f32.s32 %v1742_v54  ;;  %3268 = vmatprep.mubr.msk.f32.mxu1 %vm814_vm2, %v2932_v3  ;;  %v3381_v28 = vld [vmem:[%s3658_s20 + $0x20] sm:$0xff] }
 0x34e   : > { %v1858_v37 = vsel %vm1857_vm12, %v1671_v20, 63  ;;  %3269 = vmatmul.mubr.msk.f32.gmra.mrb[38].mxu1 %vm814_vm2, %v2933_v55  ;;  %v1864_v39 = vsel %vm1863_vm13, %v1716_v53, 63  ;;  %v3380_v20 = vld [vmem:[%s3658_s20 + $0x28] sm:$0xff] }
 0x34f   : > { %v1701_v50 = vadd.s32 %v1700_v17, %v1698_v5  ;;  %v1746_v15 = vadd.s32 %v1745_v45, %v1743_v4  ;;  %vm1913_vm15 = vcmp.eq.s32.totalorder %v1858_v37, %v5345_v56  ;;  %vm1916_vm4 = vcmp.eq.s32.totalorder %v1864_v39, %v5345_v56 }
 0x350   : > { %v1727_v24 = vpop.xlane.xlu0 %1726  ;;  %v2934_v63 = vsel %vm1913_vm15, 1.0, %v3525_v34  ;;  %v2937_v26 = vsel %vm1916_vm4, 1.0, %v3525_v34 }
 0x351   : > { %vm1861_vm1 = vcmp.lt.s32.totalorder %v1701_v50, 63  ;;  %vm1867_vm3 = vcmp.lt.s32.totalorder %v1746_v15, 63  ;;  %v1728_v33 = vcvt.f32.s32 %v1727_v24  ;;  %3271 = vmatprep.mubr.msk.f32.mxu1 %vm814_vm2, %v2934_v63  ;;  %v3383_v24 = vld [vmem:[%s3658_s20 + $0x30] sm:$0xff] }
 0x352   : > { %v1862_v52 = vsel %vm1861_vm1, %v1701_v50, 63  ;;  %3272 = vmatmul.mubr.msk.f32.gmra.mrb[40].mxu1 %vm814_vm2, %v2935_v7  ;;  %v1868_v27 = vsel %vm1867_vm3, %v1746_v15, 63  ;;  %v3382_v50 = vld [vmem:[%s3658_s20 + $0x38] sm:$0xff] }
 0x353   : > { %v1731_v14 = vadd.s32 %v1730_v57, %v1728_v33  ;;  %vm1915_vm5 = vcmp.eq.s32.totalorder %v1862_v52, %v5345_v56  ;;  %vm1918_vm7 = vcmp.eq.s32.totalorder %v1868_v27, %v5345_v56  ;;  %v3384_v27 = vld [vmem:[%s3658_s20 + $0x48] sm:$0xff] }
 0x354   : > { %v1772_v41 = vpop.xlane.xlu1 %1771  ;;  %v2936_v62 = vsel %vm1915_vm5, 1.0, %v3525_v34  ;;  %v2939_v11 = vsel %vm1918_vm7, 1.0, %v3525_v34 }
 0x355   : > { %vm1865_vm6 = vcmp.lt.s32.totalorder %v1731_v14, 63  ;;  %v1773_v51 = vcvt.f32.s32 %v1772_v41  ;;  %3274 = vmatprep.mubr.msk.f32.mxu1 %vm814_vm2, %v2936_v62  ;;  %v3385_v62 = vld [vmem:[%s3658_s20 + $0x40] sm:$0xff] }
 0x356   : > { %v1866_v40 = vsel %vm1865_vm6, %v1731_v14, 63  ;;  %3275 = vmatmul.mubr.msk.f32.gmra.mrb[42].mxu1 %vm814_vm2, %v2937_v26 }
 0x357   : > { %v1776_v60 = vadd.s32 %v1775_v22, %v1773_v51  ;;  %vm1917_vm8 = vcmp.eq.s32.totalorder %v1866_v40, %v5345_v56 }
 0x358   : > { %v1757_v43 = vpop.xlane.xlu0 %1756  ;;  %v2938_v1 = vsel %vm1917_vm8, 1.0, %v3525_v34 }
 0x359   : > { %vm1871_vm9 = vcmp.lt.s32.totalorder %v1776_v60, 63  ;;  %v1758_v16 = vcvt.f32.s32 %v1757_v43  ;;  %3277 = vmatprep.mubr.msk.f32.mxu1 %vm814_vm2, %v2938_v1 }
 0x35a   : > { %3278 = vmatmul.mubr.msk.f32.gmra.mrb[44].mxu1 %vm814_vm2, %v2939_v11  ;;  %v1872_v38 = vsel %vm1871_vm9, %v1776_v60, 63 }
 0x35b   : > { %v1761_v47 = vadd.s32 %v1760_v10, %v1758_v16  ;;  %vm1920_vm11 = vcmp.eq.s32.totalorder %v1872_v38, %v5345_v56  ;;  %v3386_v10 = vld [vmem:[%s3658_s20 + $0x58] sm:$0xff] }
 0x35c   : > { %v2941_v23 = vsel %vm1920_vm11, 1.0, %v3525_v34 }
 0x35d   : > { %vm1869_vm10 = vcmp.lt.s32.totalorder %v1761_v47, 63 }
 0x35e   : > { %v1870_v18 = vsel %vm1869_vm10, %v1761_v47, 63  ;;  %v3387_v47 = vld [vmem:[%s3658_s20 + $0x50] sm:$0xff] }
 0x35f   : > { %vm1919_vm12 = vcmp.eq.s32.totalorder %v1870_v18, %v5345_v56 }
 0x360   : > { %v2940_v59 = vsel %vm1919_vm12, 1.0, %v3525_v34  ;;  %v3377_v34 = vld [vmem:[%s3658_s20] sm:$0xff] }
 0x361   : > { %3280 = vmatprep.mubr.msk.f32.mxu1 %vm814_vm2, %v2940_v59 }
 0x362   : > { %3281 = vmatmul.mubr.msk.f32.gmra.mrb[46].mxu1 %vm814_vm2, %v2941_v23 }
 0x3c9   : > { %v3213_v44 = vpop.f32.mrb[0].mxu1 }
 0x3ca   : > { %2467 = vst.msk [vmem:[%s4953_s22 + $0x8] sm:$0xff] %vm286_vm0, %v3213_v44  ;;  %v2515_v56 = vsub.f32 %v3213_v44, %v3376_v8  ;;  %v2227_v35 = vpop.f32.mrb[1].mxu1 }
 0x3cb   : > { %2466 = vst.msk [vmem:[%s4953_s22] sm:$0xff] %vm286_vm0, %v2227_v35  ;;  %v2514_v32 = vsub.f32 %v2227_v35, %v3377_v34  ;;  %v3388_v34 = vld [vmem:[%s3658_s20 + $0x68] sm:$0xff] }
 0x3cc   : > { %v2563_v21 = vmul.f32 %v2515_v56, %v2515_v56 }
 0x3cd   : > { %v2562_v19 = vmul.f32 %v2514_v32, %v2514_v32 }
 0x3ce   : > { %v2611_v9 = vsel %vm286_vm0, %v2563_v21, 0.0 }
 0x3cf   : > { %v2610_v58 = vsel %vm286_vm0, %v2562_v19, 0.0 }
 0x3d0   : > { %v2612_v42 = vadd.f32 %v2611_v9, %v2610_v58  ;;  %v3389_v9 = vld [vmem:[%s3658_s20 + $0x60] sm:$0xff] }
 0x3d1   : > { %v3216_v31 = vpop.f32.mrb[2].mxu1 }
 0x3d2   : > { %2469 = vst.msk [vmem:[%s4953_s22 + $0x18] sm:$0xff] %vm286_vm0, %v3216_v31  ;;  %v2517_v48 = vsub.f32 %v3216_v31, %v3378_v49  ;;  %v2237_v6 = vpop.f32.mrb[3].mxu1 }
 0x3d3   : > { %2468 = vst.msk [vmem:[%s4953_s22 + $0x10] sm:$0xff] %vm286_vm0, %v2237_v6  ;;  %v2516_v2 = vsub.f32 %v2237_v6, %v3379_v0 }
 0x3d4   : > { %v2565_v46 = vmul.f32 %v2517_v48, %v2517_v48 }
 0x3d5   : > { %v2564_v36 = vmul.f32 %v2516_v2, %v2516_v2  ;;  %v3390_v2 = vld [vmem:[%s3658_s20 + $0x78] sm:$0xff] }
 0x3d6   : > { %v2615_v30 = vsel %vm286_vm0, %v2565_v46, 0.0 }
 0x3d7   : > { %v2613_v29 = vsel %vm286_vm0, %v2564_v36, 0.0 }
 0x3d8   : > { %v2614_v17 = vadd.f32 %v2613_v29, %v2612_v42 }
 0x3d9   : > { %v3219_v12 = vpop.f32.mrb[4].mxu1 }
 0x3da   : > { %2471 = vst.msk [vmem:[%s4953_s22 + $0x28] sm:$0xff] %vm286_vm0, %v3219_v12  ;;  %v2519_v53 = vsub.f32 %v3219_v12, %v3380_v20  ;;  %v2247_v45 = vpop.f32.mrb[5].mxu1  ;;  %v2616_v61 = vadd.f32 %v2615_v30, %v2614_v17  ;;  %v3391_v17 = vld [vmem:[%s3658_s20 + $0x70] sm:$0xff] }
 0x3db   : > { %2470 = vst.msk [vmem:[%s4953_s22 + $0x20] sm:$0xff] %vm286_vm0, %v2247_v45  ;;  %v2518_v54 = vsub.f32 %v2247_v45, %v3381_v28 }
 0x3dc   : > { %v2567_v3 = vmul.f32 %v2519_v53, %v2519_v53 }
 0x3dd   : > { %v2566_v55 = vmul.f32 %v2518_v54, %v2518_v54  ;;  %v3392_v54 = vld [vmem:[%s3658_s20 + $0x88] sm:$0xff] }
 0x3de   : > { %v2619_v37 = vsel %vm286_vm0, %v2567_v3, 0.0 }
 0x3df   : > { %v2617_v5 = vsel %vm286_vm0, %v2566_v55, 0.0 }
 0x3e0   : > { %v2618_v4 = vadd.f32 %v2617_v5, %v2616_v61 }
 0x3e1   : > { %v3222_v39 = vpop.f32.mrb[6].mxu1 }
 0x3e2   : > { %2473 = vst.msk [vmem:[%s4953_s22 + $0x38] sm:$0xff] %vm286_vm0, %v3222_v39  ;;  %v2521_v15 = vsub.f32 %v3222_v39, %v3382_v50  ;;  %v2257_v57 = vpop.f32.mrb[7].mxu1  ;;  %v2620_v13 = vadd.f32 %v2619_v37, %v2618_v4  ;;  %v3393_v4 = vld [vmem:[%s3658_s20 + $0x80] sm:$0xff] }
 0x3e3   : > { %2472 = vst.msk [vmem:[%s4953_s22 + $0x30] sm:$0xff] %vm286_vm0, %v2257_v57  ;;  %v2520_v63 = vsub.f32 %v2257_v57, %v3383_v24 }
 0x3e4   : > { %v2569_v33 = vmul.f32 %v2521_v15, %v2521_v15 }
 0x3e5   : > { %v2568_v7 = vmul.f32 %v2520_v63, %v2520_v63  ;;  %v3225_v52 = vpop.f32.mrb[8].mxu1  ;;  %v3394_v63 = vld [vmem:[%s3658_s20 + $0x98] sm:$0xff] }
 0x3e6   : > { %2475 = vst.msk [vmem:[%s4953_s22 + $0x48] sm:$0xff] %vm286_vm0, %v3225_v52  ;;  %v2523_v14 = vsub.f32 %v3225_v52, %v3384_v27  ;;  %v2267_v22 = vpop.f32.mrb[9].mxu1  ;;  %v2623_v26 = vsel %vm286_vm0, %v2569_v33, 0.0  ;;  %v3395_v27 = vld [vmem:[%s3658_s20 + $0x90] sm:$0xff] }
 0x3e7   : > { %v2621_v41 = vsel %vm286_vm0, %v2568_v7, 0.0  ;;  %2474 = vst.msk [vmem:[%s4953_s22 + $0x40] sm:$0xff] %vm286_vm0, %v2267_v22  ;;  %v2522_v25 = vsub.f32 %v2267_v22, %v3385_v62 }
 0x3e8   : > { %v2622_v51 = vadd.f32 %v2621_v41, %v2620_v13  ;;  %v2571_v40 = vmul.f32 %v2523_v14, %v2523_v14 }
 0x3e9   : > { %v2570_v60 = vmul.f32 %v2522_v25, %v2522_v25  ;;  %v3228_v43 = vpop.f32.mrb[10].mxu1 }
 0x3ea   : > { %v2624_v1 = vadd.f32 %v2623_v26, %v2622_v51  ;;  %2477 = vst.msk [vmem:[%s4953_s22 + $0x58] sm:$0xff] %vm286_vm0, %v3228_v43  ;;  %v2525_v16 = vsub.f32 %v3228_v43, %v3386_v10  ;;  %v2277_v11 = vpop.f32.mrb[11].mxu1  ;;  %v2627_v23 = vsel %vm286_vm0, %v2571_v40, 0.0  ;;  %v3396_v40 = vld [vmem:[%s3658_s20 + $0xa8] sm:$0xff]  ;;  %v3397_v10 = vld [vmem:[%s3658_s20 + $0xa0] sm:$0xff] }
 0x3eb   : > { %v2625_v38 = vsel %vm286_vm0, %v2570_v60, 0.0  ;;  %2476 = vst.msk [vmem:[%s4953_s22 + $0x50] sm:$0xff] %vm286_vm0, %v2277_v11  ;;  %v2524_v18 = vsub.f32 %v2277_v11, %v3387_v47 }
 0x3ec   : > { %v2626_v59 = vadd.f32 %v2625_v38, %v2624_v1  ;;  %v2573_v44 = vmul.f32 %v2525_v16, %v2525_v16 }
 0x3ed   : > { %v2572_v8 = vmul.f32 %v2524_v18, %v2524_v18  ;;  %v3231_v56 = vpop.f32.mrb[12].mxu1 }
 0x3ee   : > { %v2628_v35 = vadd.f32 %v2627_v23, %v2626_v59  ;;  %2479 = vst.msk [vmem:[%s4953_s22 + $0x68] sm:$0xff] %vm286_vm0, %v3231_v56  ;;  %v2527_v32 = vsub.f32 %v3231_v56, %v3388_v34  ;;  %v2287_v21 = vpop.f32.mrb[13].mxu1  ;;  %v2631_v31 = vsel %vm286_vm0, %v2573_v44, 0.0  ;;  %v3398_v44 = vld [vmem:[%s3658_s20 + $0xb8] sm:$0xff]  ;;  %v3399_v34 = vld [vmem:[%s3658_s20 + $0xb0] sm:$0xff] }
 0x3ef   : > { %v2629_v19 = vsel %vm286_vm0, %v2572_v8, 0.0  ;;  %2478 = vst.msk [vmem:[%s4953_s22 + $0x60] sm:$0xff] %vm286_vm0, %v2287_v21  ;;  %v2526_v58 = vsub.f32 %v2287_v21, %v3389_v9 }
 0x3f0   : > { %v2630_v42 = vadd.f32 %v2629_v19, %v2628_v35  ;;  %v2575_v49 = vmul.f32 %v2527_v32, %v2527_v32 }
 0x3f1   : > { %v2574_v48 = vmul.f32 %v2526_v58, %v2526_v58  ;;  %v3234_v6 = vpop.f32.mrb[14].mxu1 }
 0x3f2   : > { %v2632_v0 = vadd.f32 %v2631_v31, %v2630_v42  ;;  %2481 = vst.msk [vmem:[%s4953_s22 + $0x78] sm:$0xff] %vm286_vm0, %v3234_v6  ;;  %v2529_v46 = vsub.f32 %v3234_v6, %v3390_v2  ;;  %v2297_v36 = vpop.f32.mrb[15].mxu1  ;;  %v2635_v20 = vsel %vm286_vm0, %v2575_v49, 0.0  ;;  %v3400_v49 = vld [vmem:[%s3658_s20 + $0xc8] sm:$0xff]  ;;  %v3401_v2 = vld [vmem:[%s3658_s20 + $0xc0] sm:$0xff] }
 0x3f3   : > { %v2633_v29 = vsel %vm286_vm0, %v2574_v48, 0.0  ;;  %2480 = vst.msk [vmem:[%s4953_s22 + $0x70] sm:$0xff] %vm286_vm0, %v2297_v36  ;;  %v2528_v30 = vsub.f32 %v2297_v36, %v3391_v17 }
 0x3f4   : > { %v2634_v12 = vadd.f32 %v2633_v29, %v2632_v0  ;;  %v2577_v53 = vmul.f32 %v2529_v46, %v2529_v46 }
 0x3f5   : > { %v2576_v45 = vmul.f32 %v2528_v30, %v2528_v30  ;;  %v3237_v61 = vpop.f32.mrb[16].mxu1 }
 0x3f6   : > { %v2636_v28 = vadd.f32 %v2635_v20, %v2634_v12  ;;  %2483 = vst.msk [vmem:[%s4953_s22 + $0x88] sm:$0xff] %vm286_vm0, %v3237_v61  ;;  %v2531_v3 = vsub.f32 %v3237_v61, %v3392_v54  ;;  %v2307_v55 = vpop.f32.mrb[17].mxu1  ;;  %v2639_v50 = vsel %vm286_vm0, %v2577_v53, 0.0  ;;  %v3402_v53 = vld [vmem:[%s3658_s20 + $0xd8] sm:$0xff]  ;;  %v3403_v54 = vld [vmem:[%s3658_s20 + $0xd0] sm:$0xff] }
 0x3f7   : > { %v2637_v5 = vsel %vm286_vm0, %v2576_v45, 0.0  ;;  %2482 = vst.msk [vmem:[%s4953_s22 + $0x80] sm:$0xff] %vm286_vm0, %v2307_v55  ;;  %v2530_v37 = vsub.f32 %v2307_v55, %v3393_v4 }
 0x3f8   : > { %v2638_v39 = vadd.f32 %v2637_v5, %v2636_v28  ;;  %v2579_v15 = vmul.f32 %v2531_v3, %v2531_v3 }
 0x3f9   : > { %v2578_v57 = vmul.f32 %v2530_v37, %v2530_v37  ;;  %v3240_v13 = vpop.f32.mrb[18].mxu1 }
 0x3fa   : > { %v2640_v24 = vadd.f32 %v2639_v50, %v2638_v39  ;;  %2485 = vst.msk [vmem:[%s4953_s22 + $0x98] sm:$0xff] %vm286_vm0, %v3240_v13  ;;  %v2533_v33 = vsub.f32 %v3240_v13, %v3394_v63  ;;  %v2317_v7 = vpop.f32.mrb[19].mxu1  ;;  %v2643_v41 = vsel %vm286_vm0, %v2579_v15, 0.0  ;;  %v3404_v15 = vld [vmem:[%s3658_s20 + $0xe8] sm:$0xff]  ;;  %v3405_v63 = vld [vmem:[%s3658_s20 + $0xe0] sm:$0xff] }
 0x3fb   : > { %v2641_v52 = vsel %vm286_vm0, %v2578_v57, 0.0  ;;  %2484 = vst.msk [vmem:[%s4953_s22 + $0x90] sm:$0xff] %vm286_vm0, %v2317_v7  ;;  %v2532_v14 = vsub.f32 %v2317_v7, %v3395_v27 }
 0x3fc   : > { %v2642_v22 = vadd.f32 %v2641_v52, %v2640_v24  ;;  %v2581_v62 = vmul.f32 %v2533_v33, %v2533_v33 }
 0x3fd   : > { %v2580_v25 = vmul.f32 %v2532_v14, %v2532_v14  ;;  %v3243_v51 = vpop.f32.mrb[20].mxu1 }
 0x3fe   : > { %v2644_v26 = vadd.f32 %v2643_v41, %v2642_v22  ;;  %2487 = vst.msk [vmem:[%s4953_s22 + $0xa8] sm:$0xff] %vm286_vm0, %v3243_v51  ;;  %v2535_v60 = vsub.f32 %v3243_v51, %v3396_v40  ;;  %v2327_v43 = vpop.f32.mrb[21].mxu1  ;;  %v2647_v38 = vsel %vm286_vm0, %v2581_v62, 0.0  ;;  %v3406_v62 = vld [vmem:[%s3658_s20 + $0xf8] sm:$0xff]  ;;  %v3407_v40 = vld [vmem:[%s3658_s20 + $0xf0] sm:$0xff] }
 0x3ff   : > { %v2645_v1 = vsel %vm286_vm0, %v2580_v25, 0.0  ;;  %2486 = vst.msk [vmem:[%s4953_s22 + $0xa0] sm:$0xff] %vm286_vm0, %v2327_v43  ;;  %v2534_v16 = vsub.f32 %v2327_v43, %v3397_v10 }
 0x400   : > { %v2646_v11 = vadd.f32 %v2645_v1, %v2644_v26  ;;  %v2583_v47 = vmul.f32 %v2535_v60, %v2535_v60 }
 0x401   : > { %v2582_v18 = vmul.f32 %v2534_v16, %v2534_v16  ;;  %v3246_v59 = vpop.f32.mrb[22].mxu1 }
 0x402   : > { %v2648_v23 = vadd.f32 %v2647_v38, %v2646_v11  ;;  %2489 = vst.msk [vmem:[%s4953_s22 + $0xb8] sm:$0xff] %vm286_vm0, %v3246_v59  ;;  %v2537_v8 = vsub.f32 %v3246_v59, %v3398_v44  ;;  %v2337_v56 = vpop.f32.mrb[23].mxu1  ;;  %v2651_v19 = vsel %vm286_vm0, %v2583_v47, 0.0  ;;  %v3408_v47 = vld [vmem:[%s3658_s20 + $0x108] sm:$0xff]  ;;  %v3409_v44 = vld [vmem:[%s3658_s20 + $0x100] sm:$0xff] }
 0x403   : > { %v2649_v35 = vsel %vm286_vm0, %v2582_v18, 0.0  ;;  %2488 = vst.msk [vmem:[%s4953_s22 + $0xb0] sm:$0xff] %vm286_vm0, %v2337_v56  ;;  %v2536_v32 = vsub.f32 %v2337_v56, %v3399_v34 }
 0x404   : > { %v2650_v21 = vadd.f32 %v2649_v35, %v2648_v23  ;;  %v2585_v9 = vmul.f32 %v2537_v8, %v2537_v8 }
 0x405   : > { %v2584_v58 = vmul.f32 %v2536_v32, %v2536_v32  ;;  %v3249_v42 = vpop.f32.mrb[24].mxu1 }
 0x406   : > { %v2652_v31 = vadd.f32 %v2651_v19, %v2650_v21  ;;  %2491 = vst.msk [vmem:[%s4953_s22 + $0xc8] sm:$0xff] %vm286_vm0, %v3249_v42  ;;  %v2539_v48 = vsub.f32 %v3249_v42, %v3400_v49  ;;  %v2347_v6 = vpop.f32.mrb[25].mxu1  ;;  %v2655_v29 = vsel %vm286_vm0, %v2585_v9, 0.0  ;;  %v3410_v9 = vld [vmem:[%s3658_s20 + $0x118] sm:$0xff]  ;;  %v3411_v49 = vld [vmem:[%s3658_s20 + $0x110] sm:$0xff] }
 0x407   : > { %v2653_v0 = vsel %vm286_vm0, %v2584_v58, 0.0  ;;  %2490 = vst.msk [vmem:[%s4953_s22 + $0xc0] sm:$0xff] %vm286_vm0, %v2347_v6  ;;  %v2538_v46 = vsub.f32 %v2347_v6, %v3401_v2 }
 0x408   : > { %v2654_v36 = vadd.f32 %v2653_v0, %v2652_v31  ;;  %v2587_v17 = vmul.f32 %v2539_v48, %v2539_v48 }
 0x409   : > { %v2586_v30 = vmul.f32 %v2538_v46, %v2538_v46  ;;  %v3252_v12 = vpop.f32.mrb[26].mxu1 }
 0x40a   : > { %v2656_v20 = vadd.f32 %v2655_v29, %v2654_v36  ;;  %2493 = vst.msk [vmem:[%s4953_s22 + $0xd8] sm:$0xff] %vm286_vm0, %v3252_v12  ;;  %v2541_v45 = vsub.f32 %v3252_v12, %v3402_v53  ;;  %v2357_v61 = vpop.f32.mrb[27].mxu1  ;;  %v2659_v5 = vsel %vm286_vm0, %v2587_v17, 0.0  ;;  %v3412_v17 = vld [vmem:[%s3658_s20 + $0x128] sm:$0xff]  ;;  %v3413_v53 = vld [vmem:[%s3658_s20 + $0x120] sm:$0xff] }
 0x40b   : > { %v2657_v28 = vsel %vm286_vm0, %v2586_v30, 0.0  ;;  %2492 = vst.msk [vmem:[%s4953_s22 + $0xd0] sm:$0xff] %vm286_vm0, %v2357_v61  ;;  %v2540_v3 = vsub.f32 %v2357_v61, %v3403_v54 }
 0x40c   : > { %v2658_v55 = vadd.f32 %v2657_v28, %v2656_v20  ;;  %v2589_v4 = vmul.f32 %v2541_v45, %v2541_v45 }
 0x40d   : > { %v2588_v37 = vmul.f32 %v2540_v3, %v2540_v3  ;;  %v3255_v39 = vpop.f32.mrb[28].mxu1 }
 0x40e   : > { %v2660_v50 = vadd.f32 %v2659_v5, %v2658_v55  ;;  %2495 = vst.msk [vmem:[%s4953_s22 + $0xe8] sm:$0xff] %vm286_vm0, %v3255_v39  ;;  %v2543_v57 = vsub.f32 %v3255_v39, %v3404_v15  ;;  %v2367_v13 = vpop.f32.mrb[29].mxu1  ;;  %v2663_v52 = vsel %vm286_vm0, %v2589_v4, 0.0  ;;  %v3414_v4 = vld [vmem:[%s3658_s20 + $0x138] sm:$0xff]  ;;  %v3415_v15 = vld [vmem:[%s3658_s20 + $0x130] sm:$0xff] }
 0x40f   : > { %v2661_v24 = vsel %vm286_vm0, %v2588_v37, 0.0  ;;  %2494 = vst.msk [vmem:[%s4953_s22 + $0xe0] sm:$0xff] %vm286_vm0, %v2367_v13  ;;  %v2542_v33 = vsub.f32 %v2367_v13, %v3405_v63 }
 0x410   : > { %v2662_v7 = vadd.f32 %v2661_v24, %v2660_v50  ;;  %v2591_v27 = vmul.f32 %v2543_v57, %v2543_v57 }
 0x411   : > { %v2590_v14 = vmul.f32 %v2542_v33, %v2542_v33  ;;  %v3258_v22 = vpop.f32.mrb[30].mxu1 }
 0x412   : > { %v2664_v41 = vadd.f32 %v2663_v52, %v2662_v7  ;;  %2497 = vst.msk [vmem:[%s4953_s22 + $0xf8] sm:$0xff] %vm286_vm0, %v3258_v22  ;;  %v2545_v25 = vsub.f32 %v3258_v22, %v3406_v62  ;;  %v2377_v51 = vpop.f32.mrb[31].mxu1  ;;  %v2667_v1 = vsel %vm286_vm0, %v2591_v27, 0.0  ;;  %v3416_v27 = vld [vmem:[%s3658_s20 + $0x148] sm:$0xff]  ;;  %v3417_v62 = vld [vmem:[%s3658_s20 + $0x140] sm:$0xff] }
 0x413   : > { %v2665_v26 = vsel %vm286_vm0, %v2590_v14, 0.0  ;;  %2496 = vst.msk [vmem:[%s4953_s22 + $0xf0] sm:$0xff] %vm286_vm0, %v2377_v51  ;;  %v2544_v60 = vsub.f32 %v2377_v51, %v3407_v40 }
 0x414   : > { %v2666_v43 = vadd.f32 %v2665_v26, %v2664_v41  ;;  %v2593_v10 = vmul.f32 %v2545_v25, %v2545_v25 }
 0x415   : > { %v2592_v16 = vmul.f32 %v2544_v60, %v2544_v60  ;;  %v3261_v11 = vpop.f32.mrb[32].mxu1 }
 0x416   : > { %v2668_v38 = vadd.f32 %v2667_v1, %v2666_v43  ;;  %2499 = vst.msk [vmem:[%s4953_s22 + $0x108] sm:$0xff] %vm286_vm0, %v3261_v11  ;;  %v2547_v18 = vsub.f32 %v3261_v11, %v3408_v47  ;;  %v2387_v59 = vpop.f32.mrb[33].mxu1  ;;  %v2671_v35 = vsel %vm286_vm0, %v2593_v10, 0.0  ;;  %v3418_v10 = vld [vmem:[%s3658_s20 + $0x158] sm:$0xff]  ;;  %v3419_v47 = vld [vmem:[%s3658_s20 + $0x150] sm:$0xff] }
 0x417   : > { %v2669_v23 = vsel %vm286_vm0, %v2592_v16, 0.0  ;;  %2498 = vst.msk [vmem:[%s4953_s22 + $0x100] sm:$0xff] %vm286_vm0, %v2387_v59  ;;  %v2546_v8 = vsub.f32 %v2387_v59, %v3409_v44 }
 0x418   : > { %v2670_v56 = vadd.f32 %v2669_v23, %v2668_v38  ;;  %v2595_v34 = vmul.f32 %v2547_v18, %v2547_v18 }
 0x419   : > { %v2594_v32 = vmul.f32 %v2546_v8, %v2546_v8  ;;  %v3264_v21 = vpop.f32.mrb[34].mxu1 }
 0x41a   : > { %v2672_v19 = vadd.f32 %v2671_v35, %v2670_v56  ;;  %2501 = vst.msk [vmem:[%s4953_s22 + $0x118] sm:$0xff] %vm286_vm0, %v3264_v21  ;;  %v2549_v58 = vsub.f32 %v3264_v21, %v3410_v9  ;;  %v2397_v42 = vpop.f32.mrb[35].mxu1  ;;  %v2675_v0 = vsel %vm286_vm0, %v2595_v34, 0.0  ;;  %v3420_v34 = vld [vmem:[%s3658_s20 + $0x168] sm:$0xff]  ;;  %v3421_v9 = vld [vmem:[%s3658_s20 + $0x160] sm:$0xff] }
 0x41b   : > { %v2673_v31 = vsel %vm286_vm0, %v2594_v32, 0.0  ;;  %2500 = vst.msk [vmem:[%s4953_s22 + $0x110] sm:$0xff] %vm286_vm0, %v2397_v42  ;;  %v2548_v48 = vsub.f32 %v2397_v42, %v3411_v49 }
 0x41c   : > { %v2674_v6 = vadd.f32 %v2673_v31, %v2672_v19  ;;  %v2597_v2 = vmul.f32 %v2549_v58, %v2549_v58 }
 0x41d   : > { %v2596_v46 = vmul.f32 %v2548_v48, %v2548_v48  ;;  %v3267_v36 = vpop.f32.mrb[36].mxu1 }
 0x41e   : > { %v2676_v29 = vadd.f32 %v2675_v0, %v2674_v6  ;;  %2503 = vst.msk [vmem:[%s4953_s22 + $0x128] sm:$0xff] %vm286_vm0, %v3267_v36  ;;  %v2551_v30 = vsub.f32 %v3267_v36, %v3412_v17  ;;  %v2407_v12 = vpop.f32.mrb[37].mxu1  ;;  %v2679_v28 = vsel %vm286_vm0, %v2597_v2, 0.0 }
 0x41f   : > { %v2677_v20 = vsel %vm286_vm0, %v2596_v46, 0.0  ;;  %2502 = vst.msk [vmem:[%s4953_s22 + $0x120] sm:$0xff] %vm286_vm0, %v2407_v12  ;;  %v2550_v45 = vsub.f32 %v2407_v12, %v3413_v53 }
 0x420   : > { %v2678_v61 = vadd.f32 %v2677_v20, %v2676_v29  ;;  %v2599_v54 = vmul.f32 %v2551_v30, %v2551_v30  ;;  %v3422_v29 = vld [vmem:[%s3658_s20 + $0x178] sm:$0xff]  ;;  %v3423_v20 = vld [vmem:[%s3658_s20 + $0x170] sm:$0xff] }
 0x421   : > { %v2598_v3 = vmul.f32 %v2550_v45, %v2550_v45  ;;  %v3270_v55 = vpop.f32.mrb[38].mxu1 }
 0x422   : > { %v2680_v5 = vadd.f32 %v2679_v28, %v2678_v61  ;;  %2505 = vst.msk [vmem:[%s4953_s22 + $0x138] sm:$0xff] %vm286_vm0, %v3270_v55  ;;  %v2553_v37 = vsub.f32 %v3270_v55, %v3414_v4  ;;  %v2417_v39 = vpop.f32.mrb[39].mxu1  ;;  %v2683_v24 = vsel %vm286_vm0, %v2599_v54, 0.0 }
 0x423   : > { %v2681_v50 = vsel %vm286_vm0, %v2598_v3, 0.0  ;;  %2504 = vst.msk [vmem:[%s4953_s22 + $0x130] sm:$0xff] %vm286_vm0, %v2417_v39  ;;  %v2552_v57 = vsub.f32 %v2417_v39, %v3415_v15 }
 0x424   : > { %v2682_v13 = vadd.f32 %v2681_v50, %v2680_v5  ;;  %v2601_v63 = vmul.f32 %v2553_v37, %v2553_v37 }
 0x425   : > { %v2600_v33 = vmul.f32 %v2552_v57, %v2552_v57  ;;  %v3273_v7 = vpop.f32.mrb[40].mxu1 }
 0x426   : > { %v2684_v52 = vadd.f32 %v2683_v24, %v2682_v13  ;;  %2507 = vst.msk [vmem:[%s4953_s22 + $0x148] sm:$0xff] %vm286_vm0, %v3273_v7  ;;  %v2555_v14 = vsub.f32 %v3273_v7, %v3416_v27  ;;  %v2427_v22 = vpop.f32.mrb[41].mxu1  ;;  %v2687_v26 = vsel %vm286_vm0, %v2601_v63, 0.0 }
 0x427   : > { %v2685_v41 = vsel %vm286_vm0, %v2600_v33, 0.0  ;;  %2506 = vst.msk [vmem:[%s4953_s22 + $0x140] sm:$0xff] %vm286_vm0, %v2427_v22  ;;  %v2554_v25 = vsub.f32 %v2427_v22, %v3417_v62 }
 0x428   : > { %v2686_v51 = vadd.f32 %v2685_v41, %v2684_v52  ;;  %v2603_v40 = vmul.f32 %v2555_v14, %v2555_v14 }
 0x429   : > { %v2602_v60 = vmul.f32 %v2554_v25, %v2554_v25  ;;  %v3276_v43 = vpop.f32.mrb[42].mxu1 }
 0x42a   : > { %v2688_v1 = vadd.f32 %v2687_v26, %v2686_v51  ;;  %2509 = vst.msk [vmem:[%s4953_s22 + $0x158] sm:$0xff] %vm286_vm0, %v3276_v43  ;;  %v2557_v16 = vsub.f32 %v3276_v43, %v3418_v10  ;;  %v2437_v11 = vpop.f32.mrb[43].mxu1  ;;  %v2691_v23 = vsel %vm286_vm0, %v2603_v40, 0.0 }
 0x42b   : > { %v2689_v38 = vsel %vm286_vm0, %v2602_v60, 0.0  ;;  %2508 = vst.msk [vmem:[%s4953_s22 + $0x150] sm:$0xff] %vm286_vm0, %v2437_v11  ;;  %v2556_v18 = vsub.f32 %v2437_v11, %v3419_v47 }
 0x42c   : > { %v2690_v59 = vadd.f32 %v2689_v38, %v2688_v1  ;;  %v2605_v44 = vmul.f32 %v2557_v16, %v2557_v16 }
 0x42d   : > { %v2604_v8 = vmul.f32 %v2556_v18, %v2556_v18  ;;  %v3279_v56 = vpop.f32.mrb[44].mxu1 }
 0x42e   : > { %v2692_v35 = vadd.f32 %v2691_v23, %v2690_v59  ;;  %2511 = vst.msk [vmem:[%s4953_s22 + $0x168] sm:$0xff] %vm286_vm0, %v3279_v56  ;;  %v2559_v32 = vsub.f32 %v3279_v56, %v3420_v34  ;;  %v2447_v21 = vpop.f32.mrb[45].mxu1  ;;  %v2695_v31 = vsel %vm286_vm0, %v2605_v44, 0.0 }
 0x42f   : > { %v2693_v19 = vsel %vm286_vm0, %v2604_v8, 0.0  ;;  %2510 = vst.msk [vmem:[%s4953_s22 + $0x160] sm:$0xff] %vm286_vm0, %v2447_v21  ;;  %v2558_v58 = vsub.f32 %v2447_v21, %v3421_v9 }
 0x430   : > { %v2694_v42 = vadd.f32 %v2693_v19, %v2692_v35  ;;  %v2607_v49 = vmul.f32 %v2559_v32, %v2559_v32 }
 0x431   : > { %v2606_v48 = vmul.f32 %v2558_v58, %v2558_v58 }
 0x432   : > { %v2696_v6 = vadd.f32 %v2695_v31, %v2694_v42  ;;  %v2699_v46 = vsel %vm286_vm0, %v2607_v49, 0.0 }
 0x433   : > { %v2697_v0 = vsel %vm286_vm0, %v2606_v48, 0.0 }
 0x434   : > { %v2698_v2 = vadd.f32 %v2697_v0, %v2696_v6 }
 0x435   : > { %v3282_v36 = vpop.f32.mrb[46].mxu1 }
 0x436   : > { %2513 = vst.msk [vmem:[%s4953_s22 + $0x178] sm:$0xff] %vm286_vm0, %v3282_v36  ;;  %v2561_v17 = vsub.f32 %v3282_v36, %v3422_v29  ;;  %v2457_v30 = vpop.f32.mrb[47].mxu1  ;;  %v2700_v12 = vadd.f32 %v2699_v46, %v2698_v2 }
 0x437   : > { %2512 = vst.msk [vmem:[%s4953_s22 + $0x170] sm:$0xff] %vm286_vm0, %v2457_v30  ;;  %v2560_v53 = vsub.f32 %v2457_v30, %v3423_v20 }
 0x438   : > { %3467 = shalt.err (!%p3464_p2)
}
 0x439   : > { %s3468_s20 = scalar_lea.hbm %s5143_s29, 6144  ;;  %s3472_s10 = scalar_lea.hbm %s5206_s3, 12288 }
 0x43a   : > { %p3469_p4 = scmp.ne.s32.totalorder %s5143_s29, %s3468_s20  ;;  %p3473_p9 = scmp.lt.u32.totalorder %s5143_s29, %s5206_s3 }
 0x43b   : > { %p3474_p1 = scmp.lt.u32.totalorder %s3472_s10, %s3468_s20  ;;  %p3476_p6 = scmp.lt.u32.totalorder %s3468_s20, %s5143_s29 }
 0x43c   : > { %p3470_p5 = pnand %p3469_p4, %p5348_p11 }
 0x43d   : > { %p3475_p3 = por %p3474_p1, %p3473_p9 }
 0x43e   : > { %p3471_p7 = pneg %p3470_p5 }
 0x43f   : > { %p3477_p12 = por %p3476_p6, %p3475_p3 }
 0x441   : > { %p3478_p13 = pnand %p3477_p12, %p3471_p7 }
 0x443   : > { %3481 = shalt.err (!%p3478_p13)
}
 0x444   : > { %s3527_s13 = smov 128   ;;  %s3528_s25 = smov 8   ;;  %v2609_v45 = vmul.f32 %v2561_v17, %v2561_v17  ;;  %v2608_v61 = vmul.f32 %v2560_v53, %v2560_v53  ;;  %vm2711_vm2 = vcmask 253952  }
 0x445   : > { %3327 = dma.vmem_to_hbm [thread:$0]  (%p5348_p11), %s5145_s23, 6144, %s5143_s29, %s2714_s30, %s3527_s13, %s3527_s13, %s3528_s25  }
 0x446   : > { %v2701_v28 = vsel %vm286_vm0, %v2608_v61, 0.0  ;;  %v2703_v3 = vsel %vm286_vm0, %v2609_v45, 0.0  ;;  %p225_p8 = scmp.lt.s32.totalorder %s3575_s19, 1 }
 0x447   : > { %v2702_v54 = vadd.f32 %v2701_v28, %v2700_v12 }
 0x448   : > { %s5356_s19 = smov (!%p225_p8, %s3575_s19), 1 }
 0x449   : > { %v2704_v55 = vadd.f32 %v2703_v3, %v2702_v54  ;;  %s2836_s28 = sshll.u32 %s5356_s19, 3 }
 0x44a   : > { %s228_s12 = scalar_lea.vmem %s5207_s4, %s2836_s28 }
 0x44b   : > { %v2705_v5 = vrot.slane %v2704_v55, 4 }
 0x44d   : > { %v2706_v4 = vadd.f32 %v2705_v5, %v2704_v55 }
 0x44f   : > { %v2707_v37 = vrot.slane %v2706_v4, 2 }
 0x451   : > { %v2708_v39 = vadd.f32 %v2707_v37, %v2706_v4 }
 0x453   : > { %v2709_v50 = vrot.slane %v2708_v39, 1 }
 0x455   : > { %v2710_v15 = vadd.f32 %v2709_v50, %v2708_v39 }
 0x457   : > { %2712 = vst.msk [vmem:[%s228_s12] sm:$0x1] %vm2711_vm2, %v2710_v15 }
 0x458 PF: > { %s2749_s23 = sand.u32 1, %s3508_s15   ;;  %p5349_p11 = scmp.ne.s32.totalorder %s5256_s27, 0 }
 0x459   : > { %p5350_p10 = scmp.ge.s32.totalorder %s3520_s18, 2  ;;  %s2750_s29 = scalar_lea.sflag [#allocation4], %s2749_s23 }
 0x45b   : > { %p3334_p0 = pnand %p5350_p10, %p5349_p11 }
 0x45d   : > { %3503 = dma.done.wait (!%p3334_p0), %s2750_s29, 6144  }
 0x45e   : > { %3505 = vsyncadd (!%p3334_p0), %s2750_s29, 4294961152  ;;  %p18_p2 = scmp.ge.s32.totalorder %s3579_s21, 4   ;;  %s5351_s15 = smov %s3512_s16 }
 0x45f   : > { %s5352_s16 = smov %s3516_s17  ;;  %s5353_s17 = smov %s3591_s24 }
 0x460   : > { %s5354_s18 = smov %s3579_s21  ;;  %20 = sbr.rel (!%p18_p2) target bundleno = 5 (0x5), region = 89 }
 0x467   :  { %2762 = vsyncpa [#allocation3], 1 }
 0x468   :  { %2764 = vsyncpa [#allocation3 + $0x1], 1 }
 0x469   :  { %2765 = vsyncpa [#allocation4], 1 }
 0x46a   :  { %2767 = vsyncpa [#allocation4 + $0x1], 1 }

</bundles_post_ra>
